<compile_context>
chip_gen: v5e
topology: v5e:2x2
jax: 0.10.0
libtpu: 0.0.40
codegen_flags: <defaults>
</compile_context>

<pallas_src>
import functools

import numpy as np
import jax
import jax.numpy as jnp
from jax import lax
from jax.experimental import pallas as pl
from jax.experimental.pallas import tpu as pltpu


_EPS = 1e-5
_LANES = 128
_KSIZE = 4
# (stride, padding) of the 5 ConvTranspose2d layers (kernel_size=4, bias=False).
_LAYER_CFG = [(1, 1), (2, 1), (2, 1), (2, 2), (2, 1)]


# --------------------------- host-side weight prep ---------------------------

def _big_w(w_np, stride, pad, ky, w_in, w_out, cin, cout):
    """128x128 'lane map' weight matrix for one y-tap ky.

    Maps an input row stored as lanes (x_in*cin + ci) to the contribution of
    that row, at y-tap ky, to an output row stored as lanes (x_out*cout + co).
    ConvTranspose2d relation: x_out = stride*x_in - pad + kx.
    """
    m = np.zeros((_LANES, _LANES), np.float32)
    for xi in range(w_in):
        for xo in range(w_out):
            kx = xo - stride * xi + pad
            if 0 <= kx < _KSIZE:
                m[xi * cin:(xi + 1) * cin, xo * cout:(xo + 1) * cout] = \
                    w_np[:, :, ky, kx]
    return m


def _p_mat(w_out, cout):
    """0/1 matrix: per-lane sums -> per-channel sums, broadcast back to lanes."""
    l = np.arange(_LANES)
    valid = l < w_out * cout
    same = (l[:, None] % cout) == (l[None, :] % cout)
    return (same & valid[:, None] & valid[None, :]).astype(np.float32)


def _lane_affine(vec, w_out, cout):
    """Broadcast a per-channel vector to the (x, c) lane layout (zero padded)."""
    out = np.zeros(_LANES, np.float32)
    out[:w_out * cout] = np.tile(np.asarray(vec, np.float32), w_out)
    return out


def init_params(key, nz, ngf, nc):
    """Raw parameters (PyTorch ConvTranspose2d / BatchNorm2d layout)."""
    chans = [nz, ngf * 8, ngf * 4, ngf * 2, ngf, nc]
    params = {}
    for li in range(5):
        key, wk = jax.random.split(key)
        cin, cout = chans[li], chans[li + 1]
        params[f"w{li}"] = 0.02 * jax.random.normal(
            wk, (cin, cout, _KSIZE, _KSIZE), jnp.float32)
        if li < 4:
            params[f"gamma{li}"] = jnp.ones((cout,), jnp.float32)   # BN weight
            params[f"beta{li}"] = jnp.zeros((cout,), jnp.float32)   # BN bias
    return params


def preprocess_params(params, batch, chans, h0=1, w0=1):
    """Hoisted once: static geometry plan + VMEM-resident constant arrays."""
    assert h0 == 1 and w0 == 1, "DCGAN latent input is expected to be 1x1"

    # ---- pass 1: per-layer geometry ----------------------------------------
    geoms, shapes = [], []
    h, w = h0, w0
    for li, (s, p) in enumerate(_LAYER_CFG):
        cin, cout = chans[li], chans[li + 1]
        h_out = (h - 1) * s - 2 * p + _KSIZE
        w_out = (w - 1) * s - 2 * p + _KSIZE
        assert w * cin <= _LANES and w_out * cout <= _LANES, \
            "activation row (W*C) must fit in 128 lanes"
        if s == 1:
            # one "phase", all 4 y-taps; input row iy = oy + p - ky
            phases = [dict(ry=0, taps=[(ky, p - ky) for ky in range(_KSIZE)])]
        else:
            # sub-pixel phases over y: oy = 2u + ry; iy = u + (ry + p - ky)/2
            phases = []
            for ry in range(2):
                taps = [(ky, (ry + p - ky) // 2) for ky in range(_KSIZE)
                        if (ry + p - ky) % 2 == 0]
                phases.append(dict(ry=ry, taps=taps))
        halo = max(0, max(-d for ph in phases for _, d in ph['taps']))
        slack = max(max(d for _, d in ph['taps']) - min(d for _, d in ph['taps'])
                    for ph in phases)
        hp = h + 2 * halo
        rbuf = -(-(batch * hp + slack) // 8) * 8
        geoms.append(dict(h=h, w=w, halo=halo, hp=hp, rbuf=rbuf))
        shapes.append(dict(s=s, p=p, cin=cin, cout=cout, h_out=h_out,
                           w_out=w_out, phases=phases))
        h, w = h_out, w_out

    # ---- pass 2: per-layer plans + stacked constant arrays ------------------
    plans, w_mats, p_mats, g_rows, b_rows = [], [], [], [], []
    for li, ls in enumerate(shapes):
        gi = geoms[li]
        s, p = ls['s'], ls['p']
        is_last = li == len(_LAYER_CFG) - 1
        if is_last:
            dst_hp, dst_halo = ls['h_out'], 0        # output slab geometry
        else:
            dst_hp, dst_halo = geoms[li + 1]['hp'], geoms[li + 1]['halo']
        w_np = np.asarray(params[f"w{li}"], np.float32)
        phase_plans = []
        for ph in ls['phases']:
            taps = ph['taps']
            dmin = min(d for _, d in taps)
            offs = [d - dmin for _, d in taps]
            w_idx = []
            for ky, _ in taps:
                w_idx.append(len(w_mats))
                w_mats.append(_big_w(w_np, s, p, ky, gi['w'], ls['w_out'],
                                     ls['cin'], ls['cout']))
            ry = ph['ry']
            hh = ls['h_out'] if s == 1 else (ls['h_out'] - ry + 1) // 2
            phase_plans.append(dict(
                offs=offs, w_idx=w_idx, hh=hh, dst_step=s,
                g0=[n * gi['hp'] + gi['halo'] + dmin for n in range(batch)],
                dst0=[n * dst_hp + dst_halo + ry for n in range(batch)]))
        plans.append(dict(mg=batch * gi['hp'], is_last=is_last,
                          count=batch * ls['h_out'] * ls['w_out'],
                          phases=phase_plans))
        if not is_last:
            p_mats.append(_p_mat(ls['w_out'], ls['cout']))
            g_rows.append(_lane_affine(params[f"gamma{li}"],
                                       ls['w_out'], ls['cout']))
            b_rows.append(_lane_affine(params[f"beta{li}"],
                                       ls['w_out'], ls['cout']))

    consts = dict(w=jnp.asarray(np.stack(w_mats)).astype(jnp.bfloat16),
                  p=jnp.asarray(np.stack(p_mats)),
                  g=jnp.asarray(np.stack(g_rows)),
                  b=jnp.asarray(np.stack(b_rows)))
    static = dict(plans=plans, geoms=geoms, batch=batch,
                  h_out=h, w_out=w, nc=chans[-1])
    return consts, static


# ------------------------------ fused Pallas kernel --------------------------

def _make_kernel(static):
    plans, geoms, batch = static['plans'], static['geoms'], static['batch']

    def kernel(x_ref, w_ref, p_ref, g_ref, b_ref, out_ref, *bufs):
        # Zero the activation buffers once: halo rows / unused lanes must be 0.
        for buf in bufs:
            buf[...] = jnp.zeros(buf.shape, buf.dtype)
        # Scatter the (1x1-spatial) latent rows into layer 0's input buffer.
        hp0, halo0 = geoms[0]['hp'], geoms[0]['halo']
        for n in range(batch):
            r = n * hp0 + halo0
            bufs[0][r:r + 1, :] = x_ref[n:n + 1, :]

        bn_i = 0
        for li, lp in enumerate(plans):
            src = bufs[li]
            dst = out_ref if lp['is_last'] else bufs[li + 1]
            mg = lp['mg']

            # --- ConvTranspose as per-tap slab matmuls (bf16 x bf16 -> f32) --
            ys = []
            for ph in lp['phases']:
                acc = None
                for off, wi in zip(ph['offs'], ph['w_idx']):
                    a = src[off:off + mg, :].astype(jnp.bfloat16)
                    t = jnp.dot(a, w_ref[wi],
                                preferred_element_type=jnp.float32)
                    acc = t if acc is None else acc + t
                ys.append(acc)

            if not lp['is_last']:
                # --- exact training-mode batch statistics (biased variance) --
                s1 = jnp.zeros((1, _LANES), jnp.float32)
                s2 = jnp.zeros((1, _LANES), jnp.float32)
                for ph, y in zip(lp['phases'], ys):
                    for n in range(batch):
                        blk = y[ph['g0'][n]:ph['g0'][n] + ph['hh'], :]
                        s1 = s1 + blk.sum(axis=0, keepdims=True)
                        s2 = s2 + (blk * blk).sum(axis=0, keepdims=True)
                inv_cnt = 1.0 / lp['count']
                pm = p_ref[bn_i]
                mean = jnp.dot(s1, pm,
                               preferred_element_type=jnp.float32) * inv_cnt
                ex2 = jnp.dot(s2, pm,
                              preferred_element_type=jnp.float32) * inv_cnt
                var = ex2 - mean * mean
                scale = g_ref[bn_i:bn_i + 1, :] * lax.rsqrt(var + _EPS)
                shift = b_ref[bn_i:bn_i + 1, :] - mean * scale
                bn_i += 1
            else:
                scale = shift = None

            # --- normalize / activate valid rows; store with y-interleave ----
            for ph, y in zip(lp['phases'], ys):
                hh, step = ph['hh'], ph['dst_step']
                for n in range(batch):
                    blk = y[ph['g0'][n]:ph['g0'][n] + hh, :]
                    if lp['is_last']:
                        obl = jnp.tanh(blk)
                    else:
                        obl = jnp.maximum(blk * scale + shift, 0.0)
                    obl = obl.astype(dst.dtype)
                    d0 = ph['dst0'][n]
                    if step == 1:
                        dst[d0:d0 + hh, :] = obl
                    else:
                        for u in range(hh):
                            dst[d0 + 2 * u:d0 + 2 * u + 1, :] = obl[u:u + 1, :]
            # Dropout(p=0.0) is the identity.
            # TODO(synk): nonzero dropout_p (stateful PRNG mask) not implemented.

    return kernel


# ----------------------------------- model ------------------------------------

def generator_forward(x_nchw, consts, *, static):
    """Forward pass.  x_nchw: [N, nz, 1, 1] -> [N, nc, 28, 28] (NCHW)."""
    batch = static['batch']
    nz = x_nchw.shape[1]
    x_rows = x_nchw.reshape(batch, nz).astype(jnp.float32)
    x_rows = jnp.pad(x_rows, ((0, 0), (0, _LANES - nz)))

    out_rows = batch * static['h_out']
    scratch = [pltpu.VMEM((g['rbuf'], _LANES), jnp.float32)
               for g in static['geoms']]
    y = pl.pallas_call(
        _make_kernel(static),
        out_shape=jax.ShapeDtypeStruct((out_rows, _LANES), jnp.float32),
        in_specs=[pl.BlockSpec(memory_space=pltpu.MemorySpace.VMEM)] * 5,
        out_specs=pl.BlockSpec(memory_space=pltpu.MemorySpace.VMEM),
        scratch_shapes=scratch,
    )(x_rows, consts['w'], consts['p'], consts['g'], consts['b'])

    h, w, nc = static['h_out'], static['w_out'], static['nc']
    img = y.reshape(batch, h, _LANES)[:, :, :w * nc].reshape(batch, h, w, nc)
    return jnp.transpose(img, (0, 3, 1, 2))    # NHWC -> NCHW


# ------------------------- pure-JAX reference path ---------------------------

def _conv_transpose_ref(x, w, s, p):
    k = w.shape[2]
    kern = jnp.transpose(jnp.flip(w, (2, 3)), (2, 3, 0, 1)).astype(jnp.bfloat16)
    return lax.conv_general_dilated(
        x.astype(jnp.bfloat16), kern, window_strides=(1, 1),
        padding=[(k - 1 - p, k - 1 - p)] * 2, lhs_dilation=(s, s),
        dimension_numbers=("NHWC", "HWIO", "NHWC"),
        preferred_element_type=jnp.float32)


def reference_forward(x_nchw, params):
    """Pure-JAX reference (XLA conv) with the same bf16 operand rounding."""
    x = jnp.transpose(x_nchw, (0, 2, 3, 1)).astype(jnp.float32)
    for li, (s, p) in enumerate(_LAYER_CFG):
        y = _conv_transpose_ref(x, params[f"w{li}"], s, p)
        if li < len(_LAYER_CFG) - 1:
            # BatchNorm2d in (default) training mode: batch stats, biased var.
            mean = y.mean(axis=(0, 1, 2), keepdims=True)
            var = ((y - mean) ** 2).mean(axis=(0, 1, 2), keepdims=True)
            y = (y - mean) * lax.rsqrt(var + _EPS)
            y = jnp.maximum(y * params[f"gamma{li}"] + params[f"beta{li}"], 0.0)
            y = y.astype(jnp.bfloat16)
        else:
            y = jnp.tanh(y)
        x = y
    return jnp.transpose(x, (0, 3, 1, 2))


# ------------------------------------ main -----------------------------------

if __name__ == "__main__":
    nz, ngf, nc, batch = 16, 8, 1, 2
    chans = (nz, ngf * 8, ngf * 4, ngf * 2, ngf, nc)

    key = jax.random.PRNGKey(0)
    key, xk = jax.random.split(key)
    # Standard DCGAN latent input: [N, nz, 1, 1]  ->  output [N, nc, 28, 28]
    x = jax.random.normal(xk, (batch, nz, 1, 1), jnp.float32)
    params = init_params(key, nz, ngf, nc)

    consts, static = preprocess_params(params, batch=batch, chans=chans)
    fwd = jax.jit(functools.partial(generator_forward, static=static))
    out = fwd(x, consts)
    jax.block_until_ready(out)

    assert out.shape == (batch, nc, 28, 28), out.shape
    assert bool(jnp.all(jnp.isfinite(out)))
    assert bool(jnp.all(jnp.abs(out) <= 1.0 + 1e-6))   # tanh range

    ref = reference_forward(x, params)
    max_err = float(jnp.max(jnp.abs(out - ref)))
    assert max_err < 7.5e-2, f"mismatch vs pure-JAX reference: {max_err}"

    print("KERNEL_OK")
</pallas_src>

<mosaic_0001>
module attributes {stable_mosaic.version = 11 : i64} {
  func.func @kernel(%arg0: memref<2x128xf32, #tpu.memory_space<vmem>>, %arg1: memref<20x128x128xbf16, #tpu.memory_space<vmem>>, %arg2: memref<4x128x128xf32, #tpu.memory_space<vmem>>, %arg3: memref<4x128xf32, #tpu.memory_space<vmem>>, %arg4: memref<4x128xf32, #tpu.memory_space<vmem>>, %arg5: memref<56x128xf32, #tpu.memory_space<vmem>>, %arg6: memref<16x128xf32, #tpu.memory_space<vmem>>, %arg7: memref<16x128xf32, #tpu.memory_space<vmem>>, %arg8: memref<16x128xf32, #tpu.memory_space<vmem>>, %arg9: memref<24x128xf32, #tpu.memory_space<vmem>>, %arg10: memref<40x128xf32, #tpu.memory_space<vmem>>) attributes {dimension_semantics = [], scalar_prefetch = 0 : i64, scratch_operands = 5 : i64, tpu.core_type = #tpu.core_type<tc>} {
    %cst = arith.constant 0.000000e+00 : f32
    %0 = vector.broadcast %cst : f32 to vector<16x128xf32>
    %c0 = arith.constant 0 : index
    %c0_0 = arith.constant 0 : index
    %1 = vector.load %arg6[%c0, %c0_0] : memref<16x128xf32, #tpu.memory_space<vmem>>, vector<16x128xf32>
    tpu.vector_store %arg6[%c0, %c0_0], %0 {strides = array<i32>} : memref<16x128xf32, #tpu.memory_space<vmem>>, vector<16x128xf32>,
    %cst_1 = arith.constant 0.000000e+00 : f32
    %2 = vector.broadcast %cst_1 : f32 to vector<16x128xf32>
    %c0_2 = arith.constant 0 : index
    %c0_3 = arith.constant 0 : index
    %3 = vector.load %arg7[%c0_2, %c0_3] : memref<16x128xf32, #tpu.memory_space<vmem>>, vector<16x128xf32>
    tpu.vector_store %arg7[%c0_2, %c0_3], %2 {strides = array<i32>} : memref<16x128xf32, #tpu.memory_space<vmem>>, vector<16x128xf32>,
    %cst_4 = arith.constant 0.000000e+00 : f32
    %4 = vector.broadcast %cst_4 : f32 to vector<16x128xf32>
    %c0_5 = arith.constant 0 : index
    %c0_6 = arith.constant 0 : index
    %5 = vector.load %arg8[%c0_5, %c0_6] : memref<16x128xf32, #tpu.memory_space<vmem>>, vector<16x128xf32>
    tpu.vector_store %arg8[%c0_5, %c0_6], %4 {strides = array<i32>} : memref<16x128xf32, #tpu.memory_space<vmem>>, vector<16x128xf32>,
    %cst_7 = arith.constant 0.000000e+00 : f32
    %6 = vector.broadcast %cst_7 : f32 to vector<24x128xf32>
    %c0_8 = arith.constant 0 : index
    %c0_9 = arith.constant 0 : index
    %7 = vector.load %arg9[%c0_8, %c0_9] : memref<24x128xf32, #tpu.memory_space<vmem>>, vector<24x128xf32>
    tpu.vector_store %arg9[%c0_8, %c0_9], %6 {strides = array<i32>} : memref<24x128xf32, #tpu.memory_space<vmem>>, vector<24x128xf32>,
    %cst_10 = arith.constant 0.000000e+00 : f32
    %8 = vector.broadcast %cst_10 : f32 to vector<40x128xf32>
    %c0_11 = arith.constant 0 : index
    %c0_12 = arith.constant 0 : index
    %9 = vector.load %arg10[%c0_11, %c0_12] : memref<40x128xf32, #tpu.memory_space<vmem>>, vector<40x128xf32>
    tpu.vector_store %arg10[%c0_11, %c0_12], %8 {strides = array<i32>} : memref<40x128xf32, #tpu.memory_space<vmem>>, vector<40x128xf32>,
    %c0_13 = arith.constant 0 : index
    %c0_14 = arith.constant 0 : index
    %10 = vector.load %arg0[%c0_13, %c0_14] : memref<2x128xf32, #tpu.memory_space<vmem>>, vector<1x128xf32>
    %c2 = arith.constant 2 : index
    %c0_15 = arith.constant 0 : index
    %11 = vector.load %arg6[%c2, %c0_15] : memref<16x128xf32, #tpu.memory_space<vmem>>, vector<1x128xf32>
    tpu.vector_store %arg6[%c2, %c0_15], %10 {strides = array<i32>} : memref<16x128xf32, #tpu.memory_space<vmem>>, vector<1x128xf32>,
    %c1 = arith.constant 1 : index
    %c0_16 = arith.constant 0 : index
    %12 = vector.load %arg0[%c1, %c0_16] : memref<2x128xf32, #tpu.memory_space<vmem>>, vector<1x128xf32>
    %c7 = arith.constant 7 : index
    %c0_17 = arith.constant 0 : index
    %13 = vector.load %arg6[%c7, %c0_17] : memref<16x128xf32, #tpu.memory_space<vmem>>, vector<1x128xf32>
    tpu.vector_store %arg6[%c7, %c0_17], %12 {strides = array<i32>} : memref<16x128xf32, #tpu.memory_space<vmem>>, vector<1x128xf32>,
    %c3 = arith.constant 3 : index
    %c0_18 = arith.constant 0 : index
    %14 = vector.load %arg6[%c3, %c0_18] : memref<16x128xf32, #tpu.memory_space<vmem>>, vector<10x128xf32>
    %15 = arith.truncf %14 : vector<10x128xf32> to vector<10x128xbf16>
    %c0_19 = arith.constant 0 : index
    %c0_20 = arith.constant 0 : index
    %c0_21 = arith.constant 0 : index
    %16 = vector.load %arg1[%c0_19, %c0_20, %c0_21] : memref<20x128x128xbf16, #tpu.memory_space<vmem>>, vector<1x128x128xbf16>
    %17 = vector.shape_cast %16 : vector<1x128x128xbf16> to vector<128x128xbf16>
    %cst_22 = arith.constant dense<0.000000e+00> : vector<10x128xf32>
    %18 = tpu.matmul %15, %17, %cst_22 {dimension_numbers = #tpu.dot_dimension_numbers<[1], [0], [0], [1], [0, 0, 1, 1], [], []>} : vector<10x128xbf16>, vector<128x128xbf16>, vector<10x128xf32> -> vector<10x128xf32>
    %c2_23 = arith.constant 2 : index
    %c0_24 = arith.constant 0 : index
    %19 = vector.load %arg6[%c2_23, %c0_24] : memref<16x128xf32, #tpu.memory_space<vmem>>, vector<10x128xf32>
    %20 = arith.truncf %19 : vector<10x128xf32> to vector<10x128xbf16>
    %c1_25 = arith.constant 1 : index
    %c0_26 = arith.constant 0 : index
    %c0_27 = arith.constant 0 : index
    %21 = vector.load %arg1[%c1_25, %c0_26, %c0_27] : memref<20x128x128xbf16, #tpu.memory_space<vmem>>, vector<1x128x128xbf16>
    %22 = vector.shape_cast %21 : vector<1x128x128xbf16> to vector<128x128xbf16>
    %cst_28 = arith.constant dense<0.000000e+00> : vector<10x128xf32>
    %23 = tpu.matmul %20, %22, %cst_28 {dimension_numbers = #tpu.dot_dimension_numbers<[1], [0], [0], [1], [0, 0, 1, 1], [], []>} : vector<10x128xbf16>, vector<128x128xbf16>, vector<10x128xf32> -> vector<10x128xf32>
    %24 = arith.addf %18, %23 : vector<10x128xf32>
    %c1_29 = arith.constant 1 : index
    %c0_30 = arith.constant 0 : index
    %25 = vector.load %arg6[%c1_29, %c0_30] : memref<16x128xf32, #tpu.memory_space<vmem>>, vector<10x128xf32>
    %26 = arith.truncf %25 : vector<10x128xf32> to vector<10x128xbf16>
    %c2_31 = arith.constant 2 : index
    %c0_32 = arith.constant 0 : index
    %c0_33 = arith.constant 0 : index
    %27 = vector.load %arg1[%c2_31, %c0_32, %c0_33] : memref<20x128x128xbf16, #tpu.memory_space<vmem>>, vector<1x128x128xbf16>
    %28 = vector.shape_cast %27 : vector<1x128x128xbf16> to vector<128x128xbf16>
    %cst_34 = arith.constant dense<0.000000e+00> : vector<10x128xf32>
    %29 = tpu.matmul %26, %28, %cst_34 {dimension_numbers = #tpu.dot_dimension_numbers<[1], [0], [0], [1], [0, 0, 1, 1], [], []>} : vector<10x128xbf16>, vector<128x128xbf16>, vector<10x128xf32> -> vector<10x128xf32>
    %30 = arith.addf %24, %29 : vector<10x128xf32>
    %c0_35 = arith.constant 0 : index
    %c0_36 = arith.constant 0 : index
    %31 = vector.load %arg6[%c0_35, %c0_36] : memref<16x128xf32, #tpu.memory_space<vmem>>, vector<10x128xf32>
    %32 = arith.truncf %31 : vector<10x128xf32> to vector<10x128xbf16>
    %c3_37 = arith.constant 3 : index
    %c0_38 = arith.constant 0 : index
    %c0_39 = arith.constant 0 : index
    %33 = vector.load %arg1[%c3_37, %c0_38, %c0_39] : memref<20x128x128xbf16, #tpu.memory_space<vmem>>, vector<1x128x128xbf16>
    %34 = vector.shape_cast %33 : vector<1x128x128xbf16> to vector<128x128xbf16>
    %cst_40 = arith.constant dense<0.000000e+00> : vector<10x128xf32>
    %35 = tpu.matmul %32, %34, %cst_40 {dimension_numbers = #tpu.dot_dimension_numbers<[1], [0], [0], [1], [0, 0, 1, 1], [], []>} : vector<10x128xbf16>, vector<128x128xbf16>, vector<10x128xf32> -> vector<10x128xf32>
    %36 = arith.addf %30, %35 : vector<10x128xf32>
    %cst_41 = arith.constant 0.000000e+00 : f32
    %37 = vector.broadcast %cst_41 : f32 to vector<1x128xf32>
    %cst_42 = arith.constant 0.000000e+00 : f32
    %38 = vector.broadcast %cst_42 : f32 to vector<1x128xf32>
    %39 = vector.extract_strided_slice %36 {offsets = [0, 0], sizes = [2, 128], strides = [1, 1]} : vector<10x128xf32> to vector<2x128xf32>
    %cst_43 = arith.constant dense<0.000000e+00> : vector<128xf32>
    %40 = vector.multi_reduction <add>, %39, %cst_43 [0] : vector<2x128xf32> to vector<128xf32>
    %41 = vector.shape_cast %40 : vector<128xf32> to vector<1x128xf32>
    %42 = arith.addf %37, %41 : vector<1x128xf32>
    %43 = arith.mulf %39, %39 : vector<2x128xf32>
    %cst_44 = arith.constant dense<0.000000e+00> : vector<128xf32>
    %44 = vector.multi_reduction <add>, %43, %cst_44 [0] : vector<2x128xf32> to vector<128xf32>
    %45 = vector.shape_cast %44 : vector<128xf32> to vector<1x128xf32>
    %46 = arith.addf %38, %45 : vector<1x128xf32>
    %47 = vector.extract_strided_slice %36 {offsets = [5, 0], sizes = [2, 128], strides = [1, 1]} : vector<10x128xf32> to vector<2x128xf32>
    %cst_45 = arith.constant dense<0.000000e+00> : vector<128xf32>
    %48 = vector.multi_reduction <add>, %47, %cst_45 [0] : vector<2x128xf32> to vector<128xf32>
    %49 = vector.shape_cast %48 : vector<128xf32> to vector<1x128xf32>
    %50 = arith.addf %42, %49 : vector<1x128xf32>
    %51 = arith.mulf %47, %47 : vector<2x128xf32>
    %cst_46 = arith.constant dense<0.000000e+00> : vector<128xf32>
    %52 = vector.multi_reduction <add>, %51, %cst_46 [0] : vector<2x128xf32> to vector<128xf32>
    %53 = vector.shape_cast %52 : vector<128xf32> to vector<1x128xf32>
    %54 = arith.addf %46, %53 : vector<1x128xf32>
    %c0_47 = arith.constant 0 : index
    %c0_48 = arith.constant 0 : index
    %c0_49 = arith.constant 0 : index
    %55 = vector.load %arg2[%c0_47, %c0_48, %c0_49] : memref<4x128x128xf32, #tpu.memory_space<vmem>>, vector<1x128x128xf32>
    %56 = vector.shape_cast %55 : vector<1x128x128xf32> to vector<128x128xf32>
    %cst_50 = arith.constant dense<0.000000e+00> : vector<1x128xf32>
    %57 = tpu.matmul %50, %56, %cst_50 {dimension_numbers = #tpu.dot_dimension_numbers<[1], [0], [0], [1], [0, 0, 1, 1], [], []>} : vector<1x128xf32>, vector<128x128xf32>, vector<1x128xf32> -> vector<1x128xf32>
    %cst_51 = arith.constant 1.250000e-01 : f32
    %58 = vector.broadcast %cst_51 : f32 to vector<1x128xf32>
    %59 = arith.mulf %57, %58 : vector<1x128xf32>
    %cst_52 = arith.constant dense<0.000000e+00> : vector<1x128xf32>
    %60 = tpu.matmul %54, %56, %cst_52 {dimension_numbers = #tpu.dot_dimension_numbers<[1], [0], [0], [1], [0, 0, 1, 1], [], []>} : vector<1x128xf32>, vector<128x128xf32>, vector<1x128xf32> -> vector<1x128xf32>
    %cst_53 = arith.constant 1.250000e-01 : f32
    %61 = vector.broadcast %cst_53 : f32 to vector<1x128xf32>
    %62 = arith.mulf %60, %61 : vector<1x128xf32>
    %63 = arith.mulf %59, %59 : vector<1x128xf32>
    %64 = arith.subf %62, %63 : vector<1x128xf32>
    %c0_54 = arith.constant 0 : index
    %c0_55 = arith.constant 0 : index
    %65 = vector.load %arg3[%c0_54, %c0_55] : memref<4x128xf32, #tpu.memory_space<vmem>>, vector<1x128xf32>
    %cst_56 = arith.constant 9.99999974E-6 : f32
    %66 = vector.broadcast %cst_56 : f32 to vector<1x128xf32>
    %67 = arith.addf %64, %66 : vector<1x128xf32>
    %68 = math.rsqrt %67 : vector<1x128xf32>
    %69 = arith.mulf %65, %68 : vector<1x128xf32>
    %c0_57 = arith.constant 0 : index
    %c0_58 = arith.constant 0 : index
    %70 = vector.load %arg4[%c0_57, %c0_58] : memref<4x128xf32, #tpu.memory_space<vmem>>, vector<1x128xf32>
    %71 = arith.mulf %59, %69 : vector<1x128xf32>
    %72 = arith.subf %70, %71 : vector<1x128xf32>
    %73 = vector.extract_strided_slice %36 {offsets = [0, 0], sizes = [2, 128], strides = [1, 1]} : vector<10x128xf32> to vector<2x128xf32>
    %74 = vector.broadcast %69 : vector<1x128xf32> to vector<2x128xf32>
    %75 = arith.mulf %73, %74 : vector<2x128xf32>
    %76 = vector.broadcast %72 : vector<1x128xf32> to vector<2x128xf32>
    %77 = arith.addf %75, %76 : vector<2x128xf32>
    %cst_59 = arith.constant 0.000000e+00 : f32
    %78 = vector.broadcast %cst_59 : f32 to vector<2x128xf32>
    %79 = arith.maximumf %77, %78 : vector<2x128xf32>
    %c1_60 = arith.constant 1 : index
    %c0_61 = arith.constant 0 : index
    %80 = vector.load %arg7[%c1_60, %c0_61] : memref<16x128xf32, #tpu.memory_space<vmem>>, vector<2x128xf32>
    tpu.vector_store %arg7[%c1_60, %c0_61], %79 {strides = array<i32>} : memref<16x128xf32, #tpu.memory_space<vmem>>, vector<2x128xf32>,
    %81 = vector.extract_strided_slice %36 {offsets = [5, 0], sizes = [2, 128], strides = [1, 1]} : vector<10x128xf32> to vector<2x128xf32>
    %82 = vector.broadcast %69 : vector<1x128xf32> to vector<2x128xf32>
    %83 = arith.mulf %81, %82 : vector<2x128xf32>
    %84 = vector.broadcast %72 : vector<1x128xf32> to vector<2x128xf32>
    %85 = arith.addf %83, %84 : vector<2x128xf32>
    %cst_62 = arith.constant 0.000000e+00 : f32
    %86 = vector.broadcast %cst_62 : f32 to vector<2x128xf32>
    %87 = arith.maximumf %85, %86 : vector<2x128xf32>
    %c5 = arith.constant 5 : index
    %c0_63 = arith.constant 0 : index
    %88 = vector.load %arg7[%c5, %c0_63] : memref<16x128xf32, #tpu.memory_space<vmem>>, vector<2x128xf32>
    tpu.vector_store %arg7[%c5, %c0_63], %87 {strides = array<i32>} : memref<16x128xf32, #tpu.memory_space<vmem>>, vector<2x128xf32>,
    %c1_64 = arith.constant 1 : index
    %c0_65 = arith.constant 0 : index
    %89 = vector.load %arg7[%c1_64, %c0_65] : memref<16x128xf32, #tpu.memory_space<vmem>>, vector<8x128xf32>
    %90 = arith.truncf %89 : vector<8x128xf32> to vector<8x128xbf16>
    %c4 = arith.constant 4 : index
    %c0_66 = arith.constant 0 : index
    %c0_67 = arith.constant 0 : index
    %91 = vector.load %arg1[%c4, %c0_66, %c0_67] : memref<20x128x128xbf16, #tpu.memory_space<vmem>>, vector<1x128x128xbf16>
    %92 = vector.shape_cast %91 : vector<1x128x128xbf16> to vector<128x128xbf16>
    %cst_68 = arith.constant dense<0.000000e+00> : vector<8x128xf32>
    %93 = tpu.matmul %90, %92, %cst_68 {dimension_numbers = #tpu.dot_dimension_numbers<[1], [0], [0], [1], [0, 0, 1, 1], [], []>} : vector<8x128xbf16>, vector<128x128xbf16>, vector<8x128xf32> -> vector<8x128xf32>
    %c0_69 = arith.constant 0 : index
    %c0_70 = arith.constant 0 : index
    %94 = vector.load %arg7[%c0_69, %c0_70] : memref<16x128xf32, #tpu.memory_space<vmem>>, vector<8x128xf32>
    %95 = arith.truncf %94 : vector<8x128xf32> to vector<8x128xbf16>
    %c5_71 = arith.constant 5 : index
    %c0_72 = arith.constant 0 : index
    %c0_73 = arith.constant 0 : index
    %96 = vector.load %arg1[%c5_71, %c0_72, %c0_73] : memref<20x128x128xbf16, #tpu.memory_space<vmem>>, vector<1x128x128xbf16>
    %97 = vector.shape_cast %96 : vector<1x128x128xbf16> to vector<128x128xbf16>
    %cst_74 = arith.constant dense<0.000000e+00> : vector<8x128xf32>
    %98 = tpu.matmul %95, %97, %cst_74 {dimension_numbers = #tpu.dot_dimension_numbers<[1], [0], [0], [1], [0, 0, 1, 1], [], []>} : vector<8x128xbf16>, vector<128x128xbf16>, vector<8x128xf32> -> vector<8x128xf32>
    %99 = arith.addf %93, %98 : vector<8x128xf32>
    %c1_75 = arith.constant 1 : index
    %c0_76 = arith.constant 0 : index
    %100 = vector.load %arg7[%c1_75, %c0_76] : memref<16x128xf32, #tpu.memory_space<vmem>>, vector<8x128xf32>
    %101 = arith.truncf %100 : vector<8x128xf32> to vector<8x128xbf16>
    %c6 = arith.constant 6 : index
    %c0_77 = arith.constant 0 : index
    %c0_78 = arith.constant 0 : index
    %102 = vector.load %arg1[%c6, %c0_77, %c0_78] : memref<20x128x128xbf16, #tpu.memory_space<vmem>>, vector<1x128x128xbf16>
    %103 = vector.shape_cast %102 : vector<1x128x128xbf16> to vector<128x128xbf16>
    %cst_79 = arith.constant dense<0.000000e+00> : vector<8x128xf32>
    %104 = tpu.matmul %101, %103, %cst_79 {dimension_numbers = #tpu.dot_dimension_numbers<[1], [0], [0], [1], [0, 0, 1, 1], [], []>} : vector<8x128xbf16>, vector<128x128xbf16>, vector<8x128xf32> -> vector<8x128xf32>
    %c0_80 = arith.constant 0 : index
    %c0_81 = arith.constant 0 : index
    %105 = vector.load %arg7[%c0_80, %c0_81] : memref<16x128xf32, #tpu.memory_space<vmem>>, vector<8x128xf32>
    %106 = arith.truncf %105 : vector<8x128xf32> to vector<8x128xbf16>
    %c7_82 = arith.constant 7 : index
    %c0_83 = arith.constant 0 : index
    %c0_84 = arith.constant 0 : index
    %107 = vector.load %arg1[%c7_82, %c0_83, %c0_84] : memref<20x128x128xbf16, #tpu.memory_space<vmem>>, vector<1x128x128xbf16>
    %108 = vector.shape_cast %107 : vector<1x128x128xbf16> to vector<128x128xbf16>
    %cst_85 = arith.constant dense<0.000000e+00> : vector<8x128xf32>
    %109 = tpu.matmul %106, %108, %cst_85 {dimension_numbers = #tpu.dot_dimension_numbers<[1], [0], [0], [1], [0, 0, 1, 1], [], []>} : vector<8x128xbf16>, vector<128x128xbf16>, vector<8x128xf32> -> vector<8x128xf32>
    %110 = arith.addf %104, %109 : vector<8x128xf32>
    %cst_86 = arith.constant 0.000000e+00 : f32
    %111 = vector.broadcast %cst_86 : f32 to vector<1x128xf32>
    %cst_87 = arith.constant 0.000000e+00 : f32
    %112 = vector.broadcast %cst_87 : f32 to vector<1x128xf32>
    %113 = vector.extract_strided_slice %99 {offsets = [0, 0], sizes = [2, 128], strides = [1, 1]} : vector<8x128xf32> to vector<2x128xf32>
    %cst_88 = arith.constant dense<0.000000e+00> : vector<128xf32>
    %114 = vector.multi_reduction <add>, %113, %cst_88 [0] : vector<2x128xf32> to vector<128xf32>
    %115 = vector.shape_cast %114 : vector<128xf32> to vector<1x128xf32>
    %116 = arith.addf %111, %115 : vector<1x128xf32>
    %117 = arith.mulf %113, %113 : vector<2x128xf32>
    %cst_89 = arith.constant dense<0.000000e+00> : vector<128xf32>
    %118 = vector.multi_reduction <add>, %117, %cst_89 [0] : vector<2x128xf32> to vector<128xf32>
    %119 = vector.shape_cast %118 : vector<128xf32> to vector<1x128xf32>
    %120 = arith.addf %112, %119 : vector<1x128xf32>
    %121 = vector.extract_strided_slice %99 {offsets = [4, 0], sizes = [2, 128], strides = [1, 1]} : vector<8x128xf32> to vector<2x128xf32>
    %cst_90 = arith.constant dense<0.000000e+00> : vector<128xf32>
    %122 = vector.multi_reduction <add>, %121, %cst_90 [0] : vector<2x128xf32> to vector<128xf32>
    %123 = vector.shape_cast %122 : vector<128xf32> to vector<1x128xf32>
    %124 = arith.addf %116, %123 : vector<1x128xf32>
    %125 = arith.mulf %121, %121 : vector<2x128xf32>
    %cst_91 = arith.constant dense<0.000000e+00> : vector<128xf32>
    %126 = vector.multi_reduction <add>, %125, %cst_91 [0] : vector<2x128xf32> to vector<128xf32>
    %127 = vector.shape_cast %126 : vector<128xf32> to vector<1x128xf32>
    %128 = arith.addf %120, %127 : vector<1x128xf32>
    %129 = vector.extract_strided_slice %110 {offsets = [1, 0], sizes = [2, 128], strides = [1, 1]} : vector<8x128xf32> to vector<2x128xf32>
    %cst_92 = arith.constant dense<0.000000e+00> : vector<128xf32>
    %130 = vector.multi_reduction <add>, %129, %cst_92 [0] : vector<2x128xf32> to vector<128xf32>
    %131 = vector.shape_cast %130 : vector<128xf32> to vector<1x128xf32>
    %132 = arith.addf %124, %131 : vector<1x128xf32>
    %133 = arith.mulf %129, %129 : vector<2x128xf32>
    %cst_93 = arith.constant dense<0.000000e+00> : vector<128xf32>
    %134 = vector.multi_reduction <add>, %133, %cst_93 [0] : vector<2x128xf32> to vector<128xf32>
    %135 = vector.shape_cast %134 : vector<128xf32> to vector<1x128xf32>
    %136 = arith.addf %128, %135 : vector<1x128xf32>
    %137 = vector.extract_strided_slice %110 {offsets = [5, 0], sizes = [2, 128], strides = [1, 1]} : vector<8x128xf32> to vector<2x128xf32>
    %cst_94 = arith.constant dense<0.000000e+00> : vector<128xf32>
    %138 = vector.multi_reduction <add>, %137, %cst_94 [0] : vector<2x128xf32> to vector<128xf32>
    %139 = vector.shape_cast %138 : vector<128xf32> to vector<1x128xf32>
    %140 = arith.addf %132, %139 : vector<1x128xf32>
    %141 = arith.mulf %137, %137 : vector<2x128xf32>
    %cst_95 = arith.constant dense<0.000000e+00> : vector<128xf32>
    %142 = vector.multi_reduction <add>, %141, %cst_95 [0] : vector<2x128xf32> to vector<128xf32>
    %143 = vector.shape_cast %142 : vector<128xf32> to vector<1x128xf32>
    %144 = arith.addf %136, %143 : vector<1x128xf32>
    %c1_96 = arith.constant 1 : index
    %c0_97 = arith.constant 0 : index
    %c0_98 = arith.constant 0 : index
    %145 = vector.load %arg2[%c1_96, %c0_97, %c0_98] : memref<4x128x128xf32, #tpu.memory_space<vmem>>, vector<1x128x128xf32>
    %146 = vector.shape_cast %145 : vector<1x128x128xf32> to vector<128x128xf32>
    %cst_99 = arith.constant dense<0.000000e+00> : vector<1x128xf32>
    %147 = tpu.matmul %140, %146, %cst_99 {dimension_numbers = #tpu.dot_dimension_numbers<[1], [0], [0], [1], [0, 0, 1, 1], [], []>} : vector<1x128xf32>, vector<128x128xf32>, vector<1x128xf32> -> vector<1x128xf32>
    %cst_100 = arith.constant 3.125000e-02 : f32
    %148 = vector.broadcast %cst_100 : f32 to vector<1x128xf32>
    %149 = arith.mulf %147, %148 : vector<1x128xf32>
    %cst_101 = arith.constant dense<0.000000e+00> : vector<1x128xf32>
    %150 = tpu.matmul %144, %146, %cst_101 {dimension_numbers = #tpu.dot_dimension_numbers<[1], [0], [0], [1], [0, 0, 1, 1], [], []>} : vector<1x128xf32>, vector<128x128xf32>, vector<1x128xf32> -> vector<1x128xf32>
    %cst_102 = arith.constant 3.125000e-02 : f32
    %151 = vector.broadcast %cst_102 : f32 to vector<1x128xf32>
    %152 = arith.mulf %150, %151 : vector<1x128xf32>
    %153 = arith.mulf %149, %149 : vector<1x128xf32>
    %154 = arith.subf %152, %153 : vector<1x128xf32>
    %c1_103 = arith.constant 1 : index
    %c0_104 = arith.constant 0 : index
    %155 = vector.load %arg3[%c1_103, %c0_104] : memref<4x128xf32, #tpu.memory_space<vmem>>, vector<1x128xf32>
    %cst_105 = arith.constant 9.99999974E-6 : f32
    %156 = vector.broadcast %cst_105 : f32 to vector<1x128xf32>
    %157 = arith.addf %154, %156 : vector<1x128xf32>
    %158 = math.rsqrt %157 : vector<1x128xf32>
    %159 = arith.mulf %155, %158 : vector<1x128xf32>
    %c1_106 = arith.constant 1 : index
    %c0_107 = arith.constant 0 : index
    %160 = vector.load %arg4[%c1_106, %c0_107] : memref<4x128xf32, #tpu.memory_space<vmem>>, vector<1x128xf32>
    %161 = arith.mulf %149, %159 : vector<1x128xf32>
    %162 = arith.subf %160, %161 : vector<1x128xf32>
    %163 = vector.extract_strided_slice %99 {offsets = [0, 0], sizes = [2, 128], strides = [1, 1]} : vector<8x128xf32> to vector<2x128xf32>
    %164 = vector.broadcast %159 : vector<1x128xf32> to vector<2x128xf32>
    %165 = arith.mulf %163, %164 : vector<2x128xf32>
    %166 = vector.broadcast %162 : vector<1x128xf32> to vector<2x128xf32>
    %167 = arith.addf %165, %166 : vector<2x128xf32>
    %cst_108 = arith.constant 0.000000e+00 : f32
    %168 = vector.broadcast %cst_108 : f32 to vector<2x128xf32>
    %169 = arith.maximumf %167, %168 : vector<2x128xf32>
    %170 = vector.extract_strided_slice %169 {offsets = [0, 0], sizes = [1, 128], strides = [1, 1]} : vector<2x128xf32> to vector<1x128xf32>
    %c1_109 = arith.constant 1 : index
    %c0_110 = arith.constant 0 : index
    %171 = vector.load %arg8[%c1_109, %c0_110] : memref<16x128xf32, #tpu.memory_space<vmem>>, vector<1x128xf32>
    tpu.vector_store %arg8[%c1_109, %c0_110], %170 {strides = array<i32>} : memref<16x128xf32, #tpu.memory_space<vmem>>, vector<1x128xf32>,
    %172 = vector.extract_strided_slice %169 {offsets = [1, 0], sizes = [1, 128], strides = [1, 1]} : vector<2x128xf32> to vector<1x128xf32>
    %c3_111 = arith.constant 3 : index
    %c0_112 = arith.constant 0 : index
    %173 = vector.load %arg8[%c3_111, %c0_112] : memref<16x128xf32, #tpu.memory_space<vmem>>, vector<1x128xf32>
    tpu.vector_store %arg8[%c3_111, %c0_112], %172 {strides = array<i32>} : memref<16x128xf32, #tpu.memory_space<vmem>>, vector<1x128xf32>,
    %174 = vector.extract_strided_slice %99 {offsets = [4, 0], sizes = [2, 128], strides = [1, 1]} : vector<8x128xf32> to vector<2x128xf32>
    %175 = vector.broadcast %159 : vector<1x128xf32> to vector<2x128xf32>
    %176 = arith.mulf %174, %175 : vector<2x128xf32>
    %177 = vector.broadcast %162 : vector<1x128xf32> to vector<2x128xf32>
    %178 = arith.addf %176, %177 : vector<2x128xf32>
    %cst_113 = arith.constant 0.000000e+00 : f32
    %179 = vector.broadcast %cst_113 : f32 to vector<2x128xf32>
    %180 = arith.maximumf %178, %179 : vector<2x128xf32>
    %181 = vector.extract_strided_slice %180 {offsets = [0, 0], sizes = [1, 128], strides = [1, 1]} : vector<2x128xf32> to vector<1x128xf32>
    %c7_114 = arith.constant 7 : index
    %c0_115 = arith.constant 0 : index
    %182 = vector.load %arg8[%c7_114, %c0_115] : memref<16x128xf32, #tpu.memory_space<vmem>>, vector<1x128xf32>
    tpu.vector_store %arg8[%c7_114, %c0_115], %181 {strides = array<i32>} : memref<16x128xf32, #tpu.memory_space<vmem>>, vector<1x128xf32>,
    %183 = vector.extract_strided_slice %180 {offsets = [1, 0], sizes = [1, 128], strides = [1, 1]} : vector<2x128xf32> to vector<1x128xf32>
    %c9 = arith.constant 9 : index
    %c0_116 = arith.constant 0 : index
    %184 = vector.load %arg8[%c9, %c0_116] : memref<16x128xf32, #tpu.memory_space<vmem>>, vector<1x128xf32>
    tpu.vector_store %arg8[%c9, %c0_116], %183 {strides = array<i32>} : memref<16x128xf32, #tpu.memory_space<vmem>>, vector<1x128xf32>,
    %185 = vector.extract_strided_slice %110 {offsets = [1, 0], sizes = [2, 128], strides = [1, 1]} : vector<8x128xf32> to vector<2x128xf32>
    %186 = vector.broadcast %159 : vector<1x128xf32> to vector<2x128xf32>
    %187 = arith.mulf %185, %186 : vector<2x128xf32>
    %188 = vector.broadcast %162 : vector<1x128xf32> to vector<2x128xf32>
    %189 = arith.addf %187, %188 : vector<2x128xf32>
    %cst_117 = arith.constant 0.000000e+00 : f32
    %190 = vector.broadcast %cst_117 : f32 to vector<2x128xf32>
    %191 = arith.maximumf %189, %190 : vector<2x128xf32>
    %192 = vector.extract_strided_slice %191 {offsets = [0, 0], sizes = [1, 128], strides = [1, 1]} : vector<2x128xf32> to vector<1x128xf32>
    %c2_118 = arith.constant 2 : index
    %c0_119 = arith.constant 0 : index
    %193 = vector.load %arg8[%c2_118, %c0_119] : memref<16x128xf32, #tpu.memory_space<vmem>>, vector<1x128xf32>
    tpu.vector_store %arg8[%c2_118, %c0_119], %192 {strides = array<i32>} : memref<16x128xf32, #tpu.memory_space<vmem>>, vector<1x128xf32>,
    %194 = vector.extract_strided_slice %191 {offsets = [1, 0], sizes = [1, 128], strides = [1, 1]} : vector<2x128xf32> to vector<1x128xf32>
    %c4_120 = arith.constant 4 : index
    %c0_121 = arith.constant 0 : index
    %195 = vector.load %arg8[%c4_120, %c0_121] : memref<16x128xf32, #tpu.memory_space<vmem>>, vector<1x128xf32>
    tpu.vector_store %arg8[%c4_120, %c0_121], %194 {strides = array<i32>} : memref<16x128xf32, #tpu.memory_space<vmem>>, vector<1x128xf32>,
    %196 = vector.extract_strided_slice %110 {offsets = [5, 0], sizes = [2, 128], strides = [1, 1]} : vector<8x128xf32> to vector<2x128xf32>
    %197 = vector.broadcast %159 : vector<1x128xf32> to vector<2x128xf32>
    %198 = arith.mulf %196, %197 : vector<2x128xf32>
    %199 = vector.broadcast %162 : vector<1x128xf32> to vector<2x128xf32>
    %200 = arith.addf %198, %199 : vector<2x128xf32>
    %cst_122 = arith.constant 0.000000e+00 : f32
    %201 = vector.broadcast %cst_122 : f32 to vector<2x128xf32>
    %202 = arith.maximumf %200, %201 : vector<2x128xf32>
    %203 = vector.extract_strided_slice %202 {offsets = [0, 0], sizes = [1, 128], strides = [1, 1]} : vector<2x128xf32> to vector<1x128xf32>
    %c8 = arith.constant 8 : index
    %c0_123 = arith.constant 0 : index
    %204 = vector.load %arg8[%c8, %c0_123] : memref<16x128xf32, #tpu.memory_space<vmem>>, vector<1x128xf32>
    tpu.vector_store %arg8[%c8, %c0_123], %203 {strides = array<i32>} : memref<16x128xf32, #tpu.memory_space<vmem>>, vector<1x128xf32>,
    %205 = vector.extract_strided_slice %202 {offsets = [1, 0], sizes = [1, 128], strides = [1, 1]} : vector<2x128xf32> to vector<1x128xf32>
    %c10 = arith.constant 10 : index
    %c0_124 = arith.constant 0 : index
    %206 = vector.load %arg8[%c10, %c0_124] : memref<16x128xf32, #tpu.memory_space<vmem>>, vector<1x128xf32>
    tpu.vector_store %arg8[%c10, %c0_124], %205 {strides = array<i32>} : memref<16x128xf32, #tpu.memory_space<vmem>>, vector<1x128xf32>,
    %c1_125 = arith.constant 1 : index
    %c0_126 = arith.constant 0 : index
    %207 = vector.load %arg8[%c1_125, %c0_126] : memref<16x128xf32, #tpu.memory_space<vmem>>, vector<12x128xf32>
    %208 = arith.truncf %207 : vector<12x128xf32> to vector<12x128xbf16>
    %c8_127 = arith.constant 8 : index
    %c0_128 = arith.constant 0 : index
    %c0_129 = arith.constant 0 : index
    %209 = vector.load %arg1[%c8_127, %c0_128, %c0_129] : memref<20x128x128xbf16, #tpu.memory_space<vmem>>, vector<1x128x128xbf16>
    %210 = vector.shape_cast %209 : vector<1x128x128xbf16> to vector<128x128xbf16>
    %cst_130 = arith.constant dense<0.000000e+00> : vector<12x128xf32>
    %211 = tpu.matmul %208, %210, %cst_130 {dimension_numbers = #tpu.dot_dimension_numbers<[1], [0], [0], [1], [0, 0, 1, 1], [], []>} : vector<12x128xbf16>, vector<128x128xbf16>, vector<12x128xf32> -> vector<12x128xf32>
    %c0_131 = arith.constant 0 : index
    %c0_132 = arith.constant 0 : index
    %212 = vector.load %arg8[%c0_131, %c0_132] : memref<16x128xf32, #tpu.memory_space<vmem>>, vector<12x128xf32>
    %213 = arith.truncf %212 : vector<12x128xf32> to vector<12x128xbf16>
    %c9_133 = arith.constant 9 : index
    %c0_134 = arith.constant 0 : index
    %c0_135 = arith.constant 0 : index
    %214 = vector.load %arg1[%c9_133, %c0_134, %c0_135] : memref<20x128x128xbf16, #tpu.memory_space<vmem>>, vector<1x128x128xbf16>
    %215 = vector.shape_cast %214 : vector<1x128x128xbf16> to vector<128x128xbf16>
    %cst_136 = arith.constant dense<0.000000e+00> : vector<12x128xf32>
    %216 = tpu.matmul %213, %215, %cst_136 {dimension_numbers = #tpu.dot_dimension_numbers<[1], [0], [0], [1], [0, 0, 1, 1], [], []>} : vector<12x128xbf16>, vector<128x128xbf16>, vector<12x128xf32> -> vector<12x128xf32>
    %217 = arith.addf %211, %216 : vector<12x128xf32>
    %c1_137 = arith.constant 1 : index
    %c0_138 = arith.constant 0 : index
    %218 = vector.load %arg8[%c1_137, %c0_138] : memref<16x128xf32, #tpu.memory_space<vmem>>, vector<12x128xf32>
    %219 = arith.truncf %218 : vector<12x128xf32> to vector<12x128xbf16>
    %c10_139 = arith.constant 10 : index
    %c0_140 = arith.constant 0 : index
    %c0_141 = arith.constant 0 : index
    %220 = vector.load %arg1[%c10_139, %c0_140, %c0_141] : memref<20x128x128xbf16, #tpu.memory_space<vmem>>, vector<1x128x128xbf16>
    %221 = vector.shape_cast %220 : vector<1x128x128xbf16> to vector<128x128xbf16>
    %cst_142 = arith.constant dense<0.000000e+00> : vector<12x128xf32>
    %222 = tpu.matmul %219, %221, %cst_142 {dimension_numbers = #tpu.dot_dimension_numbers<[1], [0], [0], [1], [0, 0, 1, 1], [], []>} : vector<12x128xbf16>, vector<128x128xbf16>, vector<12x128xf32> -> vector<12x128xf32>
    %c0_143 = arith.constant 0 : index
    %c0_144 = arith.constant 0 : index
    %223 = vector.load %arg8[%c0_143, %c0_144] : memref<16x128xf32, #tpu.memory_space<vmem>>, vector<12x128xf32>
    %224 = arith.truncf %223 : vector<12x128xf32> to vector<12x128xbf16>
    %c11 = arith.constant 11 : index
    %c0_145 = arith.constant 0 : index
    %c0_146 = arith.constant 0 : index
    %225 = vector.load %arg1[%c11, %c0_145, %c0_146] : memref<20x128x128xbf16, #tpu.memory_space<vmem>>, vector<1x128x128xbf16>
    %226 = vector.shape_cast %225 : vector<1x128x128xbf16> to vector<128x128xbf16>
    %cst_147 = arith.constant dense<0.000000e+00> : vector<12x128xf32>
    %227 = tpu.matmul %224, %226, %cst_147 {dimension_numbers = #tpu.dot_dimension_numbers<[1], [0], [0], [1], [0, 0, 1, 1], [], []>} : vector<12x128xbf16>, vector<128x128xbf16>, vector<12x128xf32> -> vector<12x128xf32>
    %228 = arith.addf %222, %227 : vector<12x128xf32>
    %cst_148 = arith.constant 0.000000e+00 : f32
    %229 = vector.broadcast %cst_148 : f32 to vector<1x128xf32>
    %cst_149 = arith.constant 0.000000e+00 : f32
    %230 = vector.broadcast %cst_149 : f32 to vector<1x128xf32>
    %231 = vector.extract_strided_slice %217 {offsets = [0, 0], sizes = [4, 128], strides = [1, 1]} : vector<12x128xf32> to vector<4x128xf32>
    %cst_150 = arith.constant dense<0.000000e+00> : vector<128xf32>
    %232 = vector.multi_reduction <add>, %231, %cst_150 [0] : vector<4x128xf32> to vector<128xf32>
    %233 = vector.shape_cast %232 : vector<128xf32> to vector<1x128xf32>
    %234 = arith.addf %229, %233 : vector<1x128xf32>
    %235 = arith.mulf %231, %231 : vector<4x128xf32>
    %cst_151 = arith.constant dense<0.000000e+00> : vector<128xf32>
    %236 = vector.multi_reduction <add>, %235, %cst_151 [0] : vector<4x128xf32> to vector<128xf32>
    %237 = vector.shape_cast %236 : vector<128xf32> to vector<1x128xf32>
    %238 = arith.addf %230, %237 : vector<1x128xf32>
    %239 = vector.extract_strided_slice %217 {offsets = [6, 0], sizes = [4, 128], strides = [1, 1]} : vector<12x128xf32> to vector<4x128xf32>
    %cst_152 = arith.constant dense<0.000000e+00> : vector<128xf32>
    %240 = vector.multi_reduction <add>, %239, %cst_152 [0] : vector<4x128xf32> to vector<128xf32>
    %241 = vector.shape_cast %240 : vector<128xf32> to vector<1x128xf32>
    %242 = arith.addf %234, %241 : vector<1x128xf32>
    %243 = arith.mulf %239, %239 : vector<4x128xf32>
    %cst_153 = arith.constant dense<0.000000e+00> : vector<128xf32>
    %244 = vector.multi_reduction <add>, %243, %cst_153 [0] : vector<4x128xf32> to vector<128xf32>
    %245 = vector.shape_cast %244 : vector<128xf32> to vector<1x128xf32>
    %246 = arith.addf %238, %245 : vector<1x128xf32>
    %247 = vector.extract_strided_slice %228 {offsets = [1, 0], sizes = [4, 128], strides = [1, 1]} : vector<12x128xf32> to vector<4x128xf32>
    %cst_154 = arith.constant dense<0.000000e+00> : vector<128xf32>
    %248 = vector.multi_reduction <add>, %247, %cst_154 [0] : vector<4x128xf32> to vector<128xf32>
    %249 = vector.shape_cast %248 : vector<128xf32> to vector<1x128xf32>
    %250 = arith.addf %242, %249 : vector<1x128xf32>
    %251 = arith.mulf %247, %247 : vector<4x128xf32>
    %cst_155 = arith.constant dense<0.000000e+00> : vector<128xf32>
    %252 = vector.multi_reduction <add>, %251, %cst_155 [0] : vector<4x128xf32> to vector<128xf32>
    %253 = vector.shape_cast %252 : vector<128xf32> to vector<1x128xf32>
    %254 = arith.addf %246, %253 : vector<1x128xf32>
    %255 = vector.extract_strided_slice %228 {offsets = [7, 0], sizes = [4, 128], strides = [1, 1]} : vector<12x128xf32> to vector<4x128xf32>
    %cst_156 = arith.constant dense<0.000000e+00> : vector<128xf32>
    %256 = vector.multi_reduction <add>, %255, %cst_156 [0] : vector<4x128xf32> to vector<128xf32>
    %257 = vector.shape_cast %256 : vector<128xf32> to vector<1x128xf32>
    %258 = arith.addf %250, %257 : vector<1x128xf32>
    %259 = arith.mulf %255, %255 : vector<4x128xf32>
    %cst_157 = arith.constant dense<0.000000e+00> : vector<128xf32>
    %260 = vector.multi_reduction <add>, %259, %cst_157 [0] : vector<4x128xf32> to vector<128xf32>
    %261 = vector.shape_cast %260 : vector<128xf32> to vector<1x128xf32>
    %262 = arith.addf %254, %261 : vector<1x128xf32>
    %c2_158 = arith.constant 2 : index
    %c0_159 = arith.constant 0 : index
    %c0_160 = arith.constant 0 : index
    %263 = vector.load %arg2[%c2_158, %c0_159, %c0_160] : memref<4x128x128xf32, #tpu.memory_space<vmem>>, vector<1x128x128xf32>
    %264 = vector.shape_cast %263 : vector<1x128x128xf32> to vector<128x128xf32>
    %cst_161 = arith.constant dense<0.000000e+00> : vector<1x128xf32>
    %265 = tpu.matmul %258, %264, %cst_161 {dimension_numbers = #tpu.dot_dimension_numbers<[1], [0], [0], [1], [0, 0, 1, 1], [], []>} : vector<1x128xf32>, vector<128x128xf32>, vector<1x128xf32> -> vector<1x128xf32>
    %cst_162 = arith.constant 7.812500e-03 : f32
    %266 = vector.broadcast %cst_162 : f32 to vector<1x128xf32>
    %267 = arith.mulf %265, %266 : vector<1x128xf32>
    %cst_163 = arith.constant dense<0.000000e+00> : vector<1x128xf32>
    %268 = tpu.matmul %262, %264, %cst_163 {dimension_numbers = #tpu.dot_dimension_numbers<[1], [0], [0], [1], [0, 0, 1, 1], [], []>} : vector<1x128xf32>, vector<128x128xf32>, vector<1x128xf32> -> vector<1x128xf32>
    %cst_164 = arith.constant 7.812500e-03 : f32
    %269 = vector.broadcast %cst_164 : f32 to vector<1x128xf32>
    %270 = arith.mulf %268, %269 : vector<1x128xf32>
    %271 = arith.mulf %267, %267 : vector<1x128xf32>
    %272 = arith.subf %270, %271 : vector<1x128xf32>
    %c2_165 = arith.constant 2 : index
    %c0_166 = arith.constant 0 : index
    %273 = vector.load %arg3[%c2_165, %c0_166] : memref<4x128xf32, #tpu.memory_space<vmem>>, vector<1x128xf32>
    %cst_167 = arith.constant 9.99999974E-6 : f32
    %274 = vector.broadcast %cst_167 : f32 to vector<1x128xf32>
    %275 = arith.addf %272, %274 : vector<1x128xf32>
    %276 = math.rsqrt %275 : vector<1x128xf32>
    %277 = arith.mulf %273, %276 : vector<1x128xf32>
    %c2_168 = arith.constant 2 : index
    %c0_169 = arith.constant 0 : index
    %278 = vector.load %arg4[%c2_168, %c0_169] : memref<4x128xf32, #tpu.memory_space<vmem>>, vector<1x128xf32>
    %279 = arith.mulf %267, %277 : vector<1x128xf32>
    %280 = arith.subf %278, %279 : vector<1x128xf32>
    %281 = vector.extract_strided_slice %217 {offsets = [0, 0], sizes = [4, 128], strides = [1, 1]} : vector<12x128xf32> to vector<4x128xf32>
    %282 = vector.broadcast %277 : vector<1x128xf32> to vector<4x128xf32>
    %283 = arith.mulf %281, %282 : vector<4x128xf32>
    %284 = vector.broadcast %280 : vector<1x128xf32> to vector<4x128xf32>
    %285 = arith.addf %283, %284 : vector<4x128xf32>
    %cst_170 = arith.constant 0.000000e+00 : f32
    %286 = vector.broadcast %cst_170 : f32 to vector<4x128xf32>
    %287 = arith.maximumf %285, %286 : vector<4x128xf32>
    %288 = vector.extract_strided_slice %287 {offsets = [0, 0], sizes = [1, 128], strides = [1, 1]} : vector<4x128xf32> to vector<1x128xf32>
    %c0_171 = arith.constant 0 : index
    %c0_172 = arith.constant 0 : index
    %289 = vector.load %arg9[%c0_171, %c0_172] : memref<24x128xf32, #tpu.memory_space<vmem>>, vector<1x128xf32>
    tpu.vector_store %arg9[%c0_171, %c0_172], %288 {strides = array<i32>} : memref<24x128xf32, #tpu.memory_space<vmem>>, vector<1x128xf32>,
    %290 = vector.extract_strided_slice %287 {offsets = [1, 0], sizes = [1, 128], strides = [1, 1]} : vector<4x128xf32> to vector<1x128xf32>
    %c2_173 = arith.constant 2 : index
    %c0_174 = arith.constant 0 : index
    %291 = vector.load %arg9[%c2_173, %c0_174] : memref<24x128xf32, #tpu.memory_space<vmem>>, vector<1x128xf32>
    tpu.vector_store %arg9[%c2_173, %c0_174], %290 {strides = array<i32>} : memref<24x128xf32, #tpu.memory_space<vmem>>, vector<1x128xf32>,
    %292 = vector.extract_strided_slice %287 {offsets = [2, 0], sizes = [1, 128], strides = [1, 1]} : vector<4x128xf32> to vector<1x128xf32>
    %c4_175 = arith.constant 4 : index
    %c0_176 = arith.constant 0 : index
    %293 = vector.load %arg9[%c4_175, %c0_176] : memref<24x128xf32, #tpu.memory_space<vmem>>, vector<1x128xf32>
    tpu.vector_store %arg9[%c4_175, %c0_176], %292 {strides = array<i32>} : memref<24x128xf32, #tpu.memory_space<vmem>>, vector<1x128xf32>,
    %294 = vector.extract_strided_slice %287 {offsets = [3, 0], sizes = [1, 128], strides = [1, 1]} : vector<4x128xf32> to vector<1x128xf32>
    %c6_177 = arith.constant 6 : index
    %c0_178 = arith.constant 0 : index
    %295 = vector.load %arg9[%c6_177, %c0_178] : memref<24x128xf32, #tpu.memory_space<vmem>>, vector<1x128xf32>
    tpu.vector_store %arg9[%c6_177, %c0_178], %294 {strides = array<i32>} : memref<24x128xf32, #tpu.memory_space<vmem>>, vector<1x128xf32>,
    %296 = vector.extract_strided_slice %217 {offsets = [6, 0], sizes = [4, 128], strides = [1, 1]} : vector<12x128xf32> to vector<4x128xf32>
    %297 = vector.broadcast %277 : vector<1x128xf32> to vector<4x128xf32>
    %298 = arith.mulf %296, %297 : vector<4x128xf32>
    %299 = vector.broadcast %280 : vector<1x128xf32> to vector<4x128xf32>
    %300 = arith.addf %298, %299 : vector<4x128xf32>
    %cst_179 = arith.constant 0.000000e+00 : f32
    %301 = vector.broadcast %cst_179 : f32 to vector<4x128xf32>
    %302 = arith.maximumf %300, %301 : vector<4x128xf32>
    %303 = vector.extract_strided_slice %302 {offsets = [0, 0], sizes = [1, 128], strides = [1, 1]} : vector<4x128xf32> to vector<1x128xf32>
    %c8_180 = arith.constant 8 : index
    %c0_181 = arith.constant 0 : index
    %304 = vector.load %arg9[%c8_180, %c0_181] : memref<24x128xf32, #tpu.memory_space<vmem>>, vector<1x128xf32>
    tpu.vector_store %arg9[%c8_180, %c0_181], %303 {strides = array<i32>} : memref<24x128xf32, #tpu.memory_space<vmem>>, vector<1x128xf32>,
    %305 = vector.extract_strided_slice %302 {offsets = [1, 0], sizes = [1, 128], strides = [1, 1]} : vector<4x128xf32> to vector<1x128xf32>
    %c10_182 = arith.constant 10 : index
    %c0_183 = arith.constant 0 : index
    %306 = vector.load %arg9[%c10_182, %c0_183] : memref<24x128xf32, #tpu.memory_space<vmem>>, vector<1x128xf32>
    tpu.vector_store %arg9[%c10_182, %c0_183], %305 {strides = array<i32>} : memref<24x128xf32, #tpu.memory_space<vmem>>, vector<1x128xf32>,
    %307 = vector.extract_strided_slice %302 {offsets = [2, 0], sizes = [1, 128], strides = [1, 1]} : vector<4x128xf32> to vector<1x128xf32>
    %c12 = arith.constant 12 : index
    %c0_184 = arith.constant 0 : index
    %308 = vector.load %arg9[%c12, %c0_184] : memref<24x128xf32, #tpu.memory_space<vmem>>, vector<1x128xf32>
    tpu.vector_store %arg9[%c12, %c0_184], %307 {strides = array<i32>} : memref<24x128xf32, #tpu.memory_space<vmem>>, vector<1x128xf32>,
    %309 = vector.extract_strided_slice %302 {offsets = [3, 0], sizes = [1, 128], strides = [1, 1]} : vector<4x128xf32> to vector<1x128xf32>
    %c14 = arith.constant 14 : index
    %c0_185 = arith.constant 0 : index
    %310 = vector.load %arg9[%c14, %c0_185] : memref<24x128xf32, #tpu.memory_space<vmem>>, vector<1x128xf32>
    tpu.vector_store %arg9[%c14, %c0_185], %309 {strides = array<i32>} : memref<24x128xf32, #tpu.memory_space<vmem>>, vector<1x128xf32>,
    %311 = vector.extract_strided_slice %228 {offsets = [1, 0], sizes = [4, 128], strides = [1, 1]} : vector<12x128xf32> to vector<4x128xf32>
    %312 = vector.broadcast %277 : vector<1x128xf32> to vector<4x128xf32>
    %313 = arith.mulf %311, %312 : vector<4x128xf32>
    %314 = vector.broadcast %280 : vector<1x128xf32> to vector<4x128xf32>
    %315 = arith.addf %313, %314 : vector<4x128xf32>
    %cst_186 = arith.constant 0.000000e+00 : f32
    %316 = vector.broadcast %cst_186 : f32 to vector<4x128xf32>
    %317 = arith.maximumf %315, %316 : vector<4x128xf32>
    %318 = vector.extract_strided_slice %317 {offsets = [0, 0], sizes = [1, 128], strides = [1, 1]} : vector<4x128xf32> to vector<1x128xf32>
    %c1_187 = arith.constant 1 : index
    %c0_188 = arith.constant 0 : index
    %319 = vector.load %arg9[%c1_187, %c0_188] : memref<24x128xf32, #tpu.memory_space<vmem>>, vector<1x128xf32>
    tpu.vector_store %arg9[%c1_187, %c0_188], %318 {strides = array<i32>} : memref<24x128xf32, #tpu.memory_space<vmem>>, vector<1x128xf32>,
    %320 = vector.extract_strided_slice %317 {offsets = [1, 0], sizes = [1, 128], strides = [1, 1]} : vector<4x128xf32> to vector<1x128xf32>
    %c3_189 = arith.constant 3 : index
    %c0_190 = arith.constant 0 : index
    %321 = vector.load %arg9[%c3_189, %c0_190] : memref<24x128xf32, #tpu.memory_space<vmem>>, vector<1x128xf32>
    tpu.vector_store %arg9[%c3_189, %c0_190], %320 {strides = array<i32>} : memref<24x128xf32, #tpu.memory_space<vmem>>, vector<1x128xf32>,
    %322 = vector.extract_strided_slice %317 {offsets = [2, 0], sizes = [1, 128], strides = [1, 1]} : vector<4x128xf32> to vector<1x128xf32>
    %c5_191 = arith.constant 5 : index
    %c0_192 = arith.constant 0 : index
    %323 = vector.load %arg9[%c5_191, %c0_192] : memref<24x128xf32, #tpu.memory_space<vmem>>, vector<1x128xf32>
    tpu.vector_store %arg9[%c5_191, %c0_192], %322 {strides = array<i32>} : memref<24x128xf32, #tpu.memory_space<vmem>>, vector<1x128xf32>,
    %324 = vector.extract_strided_slice %317 {offsets = [3, 0], sizes = [1, 128], strides = [1, 1]} : vector<4x128xf32> to vector<1x128xf32>
    %c7_193 = arith.constant 7 : index
    %c0_194 = arith.constant 0 : index
    %325 = vector.load %arg9[%c7_193, %c0_194] : memref<24x128xf32, #tpu.memory_space<vmem>>, vector<1x128xf32>
    tpu.vector_store %arg9[%c7_193, %c0_194], %324 {strides = array<i32>} : memref<24x128xf32, #tpu.memory_space<vmem>>, vector<1x128xf32>,
    %326 = vector.extract_strided_slice %228 {offsets = [7, 0], sizes = [4, 128], strides = [1, 1]} : vector<12x128xf32> to vector<4x128xf32>
    %327 = vector.broadcast %277 : vector<1x128xf32> to vector<4x128xf32>
    %328 = arith.mulf %326, %327 : vector<4x128xf32>
    %329 = vector.broadcast %280 : vector<1x128xf32> to vector<4x128xf32>
    %330 = arith.addf %328, %329 : vector<4x128xf32>
    %cst_195 = arith.constant 0.000000e+00 : f32
    %331 = vector.broadcast %cst_195 : f32 to vector<4x128xf32>
    %332 = arith.maximumf %330, %331 : vector<4x128xf32>
    %333 = vector.extract_strided_slice %332 {offsets = [0, 0], sizes = [1, 128], strides = [1, 1]} : vector<4x128xf32> to vector<1x128xf32>
    %c9_196 = arith.constant 9 : index
    %c0_197 = arith.constant 0 : index
    %334 = vector.load %arg9[%c9_196, %c0_197] : memref<24x128xf32, #tpu.memory_space<vmem>>, vector<1x128xf32>
    tpu.vector_store %arg9[%c9_196, %c0_197], %333 {strides = array<i32>} : memref<24x128xf32, #tpu.memory_space<vmem>>, vector<1x128xf32>,
    %335 = vector.extract_strided_slice %332 {offsets = [1, 0], sizes = [1, 128], strides = [1, 1]} : vector<4x128xf32> to vector<1x128xf32>
    %c11_198 = arith.constant 11 : index
    %c0_199 = arith.constant 0 : index
    %336 = vector.load %arg9[%c11_198, %c0_199] : memref<24x128xf32, #tpu.memory_space<vmem>>, vector<1x128xf32>
    tpu.vector_store %arg9[%c11_198, %c0_199], %335 {strides = array<i32>} : memref<24x128xf32, #tpu.memory_space<vmem>>, vector<1x128xf32>,
    %337 = vector.extract_strided_slice %332 {offsets = [2, 0], sizes = [1, 128], strides = [1, 1]} : vector<4x128xf32> to vector<1x128xf32>
    %c13 = arith.constant 13 : index
    %c0_200 = arith.constant 0 : index
    %338 = vector.load %arg9[%c13, %c0_200] : memref<24x128xf32, #tpu.memory_space<vmem>>, vector<1x128xf32>
    tpu.vector_store %arg9[%c13, %c0_200], %337 {strides = array<i32>} : memref<24x128xf32, #tpu.memory_space<vmem>>, vector<1x128xf32>,
    %339 = vector.extract_strided_slice %332 {offsets = [3, 0], sizes = [1, 128], strides = [1, 1]} : vector<4x128xf32> to vector<1x128xf32>
    %c15 = arith.constant 15 : index
    %c0_201 = arith.constant 0 : index
    %340 = vector.load %arg9[%c15, %c0_201] : memref<24x128xf32, #tpu.memory_space<vmem>>, vector<1x128xf32>
    tpu.vector_store %arg9[%c15, %c0_201], %339 {strides = array<i32>} : memref<24x128xf32, #tpu.memory_space<vmem>>, vector<1x128xf32>,
    %c1_202 = arith.constant 1 : index
    %c0_203 = arith.constant 0 : index
    %341 = vector.load %arg9[%c1_202, %c0_203] : memref<24x128xf32, #tpu.memory_space<vmem>>, vector<16x128xf32>
    %342 = arith.truncf %341 : vector<16x128xf32> to vector<16x128xbf16>
    %c12_204 = arith.constant 12 : index
    %c0_205 = arith.constant 0 : index
    %c0_206 = arith.constant 0 : index
    %343 = vector.load %arg1[%c12_204, %c0_205, %c0_206] : memref<20x128x128xbf16, #tpu.memory_space<vmem>>, vector<1x128x128xbf16>
    %344 = vector.shape_cast %343 : vector<1x128x128xbf16> to vector<128x128xbf16>
    %cst_207 = arith.constant dense<0.000000e+00> : vector<16x128xf32>
    %345 = tpu.matmul %342, %344, %cst_207 {dimension_numbers = #tpu.dot_dimension_numbers<[1], [0], [0], [1], [0, 0, 1, 1], [], []>} : vector<16x128xbf16>, vector<128x128xbf16>, vector<16x128xf32> -> vector<16x128xf32>
    %c0_208 = arith.constant 0 : index
    %c0_209 = arith.constant 0 : index
    %346 = vector.load %arg9[%c0_208, %c0_209] : memref<24x128xf32, #tpu.memory_space<vmem>>, vector<16x128xf32>
    %347 = arith.truncf %346 : vector<16x128xf32> to vector<16x128xbf16>
    %c13_210 = arith.constant 13 : index
    %c0_211 = arith.constant 0 : index
    %c0_212 = arith.constant 0 : index
    %348 = vector.load %arg1[%c13_210, %c0_211, %c0_212] : memref<20x128x128xbf16, #tpu.memory_space<vmem>>, vector<1x128x128xbf16>
    %349 = vector.shape_cast %348 : vector<1x128x128xbf16> to vector<128x128xbf16>
    %cst_213 = arith.constant dense<0.000000e+00> : vector<16x128xf32>
    %350 = tpu.matmul %347, %349, %cst_213 {dimension_numbers = #tpu.dot_dimension_numbers<[1], [0], [0], [1], [0, 0, 1, 1], [], []>} : vector<16x128xbf16>, vector<128x128xbf16>, vector<16x128xf32> -> vector<16x128xf32>
    %351 = arith.addf %345, %350 : vector<16x128xf32>
    %c1_214 = arith.constant 1 : index
    %c0_215 = arith.constant 0 : index
    %352 = vector.load %arg9[%c1_214, %c0_215] : memref<24x128xf32, #tpu.memory_space<vmem>>, vector<16x128xf32>
    %353 = arith.truncf %352 : vector<16x128xf32> to vector<16x128xbf16>
    %c14_216 = arith.constant 14 : index
    %c0_217 = arith.constant 0 : index
    %c0_218 = arith.constant 0 : index
    %354 = vector.load %arg1[%c14_216, %c0_217, %c0_218] : memref<20x128x128xbf16, #tpu.memory_space<vmem>>, vector<1x128x128xbf16>
    %355 = vector.shape_cast %354 : vector<1x128x128xbf16> to vector<128x128xbf16>
    %cst_219 = arith.constant dense<0.000000e+00> : vector<16x128xf32>
    %356 = tpu.matmul %353, %355, %cst_219 {dimension_numbers = #tpu.dot_dimension_numbers<[1], [0], [0], [1], [0, 0, 1, 1], [], []>} : vector<16x128xbf16>, vector<128x128xbf16>, vector<16x128xf32> -> vector<16x128xf32>
    %c0_220 = arith.constant 0 : index
    %c0_221 = arith.constant 0 : index
    %357 = vector.load %arg9[%c0_220, %c0_221] : memref<24x128xf32, #tpu.memory_space<vmem>>, vector<16x128xf32>
    %358 = arith.truncf %357 : vector<16x128xf32> to vector<16x128xbf16>
    %c15_222 = arith.constant 15 : index
    %c0_223 = arith.constant 0 : index
    %c0_224 = arith.constant 0 : index
    %359 = vector.load %arg1[%c15_222, %c0_223, %c0_224] : memref<20x128x128xbf16, #tpu.memory_space<vmem>>, vector<1x128x128xbf16>
    %360 = vector.shape_cast %359 : vector<1x128x128xbf16> to vector<128x128xbf16>
    %cst_225 = arith.constant dense<0.000000e+00> : vector<16x128xf32>
    %361 = tpu.matmul %358, %360, %cst_225 {dimension_numbers = #tpu.dot_dimension_numbers<[1], [0], [0], [1], [0, 0, 1, 1], [], []>} : vector<16x128xbf16>, vector<128x128xbf16>, vector<16x128xf32> -> vector<16x128xf32>
    %362 = arith.addf %356, %361 : vector<16x128xf32>
    %cst_226 = arith.constant 0.000000e+00 : f32
    %363 = vector.broadcast %cst_226 : f32 to vector<1x128xf32>
    %cst_227 = arith.constant 0.000000e+00 : f32
    %364 = vector.broadcast %cst_227 : f32 to vector<1x128xf32>
    %365 = vector.extract_strided_slice %351 {offsets = [0, 0], sizes = [7, 128], strides = [1, 1]} : vector<16x128xf32> to vector<7x128xf32>
    %cst_228 = arith.constant dense<0.000000e+00> : vector<128xf32>
    %366 = vector.multi_reduction <add>, %365, %cst_228 [0] : vector<7x128xf32> to vector<128xf32>
    %367 = vector.shape_cast %366 : vector<128xf32> to vector<1x128xf32>
    %368 = arith.addf %363, %367 : vector<1x128xf32>
    %369 = arith.mulf %365, %365 : vector<7x128xf32>
    %cst_229 = arith.constant dense<0.000000e+00> : vector<128xf32>
    %370 = vector.multi_reduction <add>, %369, %cst_229 [0] : vector<7x128xf32> to vector<128xf32>
    %371 = vector.shape_cast %370 : vector<128xf32> to vector<1x128xf32>
    %372 = arith.addf %364, %371 : vector<1x128xf32>
    %373 = vector.extract_strided_slice %351 {offsets = [8, 0], sizes = [7, 128], strides = [1, 1]} : vector<16x128xf32> to vector<7x128xf32>
    %cst_230 = arith.constant dense<0.000000e+00> : vector<128xf32>
    %374 = vector.multi_reduction <add>, %373, %cst_230 [0] : vector<7x128xf32> to vector<128xf32>
    %375 = vector.shape_cast %374 : vector<128xf32> to vector<1x128xf32>
    %376 = arith.addf %368, %375 : vector<1x128xf32>
    %377 = arith.mulf %373, %373 : vector<7x128xf32>
    %cst_231 = arith.constant dense<0.000000e+00> : vector<128xf32>
    %378 = vector.multi_reduction <add>, %377, %cst_231 [0] : vector<7x128xf32> to vector<128xf32>
    %379 = vector.shape_cast %378 : vector<128xf32> to vector<1x128xf32>
    %380 = arith.addf %372, %379 : vector<1x128xf32>
    %381 = vector.extract_strided_slice %362 {offsets = [0, 0], sizes = [7, 128], strides = [1, 1]} : vector<16x128xf32> to vector<7x128xf32>
    %cst_232 = arith.constant dense<0.000000e+00> : vector<128xf32>
    %382 = vector.multi_reduction <add>, %381, %cst_232 [0] : vector<7x128xf32> to vector<128xf32>
    %383 = vector.shape_cast %382 : vector<128xf32> to vector<1x128xf32>
    %384 = arith.addf %376, %383 : vector<1x128xf32>
    %385 = arith.mulf %381, %381 : vector<7x128xf32>
    %cst_233 = arith.constant dense<0.000000e+00> : vector<128xf32>
    %386 = vector.multi_reduction <add>, %385, %cst_233 [0] : vector<7x128xf32> to vector<128xf32>
    %387 = vector.shape_cast %386 : vector<128xf32> to vector<1x128xf32>
    %388 = arith.addf %380, %387 : vector<1x128xf32>
    %389 = vector.extract_strided_slice %362 {offsets = [8, 0], sizes = [7, 128], strides = [1, 1]} : vector<16x128xf32> to vector<7x128xf32>
    %cst_234 = arith.constant dense<0.000000e+00> : vector<128xf32>
    %390 = vector.multi_reduction <add>, %389, %cst_234 [0] : vector<7x128xf32> to vector<128xf32>
    %391 = vector.shape_cast %390 : vector<128xf32> to vector<1x128xf32>
    %392 = arith.addf %384, %391 : vector<1x128xf32>
    %393 = arith.mulf %389, %389 : vector<7x128xf32>
    %cst_235 = arith.constant dense<0.000000e+00> : vector<128xf32>
    %394 = vector.multi_reduction <add>, %393, %cst_235 [0] : vector<7x128xf32> to vector<128xf32>
    %395 = vector.shape_cast %394 : vector<128xf32> to vector<1x128xf32>
    %396 = arith.addf %388, %395 : vector<1x128xf32>
    %c3_236 = arith.constant 3 : index
    %c0_237 = arith.constant 0 : index
    %c0_238 = arith.constant 0 : index
    %397 = vector.load %arg2[%c3_236, %c0_237, %c0_238] : memref<4x128x128xf32, #tpu.memory_space<vmem>>, vector<1x128x128xf32>
    %398 = vector.shape_cast %397 : vector<1x128x128xf32> to vector<128x128xf32>
    %cst_239 = arith.constant dense<0.000000e+00> : vector<1x128xf32>
    %399 = tpu.matmul %392, %398, %cst_239 {dimension_numbers = #tpu.dot_dimension_numbers<[1], [0], [0], [1], [0, 0, 1, 1], [], []>} : vector<1x128xf32>, vector<128x128xf32>, vector<1x128xf32> -> vector<1x128xf32>
    %cst_240 = arith.constant 0.00255102036 : f32
    %400 = vector.broadcast %cst_240 : f32 to vector<1x128xf32>
    %401 = arith.mulf %399, %400 : vector<1x128xf32>
    %cst_241 = arith.constant dense<0.000000e+00> : vector<1x128xf32>
    %402 = tpu.matmul %396, %398, %cst_241 {dimension_numbers = #tpu.dot_dimension_numbers<[1], [0], [0], [1], [0, 0, 1, 1], [], []>} : vector<1x128xf32>, vector<128x128xf32>, vector<1x128xf32> -> vector<1x128xf32>
    %cst_242 = arith.constant 0.00255102036 : f32
    %403 = vector.broadcast %cst_242 : f32 to vector<1x128xf32>
    %404 = arith.mulf %402, %403 : vector<1x128xf32>
    %405 = arith.mulf %401, %401 : vector<1x128xf32>
    %406 = arith.subf %404, %405 : vector<1x128xf32>
    %c3_243 = arith.constant 3 : index
    %c0_244 = arith.constant 0 : index
    %407 = vector.load %arg3[%c3_243, %c0_244] : memref<4x128xf32, #tpu.memory_space<vmem>>, vector<1x128xf32>
    %cst_245 = arith.constant 9.99999974E-6 : f32
    %408 = vector.broadcast %cst_245 : f32 to vector<1x128xf32>
    %409 = arith.addf %406, %408 : vector<1x128xf32>
    %410 = math.rsqrt %409 : vector<1x128xf32>
    %411 = arith.mulf %407, %410 : vector<1x128xf32>
    %c3_246 = arith.constant 3 : index
    %c0_247 = arith.constant 0 : index
    %412 = vector.load %arg4[%c3_246, %c0_247] : memref<4x128xf32, #tpu.memory_space<vmem>>, vector<1x128xf32>
    %413 = arith.mulf %401, %411 : vector<1x128xf32>
    %414 = arith.subf %412, %413 : vector<1x128xf32>
    %415 = vector.extract_strided_slice %351 {offsets = [0, 0], sizes = [7, 128], strides = [1, 1]} : vector<16x128xf32> to vector<7x128xf32>
    %416 = vector.broadcast %411 : vector<1x128xf32> to vector<7x128xf32>
    %417 = arith.mulf %415, %416 : vector<7x128xf32>
    %418 = vector.broadcast %414 : vector<1x128xf32> to vector<7x128xf32>
    %419 = arith.addf %417, %418 : vector<7x128xf32>
    %cst_248 = arith.constant 0.000000e+00 : f32
    %420 = vector.broadcast %cst_248 : f32 to vector<7x128xf32>
    %421 = arith.maximumf %419, %420 : vector<7x128xf32>
    %422 = vector.extract_strided_slice %421 {offsets = [0, 0], sizes = [1, 128], strides = [1, 1]} : vector<7x128xf32> to vector<1x128xf32>
    %c1_249 = arith.constant 1 : index
    %c0_250 = arith.constant 0 : index
    %423 = vector.load %arg10[%c1_249, %c0_250] : memref<40x128xf32, #tpu.memory_space<vmem>>, vector<1x128xf32>
    tpu.vector_store %arg10[%c1_249, %c0_250], %422 {strides = array<i32>} : memref<40x128xf32, #tpu.memory_space<vmem>>, vector<1x128xf32>,
    %424 = vector.extract_strided_slice %421 {offsets = [1, 0], sizes = [1, 128], strides = [1, 1]} : vector<7x128xf32> to vector<1x128xf32>
    %c3_251 = arith.constant 3 : index
    %c0_252 = arith.constant 0 : index
    %425 = vector.load %arg10[%c3_251, %c0_252] : memref<40x128xf32, #tpu.memory_space<vmem>>, vector<1x128xf32>
    tpu.vector_store %arg10[%c3_251, %c0_252], %424 {strides = array<i32>} : memref<40x128xf32, #tpu.memory_space<vmem>>, vector<1x128xf32>,
    %426 = vector.extract_strided_slice %421 {offsets = [2, 0], sizes = [1, 128], strides = [1, 1]} : vector<7x128xf32> to vector<1x128xf32>
    %c5_253 = arith.constant 5 : index
    %c0_254 = arith.constant 0 : index
    %427 = vector.load %arg10[%c5_253, %c0_254] : memref<40x128xf32, #tpu.memory_space<vmem>>, vector<1x128xf32>
    tpu.vector_store %arg10[%c5_253, %c0_254], %426 {strides = array<i32>} : memref<40x128xf32, #tpu.memory_space<vmem>>, vector<1x128xf32>,
    %428 = vector.extract_strided_slice %421 {offsets = [3, 0], sizes = [1, 128], strides = [1, 1]} : vector<7x128xf32> to vector<1x128xf32>
    %c7_255 = arith.constant 7 : index
    %c0_256 = arith.constant 0 : index
    %429 = vector.load %arg10[%c7_255, %c0_256] : memref<40x128xf32, #tpu.memory_space<vmem>>, vector<1x128xf32>
    tpu.vector_store %arg10[%c7_255, %c0_256], %428 {strides = array<i32>} : memref<40x128xf32, #tpu.memory_space<vmem>>, vector<1x128xf32>,
    %430 = vector.extract_strided_slice %421 {offsets = [4, 0], sizes = [1, 128], strides = [1, 1]} : vector<7x128xf32> to vector<1x128xf32>
    %c9_257 = arith.constant 9 : index
    %c0_258 = arith.constant 0 : index
    %431 = vector.load %arg10[%c9_257, %c0_258] : memref<40x128xf32, #tpu.memory_space<vmem>>, vector<1x128xf32>
    tpu.vector_store %arg10[%c9_257, %c0_258], %430 {strides = array<i32>} : memref<40x128xf32, #tpu.memory_space<vmem>>, vector<1x128xf32>,
    %432 = vector.extract_strided_slice %421 {offsets = [5, 0], sizes = [1, 128], strides = [1, 1]} : vector<7x128xf32> to vector<1x128xf32>
    %c11_259 = arith.constant 11 : index
    %c0_260 = arith.constant 0 : index
    %433 = vector.load %arg10[%c11_259, %c0_260] : memref<40x128xf32, #tpu.memory_space<vmem>>, vector<1x128xf32>
    tpu.vector_store %arg10[%c11_259, %c0_260], %432 {strides = array<i32>} : memref<40x128xf32, #tpu.memory_space<vmem>>, vector<1x128xf32>,
    %434 = vector.extract_strided_slice %421 {offsets = [6, 0], sizes = [1, 128], strides = [1, 1]} : vector<7x128xf32> to vector<1x128xf32>
    %c13_261 = arith.constant 13 : index
    %c0_262 = arith.constant 0 : index
    %435 = vector.load %arg10[%c13_261, %c0_262] : memref<40x128xf32, #tpu.memory_space<vmem>>, vector<1x128xf32>
    tpu.vector_store %arg10[%c13_261, %c0_262], %434 {strides = array<i32>} : memref<40x128xf32, #tpu.memory_space<vmem>>, vector<1x128xf32>,
    %436 = vector.extract_strided_slice %351 {offsets = [8, 0], sizes = [7, 128], strides = [1, 1]} : vector<16x128xf32> to vector<7x128xf32>
    %437 = vector.broadcast %411 : vector<1x128xf32> to vector<7x128xf32>
    %438 = arith.mulf %436, %437 : vector<7x128xf32>
    %439 = vector.broadcast %414 : vector<1x128xf32> to vector<7x128xf32>
    %440 = arith.addf %438, %439 : vector<7x128xf32>
    %cst_263 = arith.constant 0.000000e+00 : f32
    %441 = vector.broadcast %cst_263 : f32 to vector<7x128xf32>
    %442 = arith.maximumf %440, %441 : vector<7x128xf32>
    %443 = vector.extract_strided_slice %442 {offsets = [0, 0], sizes = [1, 128], strides = [1, 1]} : vector<7x128xf32> to vector<1x128xf32>
    %c17 = arith.constant 17 : index
    %c0_264 = arith.constant 0 : index
    %444 = vector.load %arg10[%c17, %c0_264] : memref<40x128xf32, #tpu.memory_space<vmem>>, vector<1x128xf32>
    tpu.vector_store %arg10[%c17, %c0_264], %443 {strides = array<i32>} : memref<40x128xf32, #tpu.memory_space<vmem>>, vector<1x128xf32>,
    %445 = vector.extract_strided_slice %442 {offsets = [1, 0], sizes = [1, 128], strides = [1, 1]} : vector<7x128xf32> to vector<1x128xf32>
    %c19 = arith.constant 19 : index
    %c0_265 = arith.constant 0 : index
    %446 = vector.load %arg10[%c19, %c0_265] : memref<40x128xf32, #tpu.memory_space<vmem>>, vector<1x128xf32>
    tpu.vector_store %arg10[%c19, %c0_265], %445 {strides = array<i32>} : memref<40x128xf32, #tpu.memory_space<vmem>>, vector<1x128xf32>,
    %447 = vector.extract_strided_slice %442 {offsets = [2, 0], sizes = [1, 128], strides = [1, 1]} : vector<7x128xf32> to vector<1x128xf32>
    %c21 = arith.constant 21 : index
    %c0_266 = arith.constant 0 : index
    %448 = vector.load %arg10[%c21, %c0_266] : memref<40x128xf32, #tpu.memory_space<vmem>>, vector<1x128xf32>
    tpu.vector_store %arg10[%c21, %c0_266], %447 {strides = array<i32>} : memref<40x128xf32, #tpu.memory_space<vmem>>, vector<1x128xf32>,
    %449 = vector.extract_strided_slice %442 {offsets = [3, 0], sizes = [1, 128], strides = [1, 1]} : vector<7x128xf32> to vector<1x128xf32>
    %c23 = arith.constant 23 : index
    %c0_267 = arith.constant 0 : index
    %450 = vector.load %arg10[%c23, %c0_267] : memref<40x128xf32, #tpu.memory_space<vmem>>, vector<1x128xf32>
    tpu.vector_store %arg10[%c23, %c0_267], %449 {strides = array<i32>} : memref<40x128xf32, #tpu.memory_space<vmem>>, vector<1x128xf32>,
    %451 = vector.extract_strided_slice %442 {offsets = [4, 0], sizes = [1, 128], strides = [1, 1]} : vector<7x128xf32> to vector<1x128xf32>
    %c25 = arith.constant 25 : index
    %c0_268 = arith.constant 0 : index
    %452 = vector.load %arg10[%c25, %c0_268] : memref<40x128xf32, #tpu.memory_space<vmem>>, vector<1x128xf32>
    tpu.vector_store %arg10[%c25, %c0_268], %451 {strides = array<i32>} : memref<40x128xf32, #tpu.memory_space<vmem>>, vector<1x128xf32>,
    %453 = vector.extract_strided_slice %442 {offsets = [5, 0], sizes = [1, 128], strides = [1, 1]} : vector<7x128xf32> to vector<1x128xf32>
    %c27 = arith.constant 27 : index
    %c0_269 = arith.constant 0 : index
    %454 = vector.load %arg10[%c27, %c0_269] : memref<40x128xf32, #tpu.memory_space<vmem>>, vector<1x128xf32>
    tpu.vector_store %arg10[%c27, %c0_269], %453 {strides = array<i32>} : memref<40x128xf32, #tpu.memory_space<vmem>>, vector<1x128xf32>,
    %455 = vector.extract_strided_slice %442 {offsets = [6, 0], sizes = [1, 128], strides = [1, 1]} : vector<7x128xf32> to vector<1x128xf32>
    %c29 = arith.constant 29 : index
    %c0_270 = arith.constant 0 : index
    %456 = vector.load %arg10[%c29, %c0_270] : memref<40x128xf32, #tpu.memory_space<vmem>>, vector<1x128xf32>
    tpu.vector_store %arg10[%c29, %c0_270], %455 {strides = array<i32>} : memref<40x128xf32, #tpu.memory_space<vmem>>, vector<1x128xf32>,
    %457 = vector.extract_strided_slice %362 {offsets = [0, 0], sizes = [7, 128], strides = [1, 1]} : vector<16x128xf32> to vector<7x128xf32>
    %458 = vector.broadcast %411 : vector<1x128xf32> to vector<7x128xf32>
    %459 = arith.mulf %457, %458 : vector<7x128xf32>
    %460 = vector.broadcast %414 : vector<1x128xf32> to vector<7x128xf32>
    %461 = arith.addf %459, %460 : vector<7x128xf32>
    %cst_271 = arith.constant 0.000000e+00 : f32
    %462 = vector.broadcast %cst_271 : f32 to vector<7x128xf32>
    %463 = arith.maximumf %461, %462 : vector<7x128xf32>
    %464 = vector.extract_strided_slice %463 {offsets = [0, 0], sizes = [1, 128], strides = [1, 1]} : vector<7x128xf32> to vector<1x128xf32>
    %c2_272 = arith.constant 2 : index
    %c0_273 = arith.constant 0 : index
    %465 = vector.load %arg10[%c2_272, %c0_273] : memref<40x128xf32, #tpu.memory_space<vmem>>, vector<1x128xf32>
    tpu.vector_store %arg10[%c2_272, %c0_273], %464 {strides = array<i32>} : memref<40x128xf32, #tpu.memory_space<vmem>>, vector<1x128xf32>,
    %466 = vector.extract_strided_slice %463 {offsets = [1, 0], sizes = [1, 128], strides = [1, 1]} : vector<7x128xf32> to vector<1x128xf32>
    %c4_274 = arith.constant 4 : index
    %c0_275 = arith.constant 0 : index
    %467 = vector.load %arg10[%c4_274, %c0_275] : memref<40x128xf32, #tpu.memory_space<vmem>>, vector<1x128xf32>
    tpu.vector_store %arg10[%c4_274, %c0_275], %466 {strides = array<i32>} : memref<40x128xf32, #tpu.memory_space<vmem>>, vector<1x128xf32>,
    %468 = vector.extract_strided_slice %463 {offsets = [2, 0], sizes = [1, 128], strides = [1, 1]} : vector<7x128xf32> to vector<1x128xf32>
    %c6_276 = arith.constant 6 : index
    %c0_277 = arith.constant 0 : index
    %469 = vector.load %arg10[%c6_276, %c0_277] : memref<40x128xf32, #tpu.memory_space<vmem>>, vector<1x128xf32>
    tpu.vector_store %arg10[%c6_276, %c0_277], %468 {strides = array<i32>} : memref<40x128xf32, #tpu.memory_space<vmem>>, vector<1x128xf32>,
    %470 = vector.extract_strided_slice %463 {offsets = [3, 0], sizes = [1, 128], strides = [1, 1]} : vector<7x128xf32> to vector<1x128xf32>
    %c8_278 = arith.constant 8 : index
    %c0_279 = arith.constant 0 : index
    %471 = vector.load %arg10[%c8_278, %c0_279] : memref<40x128xf32, #tpu.memory_space<vmem>>, vector<1x128xf32>
    tpu.vector_store %arg10[%c8_278, %c0_279], %470 {strides = array<i32>} : memref<40x128xf32, #tpu.memory_space<vmem>>, vector<1x128xf32>,
    %472 = vector.extract_strided_slice %463 {offsets = [4, 0], sizes = [1, 128], strides = [1, 1]} : vector<7x128xf32> to vector<1x128xf32>
    %c10_280 = arith.constant 10 : index
    %c0_281 = arith.constant 0 : index
    %473 = vector.load %arg10[%c10_280, %c0_281] : memref<40x128xf32, #tpu.memory_space<vmem>>, vector<1x128xf32>
    tpu.vector_store %arg10[%c10_280, %c0_281], %472 {strides = array<i32>} : memref<40x128xf32, #tpu.memory_space<vmem>>, vector<1x128xf32>,
    %474 = vector.extract_strided_slice %463 {offsets = [5, 0], sizes = [1, 128], strides = [1, 1]} : vector<7x128xf32> to vector<1x128xf32>
    %c12_282 = arith.constant 12 : index
    %c0_283 = arith.constant 0 : index
    %475 = vector.load %arg10[%c12_282, %c0_283] : memref<40x128xf32, #tpu.memory_space<vmem>>, vector<1x128xf32>
    tpu.vector_store %arg10[%c12_282, %c0_283], %474 {strides = array<i32>} : memref<40x128xf32, #tpu.memory_space<vmem>>, vector<1x128xf32>,
    %476 = vector.extract_strided_slice %463 {offsets = [6, 0], sizes = [1, 128], strides = [1, 1]} : vector<7x128xf32> to vector<1x128xf32>
    %c14_284 = arith.constant 14 : index
    %c0_285 = arith.constant 0 : index
    %477 = vector.load %arg10[%c14_284, %c0_285] : memref<40x128xf32, #tpu.memory_space<vmem>>, vector<1x128xf32>
    tpu.vector_store %arg10[%c14_284, %c0_285], %476 {strides = array<i32>} : memref<40x128xf32, #tpu.memory_space<vmem>>, vector<1x128xf32>,
    %478 = vector.extract_strided_slice %362 {offsets = [8, 0], sizes = [7, 128], strides = [1, 1]} : vector<16x128xf32> to vector<7x128xf32>
    %479 = vector.broadcast %411 : vector<1x128xf32> to vector<7x128xf32>
    %480 = arith.mulf %478, %479 : vector<7x128xf32>
    %481 = vector.broadcast %414 : vector<1x128xf32> to vector<7x128xf32>
    %482 = arith.addf %480, %481 : vector<7x128xf32>
    %cst_286 = arith.constant 0.000000e+00 : f32
    %483 = vector.broadcast %cst_286 : f32 to vector<7x128xf32>
    %484 = arith.maximumf %482, %483 : vector<7x128xf32>
    %485 = vector.extract_strided_slice %484 {offsets = [0, 0], sizes = [1, 128], strides = [1, 1]} : vector<7x128xf32> to vector<1x128xf32>
    %c18 = arith.constant 18 : index
    %c0_287 = arith.constant 0 : index
    %486 = vector.load %arg10[%c18, %c0_287] : memref<40x128xf32, #tpu.memory_space<vmem>>, vector<1x128xf32>
    tpu.vector_store %arg10[%c18, %c0_287], %485 {strides = array<i32>} : memref<40x128xf32, #tpu.memory_space<vmem>>, vector<1x128xf32>,
    %487 = vector.extract_strided_slice %484 {offsets = [1, 0], sizes = [1, 128], strides = [1, 1]} : vector<7x128xf32> to vector<1x128xf32>
    %c20 = arith.constant 20 : index
    %c0_288 = arith.constant 0 : index
    %488 = vector.load %arg10[%c20, %c0_288] : memref<40x128xf32, #tpu.memory_space<vmem>>, vector<1x128xf32>
    tpu.vector_store %arg10[%c20, %c0_288], %487 {strides = array<i32>} : memref<40x128xf32, #tpu.memory_space<vmem>>, vector<1x128xf32>,
    %489 = vector.extract_strided_slice %484 {offsets = [2, 0], sizes = [1, 128], strides = [1, 1]} : vector<7x128xf32> to vector<1x128xf32>
    %c22 = arith.constant 22 : index
    %c0_289 = arith.constant 0 : index
    %490 = vector.load %arg10[%c22, %c0_289] : memref<40x128xf32, #tpu.memory_space<vmem>>, vector<1x128xf32>
    tpu.vector_store %arg10[%c22, %c0_289], %489 {strides = array<i32>} : memref<40x128xf32, #tpu.memory_space<vmem>>, vector<1x128xf32>,
    %491 = vector.extract_strided_slice %484 {offsets = [3, 0], sizes = [1, 128], strides = [1, 1]} : vector<7x128xf32> to vector<1x128xf32>
    %c24 = arith.constant 24 : index
    %c0_290 = arith.constant 0 : index
    %492 = vector.load %arg10[%c24, %c0_290] : memref<40x128xf32, #tpu.memory_space<vmem>>, vector<1x128xf32>
    tpu.vector_store %arg10[%c24, %c0_290], %491 {strides = array<i32>} : memref<40x128xf32, #tpu.memory_space<vmem>>, vector<1x128xf32>,
    %493 = vector.extract_strided_slice %484 {offsets = [4, 0], sizes = [1, 128], strides = [1, 1]} : vector<7x128xf32> to vector<1x128xf32>
    %c26 = arith.constant 26 : index
    %c0_291 = arith.constant 0 : index
    %494 = vector.load %arg10[%c26, %c0_291] : memref<40x128xf32, #tpu.memory_space<vmem>>, vector<1x128xf32>
    tpu.vector_store %arg10[%c26, %c0_291], %493 {strides = array<i32>} : memref<40x128xf32, #tpu.memory_space<vmem>>, vector<1x128xf32>,
    %495 = vector.extract_strided_slice %484 {offsets = [5, 0], sizes = [1, 128], strides = [1, 1]} : vector<7x128xf32> to vector<1x128xf32>
    %c28 = arith.constant 28 : index
    %c0_292 = arith.constant 0 : index
    %496 = vector.load %arg10[%c28, %c0_292] : memref<40x128xf32, #tpu.memory_space<vmem>>, vector<1x128xf32>
    tpu.vector_store %arg10[%c28, %c0_292], %495 {strides = array<i32>} : memref<40x128xf32, #tpu.memory_space<vmem>>, vector<1x128xf32>,
    %497 = vector.extract_strided_slice %484 {offsets = [6, 0], sizes = [1, 128], strides = [1, 1]} : vector<7x128xf32> to vector<1x128xf32>
    %c30 = arith.constant 30 : index
    %c0_293 = arith.constant 0 : index
    %498 = vector.load %arg10[%c30, %c0_293] : memref<40x128xf32, #tpu.memory_space<vmem>>, vector<1x128xf32>
    tpu.vector_store %arg10[%c30, %c0_293], %497 {strides = array<i32>} : memref<40x128xf32, #tpu.memory_space<vmem>>, vector<1x128xf32>,
    %c1_294 = arith.constant 1 : index
    %c0_295 = arith.constant 0 : index
    %499 = vector.load %arg10[%c1_294, %c0_295] : memref<40x128xf32, #tpu.memory_space<vmem>>, vector<32x128xf32>
    %500 = arith.truncf %499 : vector<32x128xf32> to vector<32x128xbf16>
    %c16 = arith.constant 16 : index
    %c0_296 = arith.constant 0 : index
    %c0_297 = arith.constant 0 : index
    %501 = vector.load %arg1[%c16, %c0_296, %c0_297] : memref<20x128x128xbf16, #tpu.memory_space<vmem>>, vector<1x128x128xbf16>
    %502 = vector.shape_cast %501 : vector<1x128x128xbf16> to vector<128x128xbf16>
    %cst_298 = arith.constant dense<0.000000e+00> : vector<32x128xf32>
    %503 = tpu.matmul %500, %502, %cst_298 {dimension_numbers = #tpu.dot_dimension_numbers<[1], [0], [0], [1], [0, 0, 1, 1], [], []>} : vector<32x128xbf16>, vector<128x128xbf16>, vector<32x128xf32> -> vector<32x128xf32>
    %c0_299 = arith.constant 0 : index
    %c0_300 = arith.constant 0 : index
    %504 = vector.load %arg10[%c0_299, %c0_300] : memref<40x128xf32, #tpu.memory_space<vmem>>, vector<32x128xf32>
    %505 = arith.truncf %504 : vector<32x128xf32> to vector<32x128xbf16>
    %c17_301 = arith.constant 17 : index
    %c0_302 = arith.constant 0 : index
    %c0_303 = arith.constant 0 : index
    %506 = vector.load %arg1[%c17_301, %c0_302, %c0_303] : memref<20x128x128xbf16, #tpu.memory_space<vmem>>, vector<1x128x128xbf16>
    %507 = vector.shape_cast %506 : vector<1x128x128xbf16> to vector<128x128xbf16>
    %cst_304 = arith.constant dense<0.000000e+00> : vector<32x128xf32>
    %508 = tpu.matmul %505, %507, %cst_304 {dimension_numbers = #tpu.dot_dimension_numbers<[1], [0], [0], [1], [0, 0, 1, 1], [], []>} : vector<32x128xbf16>, vector<128x128xbf16>, vector<32x128xf32> -> vector<32x128xf32>
    %509 = arith.addf %503, %508 : vector<32x128xf32>
    %c1_305 = arith.constant 1 : index
    %c0_306 = arith.constant 0 : index
    %510 = vector.load %arg10[%c1_305, %c0_306] : memref<40x128xf32, #tpu.memory_space<vmem>>, vector<32x128xf32>
    %511 = arith.truncf %510 : vector<32x128xf32> to vector<32x128xbf16>
    %c18_307 = arith.constant 18 : index
    %c0_308 = arith.constant 0 : index
    %c0_309 = arith.constant 0 : index
    %512 = vector.load %arg1[%c18_307, %c0_308, %c0_309] : memref<20x128x128xbf16, #tpu.memory_space<vmem>>, vector<1x128x128xbf16>
    %513 = vector.shape_cast %512 : vector<1x128x128xbf16> to vector<128x128xbf16>
    %cst_310 = arith.constant dense<0.000000e+00> : vector<32x128xf32>
    %514 = tpu.matmul %511, %513, %cst_310 {dimension_numbers = #tpu.dot_dimension_numbers<[1], [0], [0], [1], [0, 0, 1, 1], [], []>} : vector<32x128xbf16>, vector<128x128xbf16>, vector<32x128xf32> -> vector<32x128xf32>
    %c0_311 = arith.constant 0 : index
    %c0_312 = arith.constant 0 : index
    %515 = vector.load %arg10[%c0_311, %c0_312] : memref<40x128xf32, #tpu.memory_space<vmem>>, vector<32x128xf32>
    %516 = arith.truncf %515 : vector<32x128xf32> to vector<32x128xbf16>
    %c19_313 = arith.constant 19 : index
    %c0_314 = arith.constant 0 : index
    %c0_315 = arith.constant 0 : index
    %517 = vector.load %arg1[%c19_313, %c0_314, %c0_315] : memref<20x128x128xbf16, #tpu.memory_space<vmem>>, vector<1x128x128xbf16>
    %518 = vector.shape_cast %517 : vector<1x128x128xbf16> to vector<128x128xbf16>
    %cst_316 = arith.constant dense<0.000000e+00> : vector<32x128xf32>
    %519 = tpu.matmul %516, %518, %cst_316 {dimension_numbers = #tpu.dot_dimension_numbers<[1], [0], [0], [1], [0, 0, 1, 1], [], []>} : vector<32x128xbf16>, vector<128x128xbf16>, vector<32x128xf32> -> vector<32x128xf32>
    %520 = arith.addf %514, %519 : vector<32x128xf32>
    %521 = vector.extract_strided_slice %509 {offsets = [0, 0], sizes = [14, 128], strides = [1, 1]} : vector<32x128xf32> to vector<14x128xf32>
    %522 = math.tanh %521 : vector<14x128xf32>
    %523 = vector.extract_strided_slice %522 {offsets = [0, 0], sizes = [1, 128], strides = [1, 1]} : vector<14x128xf32> to vector<1x128xf32>
    %c0_317 = arith.constant 0 : index
    %c0_318 = arith.constant 0 : index
    %524 = vector.load %arg5[%c0_317, %c0_318] : memref<56x128xf32, #tpu.memory_space<vmem>>, vector<1x128xf32>
    tpu.vector_store %arg5[%c0_317, %c0_318], %523 {strides = array<i32>} : memref<56x128xf32, #tpu.memory_space<vmem>>, vector<1x128xf32>,
    %525 = vector.extract_strided_slice %522 {offsets = [1, 0], sizes = [1, 128], strides = [1, 1]} : vector<14x128xf32> to vector<1x128xf32>
    %c2_319 = arith.constant 2 : index
    %c0_320 = arith.constant 0 : index
    %526 = vector.load %arg5[%c2_319, %c0_320] : memref<56x128xf32, #tpu.memory_space<vmem>>, vector<1x128xf32>
    tpu.vector_store %arg5[%c2_319, %c0_320], %525 {strides = array<i32>} : memref<56x128xf32, #tpu.memory_space<vmem>>, vector<1x128xf32>,
    %527 = vector.extract_strided_slice %522 {offsets = [2, 0], sizes = [1, 128], strides = [1, 1]} : vector<14x128xf32> to vector<1x128xf32>
    %c4_321 = arith.constant 4 : index
    %c0_322 = arith.constant 0 : index
    %528 = vector.load %arg5[%c4_321, %c0_322] : memref<56x128xf32, #tpu.memory_space<vmem>>, vector<1x128xf32>
    tpu.vector_store %arg5[%c4_321, %c0_322], %527 {strides = array<i32>} : memref<56x128xf32, #tpu.memory_space<vmem>>, vector<1x128xf32>,
    %529 = vector.extract_strided_slice %522 {offsets = [3, 0], sizes = [1, 128], strides = [1, 1]} : vector<14x128xf32> to vector<1x128xf32>
    %c6_323 = arith.constant 6 : index
    %c0_324 = arith.constant 0 : index
    %530 = vector.load %arg5[%c6_323, %c0_324] : memref<56x128xf32, #tpu.memory_space<vmem>>, vector<1x128xf32>
    tpu.vector_store %arg5[%c6_323, %c0_324], %529 {strides = array<i32>} : memref<56x128xf32, #tpu.memory_space<vmem>>, vector<1x128xf32>,
    %531 = vector.extract_strided_slice %522 {offsets = [4, 0], sizes = [1, 128], strides = [1, 1]} : vector<14x128xf32> to vector<1x128xf32>
    %c8_325 = arith.constant 8 : index
    %c0_326 = arith.constant 0 : index
    %532 = vector.load %arg5[%c8_325, %c0_326] : memref<56x128xf32, #tpu.memory_space<vmem>>, vector<1x128xf32>
    tpu.vector_store %arg5[%c8_325, %c0_326], %531 {strides = array<i32>} : memref<56x128xf32, #tpu.memory_space<vmem>>, vector<1x128xf32>,
    %533 = vector.extract_strided_slice %522 {offsets = [5, 0], sizes = [1, 128], strides = [1, 1]} : vector<14x128xf32> to vector<1x128xf32>
    %c10_327 = arith.constant 10 : index
    %c0_328 = arith.constant 0 : index
    %534 = vector.load %arg5[%c10_327, %c0_328] : memref<56x128xf32, #tpu.memory_space<vmem>>, vector<1x128xf32>
    tpu.vector_store %arg5[%c10_327, %c0_328], %533 {strides = array<i32>} : memref<56x128xf32, #tpu.memory_space<vmem>>, vector<1x128xf32>,
    %535 = vector.extract_strided_slice %522 {offsets = [6, 0], sizes = [1, 128], strides = [1, 1]} : vector<14x128xf32> to vector<1x128xf32>
    %c12_329 = arith.constant 12 : index
    %c0_330 = arith.constant 0 : index
    %536 = vector.load %arg5[%c12_329, %c0_330] : memref<56x128xf32, #tpu.memory_space<vmem>>, vector<1x128xf32>
    tpu.vector_store %arg5[%c12_329, %c0_330], %535 {strides = array<i32>} : memref<56x128xf32, #tpu.memory_space<vmem>>, vector<1x128xf32>,
    %537 = vector.extract_strided_slice %522 {offsets = [7, 0], sizes = [1, 128], strides = [1, 1]} : vector<14x128xf32> to vector<1x128xf32>
    %c14_331 = arith.constant 14 : index
    %c0_332 = arith.constant 0 : index
    %538 = vector.load %arg5[%c14_331, %c0_332] : memref<56x128xf32, #tpu.memory_space<vmem>>, vector<1x128xf32>
    tpu.vector_store %arg5[%c14_331, %c0_332], %537 {strides = array<i32>} : memref<56x128xf32, #tpu.memory_space<vmem>>, vector<1x128xf32>,
    %539 = vector.extract_strided_slice %522 {offsets = [8, 0], sizes = [1, 128], strides = [1, 1]} : vector<14x128xf32> to vector<1x128xf32>
    %c16_333 = arith.constant 16 : index
    %c0_334 = arith.constant 0 : index
    %540 = vector.load %arg5[%c16_333, %c0_334] : memref<56x128xf32, #tpu.memory_space<vmem>>, vector<1x128xf32>
    tpu.vector_store %arg5[%c16_333, %c0_334], %539 {strides = array<i32>} : memref<56x128xf32, #tpu.memory_space<vmem>>, vector<1x128xf32>,
    %541 = vector.extract_strided_slice %522 {offsets = [9, 0], sizes = [1, 128], strides = [1, 1]} : vector<14x128xf32> to vector<1x128xf32>
    %c18_335 = arith.constant 18 : index
    %c0_336 = arith.constant 0 : index
    %542 = vector.load %arg5[%c18_335, %c0_336] : memref<56x128xf32, #tpu.memory_space<vmem>>, vector<1x128xf32>
    tpu.vector_store %arg5[%c18_335, %c0_336], %541 {strides = array<i32>} : memref<56x128xf32, #tpu.memory_space<vmem>>, vector<1x128xf32>,
    %543 = vector.extract_strided_slice %522 {offsets = [10, 0], sizes = [1, 128], strides = [1, 1]} : vector<14x128xf32> to vector<1x128xf32>
    %c20_337 = arith.constant 20 : index
    %c0_338 = arith.constant 0 : index
    %544 = vector.load %arg5[%c20_337, %c0_338] : memref<56x128xf32, #tpu.memory_space<vmem>>, vector<1x128xf32>
    tpu.vector_store %arg5[%c20_337, %c0_338], %543 {strides = array<i32>} : memref<56x128xf32, #tpu.memory_space<vmem>>, vector<1x128xf32>,
    %545 = vector.extract_strided_slice %522 {offsets = [11, 0], sizes = [1, 128], strides = [1, 1]} : vector<14x128xf32> to vector<1x128xf32>
    %c22_339 = arith.constant 22 : index
    %c0_340 = arith.constant 0 : index
    %546 = vector.load %arg5[%c22_339, %c0_340] : memref<56x128xf32, #tpu.memory_space<vmem>>, vector<1x128xf32>
    tpu.vector_store %arg5[%c22_339, %c0_340], %545 {strides = array<i32>} : memref<56x128xf32, #tpu.memory_space<vmem>>, vector<1x128xf32>,
    %547 = vector.extract_strided_slice %522 {offsets = [12, 0], sizes = [1, 128], strides = [1, 1]} : vector<14x128xf32> to vector<1x128xf32>
    %c24_341 = arith.constant 24 : index
    %c0_342 = arith.constant 0 : index
    %548 = vector.load %arg5[%c24_341, %c0_342] : memref<56x128xf32, #tpu.memory_space<vmem>>, vector<1x128xf32>
    tpu.vector_store %arg5[%c24_341, %c0_342], %547 {strides = array<i32>} : memref<56x128xf32, #tpu.memory_space<vmem>>, vector<1x128xf32>,
    %549 = vector.extract_strided_slice %522 {offsets = [13, 0], sizes = [1, 128], strides = [1, 1]} : vector<14x128xf32> to vector<1x128xf32>
    %c26_343 = arith.constant 26 : index
    %c0_344 = arith.constant 0 : index
    %550 = vector.load %arg5[%c26_343, %c0_344] : memref<56x128xf32, #tpu.memory_space<vmem>>, vector<1x128xf32>
    tpu.vector_store %arg5[%c26_343, %c0_344], %549 {strides = array<i32>} : memref<56x128xf32, #tpu.memory_space<vmem>>, vector<1x128xf32>,
    %551 = vector.extract_strided_slice %509 {offsets = [16, 0], sizes = [14, 128], strides = [1, 1]} : vector<32x128xf32> to vector<14x128xf32>
    %552 = math.tanh %551 : vector<14x128xf32>
    %553 = vector.extract_strided_slice %552 {offsets = [0, 0], sizes = [1, 128], strides = [1, 1]} : vector<14x128xf32> to vector<1x128xf32>
    %c28_345 = arith.constant 28 : index
    %c0_346 = arith.constant 0 : index
    %554 = vector.load %arg5[%c28_345, %c0_346] : memref<56x128xf32, #tpu.memory_space<vmem>>, vector<1x128xf32>
    tpu.vector_store %arg5[%c28_345, %c0_346], %553 {strides = array<i32>} : memref<56x128xf32, #tpu.memory_space<vmem>>, vector<1x128xf32>,
    %555 = vector.extract_strided_slice %552 {offsets = [1, 0], sizes = [1, 128], strides = [1, 1]} : vector<14x128xf32> to vector<1x128xf32>
    %c30_347 = arith.constant 30 : index
    %c0_348 = arith.constant 0 : index
    %556 = vector.load %arg5[%c30_347, %c0_348] : memref<56x128xf32, #tpu.memory_space<vmem>>, vector<1x128xf32>
    tpu.vector_store %arg5[%c30_347, %c0_348], %555 {strides = array<i32>} : memref<56x128xf32, #tpu.memory_space<vmem>>, vector<1x128xf32>,
    %557 = vector.extract_strided_slice %552 {offsets = [2, 0], sizes = [1, 128], strides = [1, 1]} : vector<14x128xf32> to vector<1x128xf32>
    %c32 = arith.constant 32 : index
    %c0_349 = arith.constant 0 : index
    %558 = vector.load %arg5[%c32, %c0_349] : memref<56x128xf32, #tpu.memory_space<vmem>>, vector<1x128xf32>
    tpu.vector_store %arg5[%c32, %c0_349], %557 {strides = array<i32>} : memref<56x128xf32, #tpu.memory_space<vmem>>, vector<1x128xf32>,
    %559 = vector.extract_strided_slice %552 {offsets = [3, 0], sizes = [1, 128], strides = [1, 1]} : vector<14x128xf32> to vector<1x128xf32>
    %c34 = arith.constant 34 : index
    %c0_350 = arith.constant 0 : index
    %560 = vector.load %arg5[%c34, %c0_350] : memref<56x128xf32, #tpu.memory_space<vmem>>, vector<1x128xf32>
    tpu.vector_store %arg5[%c34, %c0_350], %559 {strides = array<i32>} : memref<56x128xf32, #tpu.memory_space<vmem>>, vector<1x128xf32>,
    %561 = vector.extract_strided_slice %552 {offsets = [4, 0], sizes = [1, 128], strides = [1, 1]} : vector<14x128xf32> to vector<1x128xf32>
    %c36 = arith.constant 36 : index
    %c0_351 = arith.constant 0 : index
    %562 = vector.load %arg5[%c36, %c0_351] : memref<56x128xf32, #tpu.memory_space<vmem>>, vector<1x128xf32>
    tpu.vector_store %arg5[%c36, %c0_351], %561 {strides = array<i32>} : memref<56x128xf32, #tpu.memory_space<vmem>>, vector<1x128xf32>,
    %563 = vector.extract_strided_slice %552 {offsets = [5, 0], sizes = [1, 128], strides = [1, 1]} : vector<14x128xf32> to vector<1x128xf32>
    %c38 = arith.constant 38 : index
    %c0_352 = arith.constant 0 : index
    %564 = vector.load %arg5[%c38, %c0_352] : memref<56x128xf32, #tpu.memory_space<vmem>>, vector<1x128xf32>
    tpu.vector_store %arg5[%c38, %c0_352], %563 {strides = array<i32>} : memref<56x128xf32, #tpu.memory_space<vmem>>, vector<1x128xf32>,
    %565 = vector.extract_strided_slice %552 {offsets = [6, 0], sizes = [1, 128], strides = [1, 1]} : vector<14x128xf32> to vector<1x128xf32>
    %c40 = arith.constant 40 : index
    %c0_353 = arith.constant 0 : index
    %566 = vector.load %arg5[%c40, %c0_353] : memref<56x128xf32, #tpu.memory_space<vmem>>, vector<1x128xf32>
    tpu.vector_store %arg5[%c40, %c0_353], %565 {strides = array<i32>} : memref<56x128xf32, #tpu.memory_space<vmem>>, vector<1x128xf32>,
    %567 = vector.extract_strided_slice %552 {offsets = [7, 0], sizes = [1, 128], strides = [1, 1]} : vector<14x128xf32> to vector<1x128xf32>
    %c42 = arith.constant 42 : index
    %c0_354 = arith.constant 0 : index
    %568 = vector.load %arg5[%c42, %c0_354] : memref<56x128xf32, #tpu.memory_space<vmem>>, vector<1x128xf32>
    tpu.vector_store %arg5[%c42, %c0_354], %567 {strides = array<i32>} : memref<56x128xf32, #tpu.memory_space<vmem>>, vector<1x128xf32>,
    %569 = vector.extract_strided_slice %552 {offsets = [8, 0], sizes = [1, 128], strides = [1, 1]} : vector<14x128xf32> to vector<1x128xf32>
    %c44 = arith.constant 44 : index
    %c0_355 = arith.constant 0 : index
    %570 = vector.load %arg5[%c44, %c0_355] : memref<56x128xf32, #tpu.memory_space<vmem>>, vector<1x128xf32>
    tpu.vector_store %arg5[%c44, %c0_355], %569 {strides = array<i32>} : memref<56x128xf32, #tpu.memory_space<vmem>>, vector<1x128xf32>,
    %571 = vector.extract_strided_slice %552 {offsets = [9, 0], sizes = [1, 128], strides = [1, 1]} : vector<14x128xf32> to vector<1x128xf32>
    %c46 = arith.constant 46 : index
    %c0_356 = arith.constant 0 : index
    %572 = vector.load %arg5[%c46, %c0_356] : memref<56x128xf32, #tpu.memory_space<vmem>>, vector<1x128xf32>
    tpu.vector_store %arg5[%c46, %c0_356], %571 {strides = array<i32>} : memref<56x128xf32, #tpu.memory_space<vmem>>, vector<1x128xf32>,
    %573 = vector.extract_strided_slice %552 {offsets = [10, 0], sizes = [1, 128], strides = [1, 1]} : vector<14x128xf32> to vector<1x128xf32>
    %c48 = arith.constant 48 : index
    %c0_357 = arith.constant 0 : index
    %574 = vector.load %arg5[%c48, %c0_357] : memref<56x128xf32, #tpu.memory_space<vmem>>, vector<1x128xf32>
    tpu.vector_store %arg5[%c48, %c0_357], %573 {strides = array<i32>} : memref<56x128xf32, #tpu.memory_space<vmem>>, vector<1x128xf32>,
    %575 = vector.extract_strided_slice %552 {offsets = [11, 0], sizes = [1, 128], strides = [1, 1]} : vector<14x128xf32> to vector<1x128xf32>
    %c50 = arith.constant 50 : index
    %c0_358 = arith.constant 0 : index
    %576 = vector.load %arg5[%c50, %c0_358] : memref<56x128xf32, #tpu.memory_space<vmem>>, vector<1x128xf32>
    tpu.vector_store %arg5[%c50, %c0_358], %575 {strides = array<i32>} : memref<56x128xf32, #tpu.memory_space<vmem>>, vector<1x128xf32>,
    %577 = vector.extract_strided_slice %552 {offsets = [12, 0], sizes = [1, 128], strides = [1, 1]} : vector<14x128xf32> to vector<1x128xf32>
    %c52 = arith.constant 52 : index
    %c0_359 = arith.constant 0 : index
    %578 = vector.load %arg5[%c52, %c0_359] : memref<56x128xf32, #tpu.memory_space<vmem>>, vector<1x128xf32>
    tpu.vector_store %arg5[%c52, %c0_359], %577 {strides = array<i32>} : memref<56x128xf32, #tpu.memory_space<vmem>>, vector<1x128xf32>,
    %579 = vector.extract_strided_slice %552 {offsets = [13, 0], sizes = [1, 128], strides = [1, 1]} : vector<14x128xf32> to vector<1x128xf32>
    %c54 = arith.constant 54 : index
    %c0_360 = arith.constant 0 : index
    %580 = vector.load %arg5[%c54, %c0_360] : memref<56x128xf32, #tpu.memory_space<vmem>>, vector<1x128xf32>
    tpu.vector_store %arg5[%c54, %c0_360], %579 {strides = array<i32>} : memref<56x128xf32, #tpu.memory_space<vmem>>, vector<1x128xf32>,
    %581 = vector.extract_strided_slice %520 {offsets = [1, 0], sizes = [14, 128], strides = [1, 1]} : vector<32x128xf32> to vector<14x128xf32>
    %582 = math.tanh %581 : vector<14x128xf32>
    %583 = vector.extract_strided_slice %582 {offsets = [0, 0], sizes = [1, 128], strides = [1, 1]} : vector<14x128xf32> to vector<1x128xf32>
    %c1_361 = arith.constant 1 : index
    %c0_362 = arith.constant 0 : index
    %584 = vector.load %arg5[%c1_361, %c0_362] : memref<56x128xf32, #tpu.memory_space<vmem>>, vector<1x128xf32>
    tpu.vector_store %arg5[%c1_361, %c0_362], %583 {strides = array<i32>} : memref<56x128xf32, #tpu.memory_space<vmem>>, vector<1x128xf32>,
    %585 = vector.extract_strided_slice %582 {offsets = [1, 0], sizes = [1, 128], strides = [1, 1]} : vector<14x128xf32> to vector<1x128xf32>
    %c3_363 = arith.constant 3 : index
    %c0_364 = arith.constant 0 : index
    %586 = vector.load %arg5[%c3_363, %c0_364] : memref<56x128xf32, #tpu.memory_space<vmem>>, vector<1x128xf32>
    tpu.vector_store %arg5[%c3_363, %c0_364], %585 {strides = array<i32>} : memref<56x128xf32, #tpu.memory_space<vmem>>, vector<1x128xf32>,
    %587 = vector.extract_strided_slice %582 {offsets = [2, 0], sizes = [1, 128], strides = [1, 1]} : vector<14x128xf32> to vector<1x128xf32>
    %c5_365 = arith.constant 5 : index
    %c0_366 = arith.constant 0 : index
    %588 = vector.load %arg5[%c5_365, %c0_366] : memref<56x128xf32, #tpu.memory_space<vmem>>, vector<1x128xf32>
    tpu.vector_store %arg5[%c5_365, %c0_366], %587 {strides = array<i32>} : memref<56x128xf32, #tpu.memory_space<vmem>>, vector<1x128xf32>,
    %589 = vector.extract_strided_slice %582 {offsets = [3, 0], sizes = [1, 128], strides = [1, 1]} : vector<14x128xf32> to vector<1x128xf32>
    %c7_367 = arith.constant 7 : index
    %c0_368 = arith.constant 0 : index
    %590 = vector.load %arg5[%c7_367, %c0_368] : memref<56x128xf32, #tpu.memory_space<vmem>>, vector<1x128xf32>
    tpu.vector_store %arg5[%c7_367, %c0_368], %589 {strides = array<i32>} : memref<56x128xf32, #tpu.memory_space<vmem>>, vector<1x128xf32>,
    %591 = vector.extract_strided_slice %582 {offsets = [4, 0], sizes = [1, 128], strides = [1, 1]} : vector<14x128xf32> to vector<1x128xf32>
    %c9_369 = arith.constant 9 : index
    %c0_370 = arith.constant 0 : index
    %592 = vector.load %arg5[%c9_369, %c0_370] : memref<56x128xf32, #tpu.memory_space<vmem>>, vector<1x128xf32>
    tpu.vector_store %arg5[%c9_369, %c0_370], %591 {strides = array<i32>} : memref<56x128xf32, #tpu.memory_space<vmem>>, vector<1x128xf32>,
    %593 = vector.extract_strided_slice %582 {offsets = [5, 0], sizes = [1, 128], strides = [1, 1]} : vector<14x128xf32> to vector<1x128xf32>
    %c11_371 = arith.constant 11 : index
    %c0_372 = arith.constant 0 : index
    %594 = vector.load %arg5[%c11_371, %c0_372] : memref<56x128xf32, #tpu.memory_space<vmem>>, vector<1x128xf32>
    tpu.vector_store %arg5[%c11_371, %c0_372], %593 {strides = array<i32>} : memref<56x128xf32, #tpu.memory_space<vmem>>, vector<1x128xf32>,
    %595 = vector.extract_strided_slice %582 {offsets = [6, 0], sizes = [1, 128], strides = [1, 1]} : vector<14x128xf32> to vector<1x128xf32>
    %c13_373 = arith.constant 13 : index
    %c0_374 = arith.constant 0 : index
    %596 = vector.load %arg5[%c13_373, %c0_374] : memref<56x128xf32, #tpu.memory_space<vmem>>, vector<1x128xf32>
    tpu.vector_store %arg5[%c13_373, %c0_374], %595 {strides = array<i32>} : memref<56x128xf32, #tpu.memory_space<vmem>>, vector<1x128xf32>,
    %597 = vector.extract_strided_slice %582 {offsets = [7, 0], sizes = [1, 128], strides = [1, 1]} : vector<14x128xf32> to vector<1x128xf32>
    %c15_375 = arith.constant 15 : index
    %c0_376 = arith.constant 0 : index
    %598 = vector.load %arg5[%c15_375, %c0_376] : memref<56x128xf32, #tpu.memory_space<vmem>>, vector<1x128xf32>
    tpu.vector_store %arg5[%c15_375, %c0_376], %597 {strides = array<i32>} : memref<56x128xf32, #tpu.memory_space<vmem>>, vector<1x128xf32>,
    %599 = vector.extract_strided_slice %582 {offsets = [8, 0], sizes = [1, 128], strides = [1, 1]} : vector<14x128xf32> to vector<1x128xf32>
    %c17_377 = arith.constant 17 : index
    %c0_378 = arith.constant 0 : index
    %600 = vector.load %arg5[%c17_377, %c0_378] : memref<56x128xf32, #tpu.memory_space<vmem>>, vector<1x128xf32>
    tpu.vector_store %arg5[%c17_377, %c0_378], %599 {strides = array<i32>} : memref<56x128xf32, #tpu.memory_space<vmem>>, vector<1x128xf32>,
    %601 = vector.extract_strided_slice %582 {offsets = [9, 0], sizes = [1, 128], strides = [1, 1]} : vector<14x128xf32> to vector<1x128xf32>
    %c19_379 = arith.constant 19 : index
    %c0_380 = arith.constant 0 : index
    %602 = vector.load %arg5[%c19_379, %c0_380] : memref<56x128xf32, #tpu.memory_space<vmem>>, vector<1x128xf32>
    tpu.vector_store %arg5[%c19_379, %c0_380], %601 {strides = array<i32>} : memref<56x128xf32, #tpu.memory_space<vmem>>, vector<1x128xf32>,
    %603 = vector.extract_strided_slice %582 {offsets = [10, 0], sizes = [1, 128], strides = [1, 1]} : vector<14x128xf32> to vector<1x128xf32>
    %c21_381 = arith.constant 21 : index
    %c0_382 = arith.constant 0 : index
    %604 = vector.load %arg5[%c21_381, %c0_382] : memref<56x128xf32, #tpu.memory_space<vmem>>, vector<1x128xf32>
    tpu.vector_store %arg5[%c21_381, %c0_382], %603 {strides = array<i32>} : memref<56x128xf32, #tpu.memory_space<vmem>>, vector<1x128xf32>,
    %605 = vector.extract_strided_slice %582 {offsets = [11, 0], sizes = [1, 128], strides = [1, 1]} : vector<14x128xf32> to vector<1x128xf32>
    %c23_383 = arith.constant 23 : index
    %c0_384 = arith.constant 0 : index
    %606 = vector.load %arg5[%c23_383, %c0_384] : memref<56x128xf32, #tpu.memory_space<vmem>>, vector<1x128xf32>
    tpu.vector_store %arg5[%c23_383, %c0_384], %605 {strides = array<i32>} : memref<56x128xf32, #tpu.memory_space<vmem>>, vector<1x128xf32>,
    %607 = vector.extract_strided_slice %582 {offsets = [12, 0], sizes = [1, 128], strides = [1, 1]} : vector<14x128xf32> to vector<1x128xf32>
    %c25_385 = arith.constant 25 : index
    %c0_386 = arith.constant 0 : index
    %608 = vector.load %arg5[%c25_385, %c0_386] : memref<56x128xf32, #tpu.memory_space<vmem>>, vector<1x128xf32>
    tpu.vector_store %arg5[%c25_385, %c0_386], %607 {strides = array<i32>} : memref<56x128xf32, #tpu.memory_space<vmem>>, vector<1x128xf32>,
    %609 = vector.extract_strided_slice %582 {offsets = [13, 0], sizes = [1, 128], strides = [1, 1]} : vector<14x128xf32> to vector<1x128xf32>
    %c27_387 = arith.constant 27 : index
    %c0_388 = arith.constant 0 : index
    %610 = vector.load %arg5[%c27_387, %c0_388] : memref<56x128xf32, #tpu.memory_space<vmem>>, vector<1x128xf32>
    tpu.vector_store %arg5[%c27_387, %c0_388], %609 {strides = array<i32>} : memref<56x128xf32, #tpu.memory_space<vmem>>, vector<1x128xf32>,
    %611 = vector.extract_strided_slice %520 {offsets = [17, 0], sizes = [14, 128], strides = [1, 1]} : vector<32x128xf32> to vector<14x128xf32>
    %612 = math.tanh %611 : vector<14x128xf32>
    %613 = vector.extract_strided_slice %612 {offsets = [0, 0], sizes = [1, 128], strides = [1, 1]} : vector<14x128xf32> to vector<1x128xf32>
    %c29_389 = arith.constant 29 : index
    %c0_390 = arith.constant 0 : index
    %614 = vector.load %arg5[%c29_389, %c0_390] : memref<56x128xf32, #tpu.memory_space<vmem>>, vector<1x128xf32>
    tpu.vector_store %arg5[%c29_389, %c0_390], %613 {strides = array<i32>} : memref<56x128xf32, #tpu.memory_space<vmem>>, vector<1x128xf32>,
    %615 = vector.extract_strided_slice %612 {offsets = [1, 0], sizes = [1, 128], strides = [1, 1]} : vector<14x128xf32> to vector<1x128xf32>
    %c31 = arith.constant 31 : index
    %c0_391 = arith.constant 0 : index
    %616 = vector.load %arg5[%c31, %c0_391] : memref<56x128xf32, #tpu.memory_space<vmem>>, vector<1x128xf32>
    tpu.vector_store %arg5[%c31, %c0_391], %615 {strides = array<i32>} : memref<56x128xf32, #tpu.memory_space<vmem>>, vector<1x128xf32>,
    %617 = vector.extract_strided_slice %612 {offsets = [2, 0], sizes = [1, 128], strides = [1, 1]} : vector<14x128xf32> to vector<1x128xf32>
    %c33 = arith.constant 33 : index
    %c0_392 = arith.constant 0 : index
    %618 = vector.load %arg5[%c33, %c0_392] : memref<56x128xf32, #tpu.memory_space<vmem>>, vector<1x128xf32>
    tpu.vector_store %arg5[%c33, %c0_392], %617 {strides = array<i32>} : memref<56x128xf32, #tpu.memory_space<vmem>>, vector<1x128xf32>,
    %619 = vector.extract_strided_slice %612 {offsets = [3, 0], sizes = [1, 128], strides = [1, 1]} : vector<14x128xf32> to vector<1x128xf32>
    %c35 = arith.constant 35 : index
    %c0_393 = arith.constant 0 : index
    %620 = vector.load %arg5[%c35, %c0_393] : memref<56x128xf32, #tpu.memory_space<vmem>>, vector<1x128xf32>
    tpu.vector_store %arg5[%c35, %c0_393], %619 {strides = array<i32>} : memref<56x128xf32, #tpu.memory_space<vmem>>, vector<1x128xf32>,
    %621 = vector.extract_strided_slice %612 {offsets = [4, 0], sizes = [1, 128], strides = [1, 1]} : vector<14x128xf32> to vector<1x128xf32>
    %c37 = arith.constant 37 : index
    %c0_394 = arith.constant 0 : index
    %622 = vector.load %arg5[%c37, %c0_394] : memref<56x128xf32, #tpu.memory_space<vmem>>, vector<1x128xf32>
    tpu.vector_store %arg5[%c37, %c0_394], %621 {strides = array<i32>} : memref<56x128xf32, #tpu.memory_space<vmem>>, vector<1x128xf32>,
    %623 = vector.extract_strided_slice %612 {offsets = [5, 0], sizes = [1, 128], strides = [1, 1]} : vector<14x128xf32> to vector<1x128xf32>
    %c39 = arith.constant 39 : index
    %c0_395 = arith.constant 0 : index
    %624 = vector.load %arg5[%c39, %c0_395] : memref<56x128xf32, #tpu.memory_space<vmem>>, vector<1x128xf32>
    tpu.vector_store %arg5[%c39, %c0_395], %623 {strides = array<i32>} : memref<56x128xf32, #tpu.memory_space<vmem>>, vector<1x128xf32>,
    %625 = vector.extract_strided_slice %612 {offsets = [6, 0], sizes = [1, 128], strides = [1, 1]} : vector<14x128xf32> to vector<1x128xf32>
    %c41 = arith.constant 41 : index
    %c0_396 = arith.constant 0 : index
    %626 = vector.load %arg5[%c41, %c0_396] : memref<56x128xf32, #tpu.memory_space<vmem>>, vector<1x128xf32>
    tpu.vector_store %arg5[%c41, %c0_396], %625 {strides = array<i32>} : memref<56x128xf32, #tpu.memory_space<vmem>>, vector<1x128xf32>,
    %627 = vector.extract_strided_slice %612 {offsets = [7, 0], sizes = [1, 128], strides = [1, 1]} : vector<14x128xf32> to vector<1x128xf32>
    %c43 = arith.constant 43 : index
    %c0_397 = arith.constant 0 : index
    %628 = vector.load %arg5[%c43, %c0_397] : memref<56x128xf32, #tpu.memory_space<vmem>>, vector<1x128xf32>
    tpu.vector_store %arg5[%c43, %c0_397], %627 {strides = array<i32>} : memref<56x128xf32, #tpu.memory_space<vmem>>, vector<1x128xf32>,
    %629 = vector.extract_strided_slice %612 {offsets = [8, 0], sizes = [1, 128], strides = [1, 1]} : vector<14x128xf32> to vector<1x128xf32>
    %c45 = arith.constant 45 : index
    %c0_398 = arith.constant 0 : index
    %630 = vector.load %arg5[%c45, %c0_398] : memref<56x128xf32, #tpu.memory_space<vmem>>, vector<1x128xf32>
    tpu.vector_store %arg5[%c45, %c0_398], %629 {strides = array<i32>} : memref<56x128xf32, #tpu.memory_space<vmem>>, vector<1x128xf32>,
    %631 = vector.extract_strided_slice %612 {offsets = [9, 0], sizes = [1, 128], strides = [1, 1]} : vector<14x128xf32> to vector<1x128xf32>
    %c47 = arith.constant 47 : index
    %c0_399 = arith.constant 0 : index
    %632 = vector.load %arg5[%c47, %c0_399] : memref<56x128xf32, #tpu.memory_space<vmem>>, vector<1x128xf32>
    tpu.vector_store %arg5[%c47, %c0_399], %631 {strides = array<i32>} : memref<56x128xf32, #tpu.memory_space<vmem>>, vector<1x128xf32>,
    %633 = vector.extract_strided_slice %612 {offsets = [10, 0], sizes = [1, 128], strides = [1, 1]} : vector<14x128xf32> to vector<1x128xf32>
    %c49 = arith.constant 49 : index
    %c0_400 = arith.constant 0 : index
    %634 = vector.load %arg5[%c49, %c0_400] : memref<56x128xf32, #tpu.memory_space<vmem>>, vector<1x128xf32>
    tpu.vector_store %arg5[%c49, %c0_400], %633 {strides = array<i32>} : memref<56x128xf32, #tpu.memory_space<vmem>>, vector<1x128xf32>,
    %635 = vector.extract_strided_slice %612 {offsets = [11, 0], sizes = [1, 128], strides = [1, 1]} : vector<14x128xf32> to vector<1x128xf32>
    %c51 = arith.constant 51 : index
    %c0_401 = arith.constant 0 : index
    %636 = vector.load %arg5[%c51, %c0_401] : memref<56x128xf32, #tpu.memory_space<vmem>>, vector<1x128xf32>
    tpu.vector_store %arg5[%c51, %c0_401], %635 {strides = array<i32>} : memref<56x128xf32, #tpu.memory_space<vmem>>, vector<1x128xf32>,
    %637 = vector.extract_strided_slice %612 {offsets = [12, 0], sizes = [1, 128], strides = [1, 1]} : vector<14x128xf32> to vector<1x128xf32>
    %c53 = arith.constant 53 : index
    %c0_402 = arith.constant 0 : index
    %638 = vector.load %arg5[%c53, %c0_402] : memref<56x128xf32, #tpu.memory_space<vmem>>, vector<1x128xf32>
    tpu.vector_store %arg5[%c53, %c0_402], %637 {strides = array<i32>} : memref<56x128xf32, #tpu.memory_space<vmem>>, vector<1x128xf32>,
    %639 = vector.extract_strided_slice %612 {offsets = [13, 0], sizes = [1, 128], strides = [1, 1]} : vector<14x128xf32> to vector<1x128xf32>
    %c55 = arith.constant 55 : index
    %c0_403 = arith.constant 0 : index
    %640 = vector.load %arg5[%c55, %c0_403] : memref<56x128xf32, #tpu.memory_space<vmem>>, vector<1x128xf32>
    tpu.vector_store %arg5[%c55, %c0_403], %639 {strides = array<i32>} : memref<56x128xf32, #tpu.memory_space<vmem>>, vector<1x128xf32>,
    return
  }
}

</mosaic_0001>

<bundles_post_ra>
// kernel: generator_forward.1
= control target key start
LH: loop header
LB: loop body
LE: loop exit
PB: predicated region body
PF: predicated region fallthrough
CT: control target
= control target key end

     0   :  { %10 = vsyncpa [#allocation8], 0  ;;  %s3731_s0 = inlined_call_operand.vmem [shape: f32[2,128], index: 0, kind: input, shape index: {}]   ;;  %s3732_s1 = inlined_call_operand.hbm [shape: bf16[20,128,128], index: 1, kind: input, shape index: {}]   ;;  %s3733_s2 = inlined_call_operand.hbm [shape: f32[4,128,128], index: 2, kind: input, shape index: {}]   ;;  %s3734_s3 = inlined_call_operand.vmem [shape: f32[4,128], index: 3, kind: input, shape index: {}]   ;;  %s3735_s4 = inlined_call_operand.hbm [shape: f32[4,128], index: 4, kind: input, shape index: {}]   ;;  %s3736_s5 = inlined_call_operand.vmem [shape: f32[56,128], index: 5, kind: output, shape index: {}]  }
   0x1   :  { %11 = vsyncpa [#allocation10], 0  ;;  %s31_s20 = sshll.u32 %s3733_s2, 4  ;;  %s3385_s21 = smov [#allocation9]   ;;  %s32_s20 = int_to_ptr.hbm [resolvable:$true] %s31_s20 }
   0x2   :  { %s33_s22 = sshll.u32 %s3385_s21, 4  ;;  %s18_s25 = sshll.u32 %s3732_s1, 4  ;;  %s34_s22 = int_to_ptr.vmem [resolvable:$true] %s33_s22  ;;  %s19_s25 = int_to_ptr.hbm [resolvable:$true] %s18_s25 }
   0x3   :  { %s3386_s26 = smov 128   ;;  %s3387_s27 = smov 8  }
   0x4   :  { %39 = dma.hbm_to_vmem [thread:$0]  %s32_s20, 8192, %s34_s22, [#allocation10], %s3386_s26, %s3386_s26, %s3387_s27  }
   0x5   :  { %s3388_s28 = smov [#allocation7]   ;;  %s3389_s30 = smov 64  }
   0x6   :  { %s20_s29 = sshll.u32 %s3388_s28, 4  ;;  %s3390_s6 = smov 4   ;;  %s21_s29 = int_to_ptr.vmem [resolvable:$true] %s20_s29 }
   0x7   :  { %26 = dma.hbm_to_vmem [thread:$0]  %s19_s25, 20480, %s21_s29, [#allocation8], %s3389_s30, %s3389_s30, %s3390_s6  }
   0x8   :  { %s47_s8 = sshll.u32 %s3735_s4, 4  ;;  %s3391_s9 = smov [#allocation11]   ;;  %s48_s8 = int_to_ptr.hbm [resolvable:$true] %s47_s8 }
   0x9   :  { %s49_s10 = sshll.u32 %s3391_s9, 4  ;;  %s50_s10 = int_to_ptr.vmem [resolvable:$true] %s49_s10 }
   0xa   :  { %52 = dma.hbm_to_vmem [thread:$0]  %s48_s8, 64, %s50_s10, [#allocation10]  }
   0xb   :  { %3381 = dma.done.wait [#allocation8], 20480  }
   0xc   :  { %3382 = vsyncadd [#allocation8], 4294946816 }
   0xd   :  { %3383 = dma.done.wait [#allocation10], 8256  }
   0xe   :  { %3384 = vsyncadd [#allocation10], 4294959040  ;;  %v3392_v0 = vmov 0.0   ;;  %v3132_v1 = vld [vmem:[#allocation7 + $0x78] sm:$0xff]  ;;  %v3131_v5 = vld [vmem:[#allocation7 + $0x70] sm:$0xff]  ;;  %vm408_vm0 = vcmask 1041408  }
   0xf   :  { %65 = vst [vmem:[#allocation2] sm:$0xff] %v3392_v0  ;;  %v3124_v2 = vld [vmem:[#allocation7 + $0x38] sm:$0xff]  ;;  %170 = vmatpush.bf16.msra.mxu0 %v3132_v1  ;;  %v3123_v6 = vld [vmem:[#allocation7 + $0x30] sm:$0xff]  ;;  %v3130_v9 = vld [vmem:[#allocation7 + $0x68] sm:$0xff]  ;;  %vm1344_vm7 = vcmask 1043456   ;;  %vm1415_vm8 = vcmask 1040384  }
  0x10   :  { %66 = vst [vmem:[#allocation2 + $0x8] sm:$0xff] %v3392_v0  ;;  %v3140_v3 = vld [vmem:[#allocation7 + $0xb8] sm:$0xff]  ;;  %231 = vmatpush.bf16.msra.mxu1 %v3124_v2  ;;  %v3139_v7 = vld [vmem:[#allocation7 + $0xb0] sm:$0xff]  ;;  %v3122_v10 = vld [vmem:[#allocation7 + $0x28] sm:$0xff]  ;;  %vm1871_vm12 = vcmask 1046528  }
  0x11   :  { %67 = vst [vmem:[#allocation3] sm:$0xff] %v3392_v0  ;;  %v3148_v4 = vld [vmem:[#allocation7 + $0xf8] sm:$0xff]  ;;  %312 = vmatpush.bf16.msra.mxu2 %v3140_v3  ;;  %v3147_v8 = vld [vmem:[#allocation7 + $0xf0] sm:$0xff]  ;;  %v3138_v11 = vld [vmem:[#allocation7 + $0xa8] sm:$0xff] }
  0x12   :  { %68 = vst [vmem:[#allocation3 + $0x8] sm:$0xff] %v3392_v0  ;;  %394 = vmatpush.bf16.msra.mxu3 %v3148_v4  ;;  %v3146_v12 = vld [vmem:[#allocation7 + $0xe8] sm:$0xff]  ;;  %v3129_v13 = vld [vmem:[#allocation7 + $0x60] sm:$0xff]  ;;  %v79_v15 = vld [vmem:[%s3731_s0] sm:$0x1] }
  0x13   :  { %69 = vst [vmem:[#allocation4] sm:$0xff] %v3392_v0  ;;  %171 = vmatpush.bf16.msra.mxu0 %v3131_v5  ;;  %v3121_v14 = vld [vmem:[#allocation7 + $0x20] sm:$0xff]  ;;  %v81_v18 = vld [vmem:[%s3731_s0 + $0x1] sm:$0x1]  ;;  %v3128_v19 = vld [vmem:[#allocation7 + $0x58] sm:$0xff] }
  0x14   :  { %70 = vst [vmem:[#allocation4 + $0x8] sm:$0xff] %v3392_v0  ;;  %232 = vmatpush.bf16.msra.mxu1 %v3123_v6  ;;  %v3137_v16 = vld [vmem:[#allocation7 + $0xa0] sm:$0xff]  ;;  %v3120_v20 = vld [vmem:[#allocation7 + $0x18] sm:$0xff]  ;;  %v3127_v23 = vld [vmem:[#allocation7 + $0x50] sm:$0xff] }
  0x15   :  { %71 = vst [vmem:[#allocation5] sm:$0xff] %v3392_v0  ;;  %313 = vmatpush.bf16.msra.mxu2 %v3139_v7  ;;  %v3145_v17 = vld [vmem:[#allocation7 + $0xe0] sm:$0xff]  ;;  %v3136_v21 = vld [vmem:[#allocation7 + $0x98] sm:$0xff]  ;;  %v3119_v24 = vld [vmem:[#allocation7 + $0x10] sm:$0xff] }
  0x16   :  { %72 = vst [vmem:[#allocation5 + $0x8] sm:$0xff] %v3392_v0  ;;  %395 = vmatpush.bf16.msra.mxu3 %v3147_v8  ;;  %v3144_v22 = vld [vmem:[#allocation7 + $0xd8] sm:$0xff]  ;;  %v3135_v25 = vld [vmem:[#allocation7 + $0x90] sm:$0xff]  ;;  %v3126_v27 = vld [vmem:[#allocation7 + $0x48] sm:$0xff] }
  0x17   :  { %73 = vst [vmem:[#allocation5 + $0x10] sm:$0xff] %v3392_v0  ;;  %172 = vmatpush.bf16.msra.mxu0 %v3130_v9  ;;  %v3143_v26 = vld [vmem:[#allocation7 + $0xd0] sm:$0xff]  ;;  %v3118_v28 = vld [vmem:[#allocation7 + $0x8] sm:$0xff]  ;;  %v3125_v31 = vld [vmem:[#allocation7 + $0x40] sm:$0xff] }
  0x18   :  { %74 = vst [vmem:[#allocation6] sm:$0xff] %v3392_v0  ;;  %233 = vmatpush.bf16.msra.mxu1 %v3122_v10  ;;  %v3134_v29 = vld [vmem:[#allocation7 + $0x88] sm:$0xff]  ;;  %v3117_v32 = vld [vmem:[#allocation7] sm:$0xff]  ;;  %v103_v35 = vld [vmem:[#allocation2 + $0xa] sm:$0x3] }
  0x19   :  { %75 = vst [vmem:[#allocation6 + $0x8] sm:$0xff] %v3392_v0  ;;  %314 = vmatpush.bf16.msra.mxu2 %v3138_v11  ;;  %v3142_v30 = vld [vmem:[#allocation7 + $0xc8] sm:$0xff]  ;;  %v3133_v33 = vld [vmem:[#allocation7 + $0x80] sm:$0xff]  ;;  %v84_v36 = vld [vmem:[#allocation2 + $0xb] sm:$0x3] }
  0x1a   :  { %76 = vst [vmem:[#allocation6 + $0x10] sm:$0xff] %v3392_v0  ;;  %396 = vmatpush.bf16.msra.mxu3 %v3146_v12  ;;  %v3141_v34 = vld [vmem:[#allocation7 + $0xc0] sm:$0xff]  ;;  %v245_v39 = vld [vmem:[#allocation2 + $0x9] sm:$0x3]  ;;  %v462_v48 = vld [vmem:[#allocation9 + $0x70] sm:$0xff] }
  0x1b   :  { %77 = vst [vmem:[#allocation6 + $0x18] sm:$0xff] %v3392_v0  ;;  %173 = vmatpush.bf16.msra.mxu0 %v3129_v13  ;;  %v327_v42 = vld [vmem:[#allocation2 + $0x8] sm:$0x3]  ;;  %v461_v49 = vld [vmem:[#allocation9 + $0x68] sm:$0xff]  ;;  %v460_v50 = vld [vmem:[#allocation9 + $0x60] sm:$0xff] }
  0x1c   :  { %78 = vst [vmem:[#allocation6 + $0x20] sm:$0xff] %v3392_v0  ;;  %234 = vmatpush.bf16.msra.mxu1 %v3121_v14  ;;  %v463_v45 = vld [vmem:[#allocation9 + $0x78] sm:$0xff]  ;;  %v458_v52 = vld [vmem:[#allocation9 + $0x50] sm:$0xff]  ;;  %v457_v53 = vld [vmem:[#allocation9 + $0x48] sm:$0xff] }
  0x1d   :  { %80 = vst [vmem:[#allocation2 + $0x2] sm:$0x1] %v79_v15  ;;  %315 = vmatpush.bf16.msra.mxu2 %v3137_v16  ;;  %v459_v51 = vld [vmem:[#allocation9 + $0x58] sm:$0xff]  ;;  %v456_v54 = vld [vmem:[#allocation9 + $0x40] sm:$0xff]  ;;  %v454_v56 = vld [vmem:[#allocation9 + $0x30] sm:$0xff] }
  0x1e   :  { %82 = vst [vmem:[#allocation2 + $0x7] sm:$0x1] %v81_v18  ;;  %397 = vmatpush.bf16.msra.mxu3 %v3145_v17  ;;  %v455_v55 = vld [vmem:[#allocation9 + $0x38] sm:$0xff]  ;;  %v453_v57 = vld [vmem:[#allocation9 + $0x28] sm:$0xff]  ;;  %v452_v58 = vld [vmem:[#allocation9 + $0x20] sm:$0xff] }
  0x1f   :  { %174 = vmatpush.bf16.msra.mxu0 %v3128_v19  ;;  %v451_v59 = vld [vmem:[#allocation9 + $0x18] sm:$0xff]  ;;  %v450_v60 = vld [vmem:[#allocation9 + $0x10] sm:$0xff]  ;;  %v449_v61 = vld [vmem:[#allocation9 + $0x8] sm:$0xff] }
  0x20   :  { %235 = vmatpush.bf16.msra.mxu1 %v3120_v20  ;;  %v448_v62 = vld [vmem:[#allocation9] sm:$0xff] }
  0x21   :  { %316 = vmatpush.bf16.msra.mxu2 %v3136_v21 }
  0x22   :  { %398 = vmatpush.bf16.msra.mxu3 %v3144_v22 }
  0x23   :  { %175 = vmatpush.bf16.msra.mxu0 %v3127_v23 }
  0x24   :  { %236 = vmatpush.bf16.msra.mxu1 %v3119_v24 }
  0x25   :  { %317 = vmatpush.bf16.msra.mxu2 %v3135_v25  ;;  %v102_v37 = vld [vmem:[#allocation2 + $0x2] sm:$0xff] }
  0x26   :  { %399 = vmatpush.bf16.msra.mxu3 %v3143_v26  ;;  %v83_v38 = vld [vmem:[#allocation2 + $0x3] sm:$0xff]  ;;  %v104_v43 = vpack.c.bf16 %v103_v35, %v102_v37 }
  0x27   :  { %176 = vmatpush.bf16.msra.mxu0 %v3126_v27  ;;  %v244_v40 = vld [vmem:[#allocation2 + $0x1] sm:$0xff]  ;;  %v85_v44 = vpack.c.bf16 %v84_v36, %v83_v38 }
  0x28   :  { %237 = vmatpush.bf16.msra.mxu1 %v3118_v28  ;;  %v326_v41 = vld [vmem:[#allocation2] sm:$0xff]  ;;  %v246_v46 = vpack.c.bf16 %v245_v39, %v244_v40 }
  0x29   :  { %318 = vmatpush.bf16.msra.mxu2 %v3134_v29  ;;  %v328_v47 = vpack.c.bf16 %v327_v42, %v326_v41 }
  0x2a   :  { %400 = vmatpush.bf16.msra.mxu3 %v3142_v30 }
  0x2b   :  { %177 = vmatpush.bf16.msra.mxu0 %v3125_v31 }
  0x2c   :  { %238 = vmatpush.bf16.msra.mxu1 %v3117_v32 }
  0x2d   :  { %319 = vmatpush.bf16.msra.mxu2 %v3133_v33 }
  0x2e   :  { %401 = vmatpush.bf16.msra.mxu3 %v3141_v34  ;;  %178 = vmatmul.bf16.vlgmr.msra.gmra.mxu0 %v104_v43  ;;  %v3164_v43 = vld [vmem:[#allocation7 + $0x178] sm:$0xff] }
  0x2f   :  { %464 = vmatpush.msrb.mxu0 %v463_v45  ;;  %239 = vmatmul.bf16.vlgmr.msra.gmra.mxu1 %v85_v44  ;;  %v3156_v44 = vld [vmem:[#allocation7 + $0x138] sm:$0xff] }
  0x30   :  { %485 = vmatpush.msrb.mxu1 %v463_v45  ;;  %320 = vmatmul.bf16.vlgmr.msra.gmra.mxu2 %v246_v46  ;;  %v3180_v45 = vld [vmem:[#allocation7 + $0x1f8] sm:$0xff] }
  0x31   :  { %402 = vmatmul.bf16.vlgmr.msra.gmra.mxu3 %v328_v47  ;;  %465 = vmatpush.msrb.mxu0 %v462_v48  ;;  %v3172_v46 = vld [vmem:[#allocation7 + $0x1b8] sm:$0xff]  ;;  %v3163_v47 = vld [vmem:[#allocation7 + $0x170] sm:$0xff] }
  0x32   :  { %486 = vmatpush.msrb.mxu1 %v462_v48  ;;  %617 = vmatpush.bf16.msrb.mxu2 %v3164_v43  ;;  %v3155_v48 = vld [vmem:[#allocation7 + $0x130] sm:$0xff]  ;;  %v941_v43 = vld [vmem:[#allocation9 + $0xd8] sm:$0xff] }
  0x33   :  { %466 = vmatpush.msrb.mxu0 %v461_v49  ;;  %678 = vmatpush.bf16.msrb.mxu3 %v3156_v44  ;;  %v940_v44 = vld [vmem:[#allocation9 + $0xd0] sm:$0xff] }
  0x34   :  { %487 = vmatpush.msrb.mxu1 %v461_v49  ;;  %v3179_v49 = vld [vmem:[#allocation7 + $0x1f0] sm:$0xff] }
  0x35   :  { %467 = vmatpush.msrb.mxu0 %v460_v50 }
  0x36   :  { %488 = vmatpush.msrb.mxu1 %v460_v50  ;;  %v3171_v50 = vld [vmem:[#allocation7 + $0x1b0] sm:$0xff]  ;;  %618 = vmatpush.bf16.msrb.mxu2 %v3163_v47  ;;  %v937_v47 = vld [vmem:[#allocation9 + $0xb8] sm:$0xff] }
  0x37   :  { %468 = vmatpush.msrb.mxu0 %v459_v51  ;;  %679 = vmatpush.bf16.msrb.mxu3 %v3155_v48  ;;  %v936_v48 = vld [vmem:[#allocation9 + $0xb0] sm:$0xff] }
  0x38   :  { %489 = vmatpush.msrb.mxu1 %v459_v51  ;;  %v3162_v51 = vld [vmem:[#allocation7 + $0x168] sm:$0xff] }
  0x39   :  { %469 = vmatpush.msrb.mxu0 %v458_v52 }
  0x3a   :  { %490 = vmatpush.msrb.mxu1 %v458_v52  ;;  %v3154_v52 = vld [vmem:[#allocation7 + $0x128] sm:$0xff]  ;;  %619 = vmatpush.bf16.msrb.mxu2 %v3162_v51  ;;  %v933_v51 = vld [vmem:[#allocation9 + $0x98] sm:$0xff] }
  0x3b   :  { %470 = vmatpush.msrb.mxu0 %v457_v53  ;;  %680 = vmatpush.bf16.msrb.mxu3 %v3154_v52  ;;  %v932_v52 = vld [vmem:[#allocation9 + $0x90] sm:$0xff] }
  0x3c   :  { %491 = vmatpush.msrb.mxu1 %v457_v53  ;;  %v3178_v53 = vld [vmem:[#allocation7 + $0x1e8] sm:$0xff] }
  0x3d   :  { %471 = vmatpush.msrb.mxu0 %v456_v54 }
  0x3e   :  { %492 = vmatpush.msrb.mxu1 %v456_v54  ;;  %v3170_v54 = vld [vmem:[#allocation7 + $0x1a8] sm:$0xff] }
  0x3f   :  { %472 = vmatpush.msrb.mxu0 %v455_v55 }
  0x40   :  { %493 = vmatpush.msrb.mxu1 %v455_v55  ;;  %v3161_v55 = vld [vmem:[#allocation7 + $0x160] sm:$0xff] }
  0x41   :  { %473 = vmatpush.msrb.mxu0 %v454_v56  ;;  %620 = vmatpush.bf16.msrb.mxu2 %v3161_v55 }
  0x42   :  { %494 = vmatpush.msrb.mxu1 %v454_v56  ;;  %v3153_v56 = vld [vmem:[#allocation7 + $0x120] sm:$0xff] }
  0x43   :  { %474 = vmatpush.msrb.mxu0 %v453_v57  ;;  %681 = vmatpush.bf16.msrb.mxu3 %v3153_v56 }
  0x44   :  { %495 = vmatpush.msrb.mxu1 %v453_v57  ;;  %v3177_v57 = vld [vmem:[#allocation7 + $0x1e0] sm:$0xff] }
  0x45   :  { %475 = vmatpush.msrb.mxu0 %v452_v58 }
  0x46   :  { %496 = vmatpush.msrb.mxu1 %v452_v58  ;;  %v3169_v58 = vld [vmem:[#allocation7 + $0x1a0] sm:$0xff] }
  0x47   :  { %476 = vmatpush.msrb.mxu0 %v451_v59 }
  0x48   :  { %497 = vmatpush.msrb.mxu1 %v451_v59 }
  0x49   :  { %477 = vmatpush.msrb.mxu0 %v450_v60 }
  0x4a   :  { %498 = vmatpush.msrb.mxu1 %v450_v60 }
  0x4b   :  { %478 = vmatpush.msrb.mxu0 %v449_v61 }
  0x4c   :  { %499 = vmatpush.msrb.mxu1 %v449_v61  ;;  %v3160_v61 = vld [vmem:[#allocation7 + $0x158] sm:$0xff] }
  0x4d   :  { %479 = vmatpush.msrb.mxu0 %v448_v62  ;;  %621 = vmatpush.bf16.msrb.mxu2 %v3160_v61 }
  0x4e   :  { %500 = vmatpush.msrb.mxu1 %v448_v62  ;;  %v3152_v62 = vld [vmem:[#allocation7 + $0x118] sm:$0xff] }
  0x4f   :  { %773 = vmatpush.bf16.msra.mxu0 %v3180_v45  ;;  %682 = vmatpush.bf16.msrb.mxu3 %v3152_v62  ;;  %v939_v45 = vld [vmem:[#allocation9 + $0xc8] sm:$0xff] }
  0x50   :  { %834 = vmatpush.bf16.msra.mxu1 %v3172_v46  ;;  %v938_v46 = vld [vmem:[#allocation9 + $0xc0] sm:$0xff] }
  0x53   :  { %774 = vmatpush.bf16.msra.mxu0 %v3179_v49  ;;  %v935_v49 = vld [vmem:[#allocation9 + $0xa8] sm:$0xff] }
  0x54   :  { %835 = vmatpush.bf16.msra.mxu1 %v3171_v50  ;;  %v934_v50 = vld [vmem:[#allocation9 + $0xa0] sm:$0xff] }
  0x57   :  { %775 = vmatpush.bf16.msra.mxu0 %v3178_v53  ;;  %v931_v53 = vld [vmem:[#allocation9 + $0x88] sm:$0xff] }
  0x58   :  { %836 = vmatpush.bf16.msra.mxu1 %v3170_v54  ;;  %v930_v54 = vld [vmem:[#allocation9 + $0x80] sm:$0xff] }
  0x5b   :  { %776 = vmatpush.bf16.msra.mxu0 %v3177_v57 }
  0x5c   :  { %837 = vmatpush.bf16.msra.mxu1 %v3169_v58 }
  0xab   :  { %v179_v63 = vpop.f32.mrf.mxu0 }
  0xac   :  { %v240_v0 = vpop.f32.mrf.mxu1 }
  0xad   :  { %v241_v1 = vadd.f32 %v240_v0, %v179_v63  ;;  %v3176_v63 = vld [vmem:[#allocation7 + $0x1d8] sm:$0xff] }
  0xae   :  { %777 = vmatpush.bf16.msra.mxu0 %v3176_v63 }
  0xb3   :  { %v321_v2 = vpop.f32.mrf.mxu2  ;;  %v181_v5 = vpop.f32.mrf.mxu0 }
  0xb4   :  { %v403_v3 = vpop.f32.mrf.mxu3  ;;  %v325_v4 = vadd.f32 %v321_v2, %v241_v1  ;;  %v242_v6 = vpop.f32.mrf.mxu1  ;;  %v3168_v1 = vld [vmem:[#allocation7 + $0x198] sm:$0xff]  ;;  %v3159_v5 = vld [vmem:[#allocation7 + $0x150] sm:$0xff] }
  0xb5   :  { %838 = vmatpush.bf16.msra.mxu1 %v3168_v1  ;;  %v3151_v6 = vld [vmem:[#allocation7 + $0x110] sm:$0xff]  ;;  %622 = vmatpush.bf16.msrb.mxu2 %v3159_v5 }
  0xb6   :  { %v3438_v7 = vadd.f32 %v403_v3, %v325_v4  ;;  %683 = vmatpush.bf16.msrb.mxu3 %v3151_v6 }
  0xb8   :  { %v409_v8 = vsel %vm408_vm0, %v3438_v7, 0.0  ;;  %v417_v9 = vmul.f32 %v3438_v7, %v3438_v7  ;;  %v427_v10 = vrot.slane %v3438_v7, 5 }
  0xb9   :  { %v410_v11 = vrot.slane %v409_v8, 4 }
  0xba   :  { %v418_v12 = vsel %vm408_vm0, %v417_v9, 0.0  ;;  %v429_v13 = vsel %vm408_vm0, %v427_v10, 0.0  ;;  %v438_v14 = vrot.slane %v417_v9, 5  ;;  %v3167_v9 = vld [vmem:[#allocation7 + $0x190] sm:$0xff] }
  0xbb   :  { %v411_v15 = vadd.f32 %v410_v11, %v409_v8  ;;  %v419_v16 = vrot.slane %v418_v12, 4  ;;  %v430_v17 = vrot.slane %v429_v13, 4  ;;  %v323_v18 = vpop.f32.mrf.mxu2  ;;  %v3175_v8 = vld [vmem:[#allocation7 + $0x1d0] sm:$0xff]  ;;  %839 = vmatpush.bf16.msra.mxu1 %v3167_v9  ;;  %v3158_v11 = vld [vmem:[#allocation7 + $0x148] sm:$0xff] }
  0xbc   :  { %v405_v19 = vpop.f32.mrf.mxu3  ;;  %v440_v20 = vsel %vm408_vm0, %v438_v14, 0.0  ;;  %778 = vmatpush.bf16.msra.mxu0 %v3175_v8  ;;  %v3166_v14 = vld [vmem:[#allocation7 + $0x188] sm:$0xff]  ;;  %623 = vmatpush.bf16.msrb.mxu2 %v3158_v11  ;;  %v3165_v18 = vld [vmem:[#allocation7 + $0x180] sm:$0xff] }
  0xbd   :  { %v412_v21 = vrot.slane %v411_v15, 2  ;;  %v431_v22 = vadd.f32 %v430_v17, %v429_v13  ;;  %v420_v23 = vadd.f32 %v419_v16, %v418_v12  ;;  %v441_v24 = vrot.slane %v440_v20, 4  ;;  %v3150_v12 = vld [vmem:[#allocation7 + $0x108] sm:$0xff]  ;;  %v3149_v16 = vld [vmem:[#allocation7 + $0x100] sm:$0xff] }
  0xbe   :  { %v3174_v13 = vld [vmem:[#allocation7 + $0x1c8] sm:$0xff]  ;;  %684 = vmatpush.bf16.msrb.mxu3 %v3150_v12  ;;  %v3173_v17 = vld [vmem:[#allocation7 + $0x1c0] sm:$0xff] }
  0xbf   :  { %v413_v25 = vadd.f32 %v412_v21, %v411_v15  ;;  %v432_v26 = vrot.slane %v431_v22, 2  ;;  %v421_v27 = vrot.slane %v420_v23, 2  ;;  %v442_v28 = vadd.f32 %v441_v24, %v440_v20  ;;  %v3157_v15 = vld [vmem:[#allocation7 + $0x140] sm:$0xff]  ;;  %840 = vmatpush.bf16.msra.mxu1 %v3166_v14 }
  0xc0   :  { %779 = vmatpush.bf16.msra.mxu0 %v3174_v13  ;;  %624 = vmatpush.bf16.msrb.mxu2 %v3157_v15 }
  0xc1   :  { %v414_v29 = vrot.slane %v413_v25, 1  ;;  %v433_v30 = vadd.f32 %v432_v26, %v431_v22  ;;  %v422_v31 = vadd.f32 %v421_v27, %v420_v23  ;;  %v443_v32 = vrot.slane %v442_v28, 2  ;;  %v945_v22 = vld [vmem:[#allocation9 + $0xf8] sm:$0xff] }
  0xc2   :  { %685 = vmatpush.bf16.msrb.mxu3 %v3149_v16 }
  0xc3   :  { %v434_v33 = vrot.slane %v433_v30, 1  ;;  %v423_v34 = vrot.slane %v422_v31, 1  ;;  %v444_v35 = vadd.f32 %v443_v32, %v442_v28  ;;  %v415_v36 = vadd.f32 %v414_v29, %v413_v25  ;;  %841 = vmatpush.bf16.msra.mxu1 %v3165_v18  ;;  %v508_v25 = vld [vmem:[%s3734_s3] sm:$0x1]  ;;  %v521_v29 = vld [vmem:[#allocation11] sm:$0x1] }
  0xc4   :  { %780 = vmatpush.bf16.msra.mxu0 %v3173_v17  ;;  %946 = vmatpush.msra.mxu2 %v945_v22 }
  0xc5   :  { %v435_v37 = vadd.f32 %v434_v33, %v433_v30  ;;  %v445_v38 = vrot.slane %v444_v35, 1  ;;  %v424_v40 = vadd.f32 %v423_v34, %v422_v31 }
  0xc6   :  { %967 = vmatpush.msra.mxu3 %v945_v22 }
  0xc7   :  { %v436_v39 = vadd.f32 %v435_v37, %v415_v36  ;;  %v446_v41 = vadd.f32 %v445_v38, %v444_v35 }
  0xc9   :  { %480 = vmatmul.f32.vlgmr.msrb.gmra.mxu0 %v436_v39  ;;  %v447_v42 = vadd.f32 %v446_v41, %v424_v40  ;;  %v944_v41 = vld [vmem:[#allocation9 + $0xf0] sm:$0xff] }
  0xca   :  { %947 = vmatpush.msra.mxu2 %v944_v41  ;;  %968 = vmatpush.msra.mxu3 %v944_v41 }
  0xcb   :  { %501 = vmatmul.f32.vlgmr.msrb.gmra.mxu1 %v447_v42  ;;  %v943_v42 = vld [vmem:[#allocation9 + $0xe8] sm:$0xff] }
  0xcc   :  { %948 = vmatpush.msra.mxu2 %v943_v42  ;;  %969 = vmatpush.msra.mxu3 %v943_v42 }
 0x146   :  { %v481_v59 = vpop.f32.mrf.mxu0 }
 0x147   :  { %v484_v60 = vmul.f32 0.125, %v481_v59 }
 0x148   :  { %v502_v0 = vpop.f32.mrf.mxu1 }
 0x149   :  { %v506_v2 = vmul.f32 %v484_v60, %v484_v60  ;;  %v505_v3 = vmul.f32 0.125, %v502_v0 }
 0x14b   :  { %v507_v4 = vsub.f32 %v505_v3, %v506_v2 }
 0x14d   :  { %v509_v10 = vadd.f32 1e-05, %v507_v4 }
 0x14f   :  { %3285 = vrsqrt.f32 %v509_v10  ;;  %vm516_vm2 = vweird.f32 %v509_v10 }
 0x155   :  { %v3286_v19 = vpop.eup %3285 }
 0x156   :  { %v511_v20 = vmul.f32 %v3286_v19, %v509_v10  ;;  %vm517_vm1 = vweird.f32 %v3286_v19 }
 0x157   :  { %vm518_vm3 = vmor %vm516_vm2, %vm517_vm1 }
 0x158   :  { %v512_v21 = vmul.f32 %v3286_v19, %v511_v20 }
 0x15a   :  { %v513_v23 = vmul.f32 0.5, %v512_v21 }
 0x15c   :  { %v514_v24 = vsub.f32 1.5, %v513_v23 }
 0x15e   :  { %v515_v26 = vmul.f32 %v3286_v19, %v514_v24 }
 0x160   :  { %v519_v27 = vsel %vm518_vm3, %v3286_v19, %v515_v26 }
 0x161   :  { %v520_v28 = vmul.f32 %v519_v27, %v508_v25 }
 0x163   :  { %v522_v30 = vmul.f32 %v520_v28, %v484_v60  ;;  %v524_v31 = vperm.slane %v520_v28, 0 }
 0x165   :  { %v523_v32 = vsub.f32 %v521_v29, %v522_v30  ;;  %v525_v33 = vmul.f32 %v524_v31, %v3438_v7  ;;  %v942_v7 = vld [vmem:[#allocation9 + $0xe0] sm:$0xff] }
 0x166   :  { %949 = vmatpush.msra.mxu2 %v942_v7  ;;  %970 = vmatpush.msra.mxu3 %v942_v7 }
 0x167   :  { %v526_v34 = vperm.slane %v523_v32, 0 }
 0x168   :  { %950 = vmatpush.msra.mxu2 %v941_v43  ;;  %971 = vmatpush.msra.mxu3 %v941_v43 }
 0x169   :  { %v527_v35 = vadd.f32 %v526_v34, %v525_v33 }
 0x16a   :  { %951 = vmatpush.msra.mxu2 %v940_v44  ;;  %972 = vmatpush.msra.mxu3 %v940_v44 }
 0x16b   :  { %v528_v36 = vmax.f32 %v527_v35, 0.0 }
 0x16c   :  { %952 = vmatpush.msra.mxu2 %v939_v45  ;;  %973 = vmatpush.msra.mxu3 %v939_v45 }
 0x16d   :  { %529 = vst [vmem:[#allocation3 + $0x1] sm:$0x3] %v528_v36 }
 0x16e   :  { %530 = vst [vmem:[#allocation3] sm:$0x60] %v528_v36  ;;  %953 = vmatpush.msra.mxu2 %v938_v46  ;;  %974 = vmatpush.msra.mxu3 %v938_v46 }
 0x170   :  { %954 = vmatpush.msra.mxu2 %v937_v47  ;;  %975 = vmatpush.msra.mxu3 %v937_v47 }
 0x172   :  { %955 = vmatpush.msra.mxu2 %v936_v48  ;;  %976 = vmatpush.msra.mxu3 %v936_v48 }
 0x174   :  { %956 = vmatpush.msra.mxu2 %v935_v49  ;;  %977 = vmatpush.msra.mxu3 %v935_v49 }
 0x175   :  { %v550_v37 = vld [vmem:[#allocation3] sm:$0xff] }
 0x176   :  { %v531_v38 = vld [vmem:[#allocation3 + $0x1] sm:$0xff]  ;;  %v551_v39 = vpack.c.bf16 %v550_v37, %v550_v37  ;;  %957 = vmatpush.msra.mxu2 %v934_v50  ;;  %978 = vmatpush.msra.mxu3 %v934_v50 }
 0x177   :  { %v532_v40 = vpack.c.bf16 %v531_v38, %v531_v38 }
 0x178   :  { %625 = vmatmul.bf16.vlgmr.msrb.gmra.mxu2 %v551_v39  ;;  %781 = vmatmul.bf16.vlgmr.msra.gmra.mxu0 %v551_v39 }
 0x179   :  { %686 = vmatmul.bf16.vlgmr.msrb.gmra.mxu3 %v532_v40  ;;  %842 = vmatmul.bf16.vlgmr.msra.gmra.mxu1 %v532_v40 }
 0x17a   :  { %958 = vmatpush.msra.mxu2 %v933_v51  ;;  %979 = vmatpush.msra.mxu3 %v933_v51 }
 0x17c   :  { %959 = vmatpush.msra.mxu2 %v932_v52  ;;  %980 = vmatpush.msra.mxu3 %v932_v52 }
 0x17e   :  { %960 = vmatpush.msra.mxu2 %v931_v53  ;;  %981 = vmatpush.msra.mxu3 %v931_v53 }
 0x180   :  { %961 = vmatpush.msra.mxu2 %v930_v54  ;;  %982 = vmatpush.msra.mxu3 %v930_v54 }
 0x1f5   :  { %v782_v55 = vpop.f32.mrf.mxu0 }
 0x1f6   :  { %v843_v56 = vpop.f32.mrf.mxu1 }
 0x1f7   :  { %v3452_v57 = vadd.f32 %v843_v56, %v782_v55 }
 0x1f9   :  { %v887_v58 = vrot.slane %v3452_v57, 1  ;;  %v897_v59 = vmul.f32 %v3452_v57, %v3452_v57  ;;  %v909_v60 = vrot.slane %v3452_v57, 5 }
 0x1fb   :  { %v889_v61 = vsel %vm408_vm0, %v887_v58, 0.0  ;;  %v899_v62 = vrot.slane %v897_v59, 1  ;;  %v911_v63 = vsel %vm408_vm0, %v909_v60, 0.0  ;;  %v919_v0 = vrot.slane %v897_v59, 5  ;;  %v626_v1 = vpop.f32.mrf.mxu2 }
 0x1fc   :  { %v687_v2 = vpop.f32.mrf.mxu3  ;;  %v890_v3 = vrot.slane %v889_v61, 4  ;;  %v912_v4 = vrot.slane %v911_v63, 4 }
 0x1fd   :  { %v3460_v5 = vadd.f32 %v687_v2, %v626_v1  ;;  %v901_v6 = vsel %vm408_vm0, %v899_v62, 0.0  ;;  %v921_v8 = vsel %vm408_vm0, %v919_v0, 0.0  ;;  %v784_v12 = vpop.f32.mrf.mxu0 }
 0x1fe   :  { %v891_v9 = vadd.f32 %v890_v3, %v889_v61  ;;  %v902_v10 = vrot.slane %v901_v6, 4  ;;  %v922_v11 = vrot.slane %v921_v8, 4  ;;  %v845_v13 = vpop.f32.mrf.mxu1  ;;  %v913_v14 = vadd.f32 %v912_v4, %v911_v63  ;;  %v3212_v12 = vld [vmem:[#allocation7 + $0x2f8] sm:$0xff] }
 0x1ff   :  { %v847_v15 = vsel %vm408_vm0, %v3460_v5, 0.0  ;;  %v855_v16 = vmul.f32 %v3460_v5, %v3460_v5  ;;  %v865_v17 = vrot.slane %v3460_v5, 4  ;;  %v3204_v13 = vld [vmem:[#allocation7 + $0x2b8] sm:$0xff]  ;;  %1268 = vmatpush.bf16.msrb.mxu2 %v3212_v12  ;;  %v1457_v12 = vld [vmem:[#allocation9 + $0x170] sm:$0xff] }
 0x200   :  { %v892_v18 = vrot.slane %v891_v9, 2  ;;  %v903_v19 = vadd.f32 %v902_v10, %v901_v6  ;;  %v848_v20 = vrot.slane %v847_v15, 4  ;;  %v923_v24 = vadd.f32 %v922_v11, %v921_v8  ;;  %v3196_v10 = vld [vmem:[#allocation7 + $0x278] sm:$0xff]  ;;  %1330 = vmatpush.bf16.msrb.mxu3 %v3204_v13  ;;  %v1456_v13 = vld [vmem:[#allocation9 + $0x168] sm:$0xff] }
 0x201   :  { %v856_v21 = vsel %vm408_vm0, %v855_v16, 0.0  ;;  %v867_v22 = vsel %vm408_vm0, %v865_v17, 0.0  ;;  %v876_v23 = vrot.slane %v855_v16, 4  ;;  %v914_v31 = vrot.slane %v913_v14, 2  ;;  %v3188_v11 = vld [vmem:[#allocation7 + $0x238] sm:$0xff]  ;;  %1110 = vmatpush.bf16.msrb.mxu0 %v3196_v10  ;;  %v3211_v16 = vld [vmem:[#allocation7 + $0x2f0] sm:$0xff] }
 0x202   :  { %v849_v25 = vadd.f32 %v848_v20, %v847_v15  ;;  %v857_v26 = vrot.slane %v856_v21, 4  ;;  %v868_v27 = vrot.slane %v867_v22, 4  ;;  %v904_v32 = vrot.slane %v903_v19, 2  ;;  %1172 = vmatpush.bf16.msrb.mxu1 %v3188_v11  ;;  %v3187_v15 = vld [vmem:[#allocation7 + $0x230] sm:$0xff]  ;;  %v3210_v20 = vld [vmem:[#allocation7 + $0x2e8] sm:$0xff] }
 0x203   :  { %v878_v28 = vsel %vm408_vm0, %v876_v23, 0.0  ;;  %v628_v29 = vpop.f32.mrf.mxu2  ;;  %v893_v37 = vadd.f32 %v892_v18, %v891_v9  ;;  %v924_v38 = vrot.slane %v923_v24, 2  ;;  %v915_v7 = vadd.f32 %v914_v31, %v913_v14  ;;  %v3195_v14 = vld [vmem:[#allocation7 + $0x270] sm:$0xff]  ;;  %1269 = vmatpush.bf16.msrb.mxu2 %v3211_v16  ;;  %v3194_v18 = vld [vmem:[#allocation7 + $0x268] sm:$0xff] }
 0x204   :  { %v689_v30 = vpop.f32.mrf.mxu3  ;;  %v850_v33 = vrot.slane %v849_v25, 2  ;;  %v858_v34 = vadd.f32 %v857_v26, %v856_v21  ;;  %v869_v35 = vadd.f32 %v868_v27, %v867_v22  ;;  %v879_v36 = vrot.slane %v878_v28, 4  ;;  %v3203_v17 = vld [vmem:[#allocation7 + $0x2b0] sm:$0xff]  ;;  %v3202_v22 = vld [vmem:[#allocation7 + $0x2a8] sm:$0xff]  ;;  %v3193_v27 = vld [vmem:[#allocation7 + $0x260] sm:$0xff] }
 0x205   :  { %v905_v43 = vadd.f32 %v904_v32, %v903_v19  ;;  %v894_v48 = vrot.slane %v893_v37, 1  ;;  %v925_v52 = vadd.f32 %v924_v38, %v923_v24  ;;  %v916_v53 = vrot.slane %v915_v7, 1  ;;  %1111 = vmatpush.bf16.msrb.mxu0 %v3195_v14  ;;  %1331 = vmatpush.bf16.msrb.mxu3 %v3203_v17  ;;  %v3186_v19 = vld [vmem:[#allocation7 + $0x228] sm:$0xff]  ;;  %v3209_v29 = vld [vmem:[#allocation7 + $0x2e0] sm:$0xff]  ;;  %v3183_v38 = vld [vmem:[#allocation7 + $0x210] sm:$0xff] }
 0x206   :  { %v851_v39 = vadd.f32 %v850_v33, %v849_v25  ;;  %v859_v40 = vrot.slane %v858_v34, 2  ;;  %v870_v41 = vrot.slane %v869_v35, 2  ;;  %v880_v42 = vadd.f32 %v879_v36, %v878_v28  ;;  %1173 = vmatpush.bf16.msrb.mxu1 %v3187_v15  ;;  %v3185_v28 = vld [vmem:[#allocation7 + $0x220] sm:$0xff]  ;;  %v3192_v33 = vld [vmem:[#allocation7 + $0x258] sm:$0xff]  ;;  %v1453_v16 = vld [vmem:[#allocation9 + $0x150] sm:$0xff] }
 0x207   :  { %v906_v58 = vrot.slane %v905_v43, 1  ;;  %v895_v59 = vadd.f32 %v894_v48, %v893_v37  ;;  %v926_v63 = vrot.slane %v925_v52, 1  ;;  %v917_v1 = vadd.f32 %v916_v53, %v915_v7  ;;  %1270 = vmatpush.bf16.msrb.mxu2 %v3210_v20  ;;  %v3201_v30 = vld [vmem:[#allocation7 + $0x2a0] sm:$0xff]  ;;  %v3200_v36 = vld [vmem:[#allocation7 + $0x298] sm:$0xff]  ;;  %v3191_v37 = vld [vmem:[#allocation7 + $0x250] sm:$0xff] }
 0x208   :  { %v852_v44 = vrot.slane %v851_v39, 1  ;;  %v860_v45 = vadd.f32 %v859_v40, %v858_v34  ;;  %v871_v46 = vadd.f32 %v870_v41, %v869_v35  ;;  %v881_v47 = vrot.slane %v880_v42, 2  ;;  %v3184_v34 = vld [vmem:[#allocation7 + $0x218] sm:$0xff]  ;;  %v3199_v40 = vld [vmem:[#allocation7 + $0x290] sm:$0xff]  ;;  %v3190_v41 = vld [vmem:[#allocation7 + $0x248] sm:$0xff] }
 0x209   :  { %v907_v3 = vadd.f32 %v906_v58, %v905_v43  ;;  %v927_v8 = vadd.f32 %v926_v63, %v925_v52  ;;  %1112 = vmatpush.bf16.msrb.mxu0 %v3194_v18  ;;  %1332 = vmatpush.bf16.msrb.mxu3 %v3202_v22  ;;  %v3208_v35 = vld [vmem:[#allocation7 + $0x2d8] sm:$0xff]  ;;  %v3206_v7 = vld [vmem:[#allocation7 + $0x2c8] sm:$0xff]  ;;  %v990_v53 = vld [vmem:[%s3734_s3 + $0x1] sm:$0x1] }
 0x20a   :  { %v872_v49 = vrot.slane %v871_v46, 1  ;;  %v861_v50 = vrot.slane %v860_v45, 1  ;;  %v882_v51 = vadd.f32 %v881_v47, %v880_v42  ;;  %v853_v54 = vadd.f32 %v852_v44, %v851_v39  ;;  %1174 = vmatpush.bf16.msrb.mxu1 %v3186_v19  ;;  %v3207_v39 = vld [vmem:[#allocation7 + $0x2d0] sm:$0xff]  ;;  %v3182_v42 = vld [vmem:[#allocation7 + $0x208] sm:$0xff]  ;;  %v3181_v47 = vld [vmem:[#allocation7 + $0x200] sm:$0xff] }
 0x20b   :  { %1271 = vmatpush.bf16.msrb.mxu2 %v3209_v29  ;;  %v3198_v44 = vld [vmem:[#allocation7 + $0x288] sm:$0xff]  ;;  %v1003_v58 = vld [vmem:[#allocation11 + $0x1] sm:$0x1]  ;;  %v1454_v15 = vld [vmem:[#allocation9 + $0x158] sm:$0xff] }
 0x20c   :  { %v873_v55 = vadd.f32 %v872_v49, %v871_v46  ;;  %v883_v56 = vrot.slane %v882_v51, 1  ;;  %v862_v61 = vadd.f32 %v861_v50, %v860_v45  ;;  %v3189_v46 = vld [vmem:[#allocation7 + $0x240] sm:$0xff]  ;;  %v1452_v17 = vld [vmem:[#allocation9 + $0x148] sm:$0xff]  ;;  %v1450_v19 = vld [vmem:[#allocation9 + $0x138] sm:$0xff] }
 0x20d   :  { %1113 = vmatpush.bf16.msrb.mxu0 %v3193_v27  ;;  %1333 = vmatpush.bf16.msrb.mxu3 %v3201_v30  ;;  %v3205_v49 = vld [vmem:[#allocation7 + $0x2c0] sm:$0xff]  ;;  %v1449_v20 = vld [vmem:[#allocation9 + $0x130] sm:$0xff] }
 0x20e   :  { %v874_v60 = vadd.f32 %v873_v55, %v853_v54  ;;  %v884_v62 = vadd.f32 %v883_v56, %v882_v51  ;;  %1175 = vmatpush.bf16.msrb.mxu1 %v3185_v28  ;;  %v3197_v50 = vld [vmem:[#allocation7 + $0x280] sm:$0xff] }
 0x20f   :  { %1272 = vmatpush.bf16.msrb.mxu2 %v3208_v35  ;;  %v1455_v14 = vld [vmem:[#allocation9 + $0x160] sm:$0xff] }
 0x210   :  { %v896_v0 = vadd.f32 %v895_v59, %v874_v60  ;;  %v885_v2 = vadd.f32 %v884_v62, %v862_v61  ;;  %v1451_v18 = vld [vmem:[#allocation9 + $0x140] sm:$0xff] }
 0x211   :  { %1114 = vmatpush.bf16.msrb.mxu0 %v3192_v33  ;;  %1334 = vmatpush.bf16.msrb.mxu3 %v3200_v36  ;;  %v1447_v22 = vld [vmem:[#allocation9 + $0x120] sm:$0xff] }
 0x212   :  { %v918_v4 = vadd.f32 %v917_v1, %v896_v0  ;;  %v908_v6 = vadd.f32 %v907_v3, %v885_v2  ;;  %1176 = vmatpush.bf16.msrb.mxu1 %v3184_v34  ;;  %v1443_v29 = vld [vmem:[#allocation9 + $0x100] sm:$0xff] }
 0x213   :  { %1273 = vmatpush.bf16.msrb.mxu2 %v3207_v39 }
 0x214   :  { %962 = vmatmul.f32.vlgmr.msra.gmra.mxu2 %v918_v4  ;;  %v928_v9 = vadd.f32 %v927_v8, %v908_v6 }
 0x215   :  { %1115 = vmatpush.bf16.msrb.mxu0 %v3191_v37  ;;  %1335 = vmatpush.bf16.msrb.mxu3 %v3199_v40 }
 0x216   :  { %983 = vmatmul.f32.vlgmr.msra.gmra.mxu3 %v928_v9  ;;  %1177 = vmatpush.bf16.msrb.mxu1 %v3183_v38 }
 0x217   :  { %1274 = vmatpush.bf16.msrb.mxu2 %v3206_v7 }
 0x219   :  { %1116 = vmatpush.bf16.msrb.mxu0 %v3190_v41  ;;  %1336 = vmatpush.bf16.msrb.mxu3 %v3198_v44 }
 0x21a   :  { %1178 = vmatpush.bf16.msrb.mxu1 %v3182_v42 }
 0x21b   :  { %1275 = vmatpush.bf16.msrb.mxu2 %v3205_v49 }
 0x21d   :  { %1117 = vmatpush.bf16.msrb.mxu0 %v3189_v46  ;;  %1337 = vmatpush.bf16.msrb.mxu3 %v3197_v50 }
 0x21e   :  { %1179 = vmatpush.bf16.msrb.mxu1 %v3181_v47 }
 0x297   :  { %v963_v21 = vpop.f32.mrf.mxu2 }
 0x298   :  { %v3472_v23 = vmul.f32 0.03125, %v963_v21  ;;  %v1448_v21 = vld [vmem:[#allocation9 + $0x128] sm:$0xff] }
 0x299   :  { %v984_v24 = vpop.f32.mrf.mxu3 }
 0x29a   :  { %v988_v25 = vmul.f32 %v3472_v23, %v3472_v23  ;;  %v987_v26 = vmul.f32 0.03125, %v984_v24  ;;  %v1445_v24 = vld [vmem:[#allocation9 + $0x110] sm:$0xff] }
 0x29c   :  { %v989_v31 = vsub.f32 %v987_v26, %v988_v25  ;;  %v1444_v25 = vld [vmem:[#allocation9 + $0x108] sm:$0xff] }
 0x29e   :  { %v991_v32 = vadd.f32 1e-05, %v989_v31 }
 0x2a0   :  { %3287 = vrsqrt.f32 %v991_v32  ;;  %vm998_vm5 = vweird.f32 %v991_v32 }
 0x2a6   :  { %v3288_v43 = vpop.eup %3287 }
 0x2a7   :  { %v993_v45 = vmul.f32 %v3288_v43, %v991_v32  ;;  %vm999_vm4 = vweird.f32 %v3288_v43 }
 0x2a8   :  { %vm1000_vm6 = vmor %vm998_vm5, %vm999_vm4 }
 0x2a9   :  { %v994_v48 = vmul.f32 %v3288_v43, %v993_v45 }
 0x2ab   :  { %v995_v51 = vmul.f32 0.5, %v994_v48 }
 0x2ad   :  { %v996_v52 = vsub.f32 1.5, %v995_v51 }
 0x2af   :  { %v997_v54 = vmul.f32 %v3288_v43, %v996_v52 }
 0x2b1   :  { %v1001_v55 = vsel %vm1000_vm6, %v3288_v43, %v997_v54 }
 0x2b2   :  { %v1002_v56 = vmul.f32 %v1001_v55, %v990_v53 }
 0x2b4   :  { %v1004_v59 = vmul.f32 %v1002_v56, %v3472_v23  ;;  %v1006_v60 = vperm.slane %v1002_v56, 0  ;;  %v1446_v23 = vld [vmem:[#allocation9 + $0x118] sm:$0xff] }
 0x2b6   :  { %v1005_v61 = vsub.f32 %v1003_v58, %v1004_v59  ;;  %v1007_v62 = vmul.f32 %v1006_v60, %v3460_v5  ;;  %v1015_v0 = vmul.f32 %v1006_v60, %v3452_v57  ;;  %v1458_v57 = vld [vmem:[#allocation9 + $0x178] sm:$0xff] }
 0x2b7   :  { %1459 = vmatpush.msra.mxu0 %v1458_v57  ;;  %1480 = vmatpush.msra.mxu1 %v1458_v57 }
 0x2b8   :  { %v1008_v63 = vperm.slane %v1005_v61, 0 }
 0x2b9   :  { %1460 = vmatpush.msra.mxu0 %v1457_v12  ;;  %1481 = vmatpush.msra.mxu1 %v1457_v12 }
 0x2ba   :  { %v1009_v1 = vadd.f32 %v1008_v63, %v1007_v62  ;;  %v1016_v2 = vadd.f32 %v1015_v0, %v1008_v63 }
 0x2bb   :  { %1461 = vmatpush.msra.mxu0 %v1456_v13  ;;  %1482 = vmatpush.msra.mxu1 %v1456_v13 }
 0x2bc   :  { %v1010_v3 = vmax.f32 %v1009_v1, 0.0  ;;  %v1017_v4 = vmax.f32 %v1016_v2, 0.0 }
 0x2bd   :  { %1462 = vmatpush.msra.mxu0 %v1455_v14  ;;  %1483 = vmatpush.msra.mxu1 %v1455_v14 }
 0x2be   :  { %1011 = vst [vmem:[#allocation4 + $0x1] sm:$0x1] %v1010_v3 }
 0x2bf   :  { %1012 = vst [vmem:[#allocation4 + $0x2] sm:$0x2] %v1010_v3  ;;  %1463 = vmatpush.msra.mxu0 %v1454_v15  ;;  %1484 = vmatpush.msra.mxu1 %v1454_v15 }
 0x2c0   :  { %1013 = vst [vmem:[#allocation4 + $0x3] sm:$0x10] %v1010_v3 }
 0x2c1   :  { %1014 = vst [vmem:[#allocation4 + $0x4] sm:$0x20] %v1010_v3  ;;  %1464 = vmatpush.msra.mxu0 %v1453_v16  ;;  %1485 = vmatpush.msra.mxu1 %v1453_v16 }
 0x2c2   :  { %1018 = vst [vmem:[#allocation4 + $0x1] sm:$0x2] %v1017_v4 }
 0x2c3   :  { %1019 = vst [vmem:[#allocation4 + $0x2] sm:$0x4] %v1017_v4  ;;  %1465 = vmatpush.msra.mxu0 %v1452_v17  ;;  %1486 = vmatpush.msra.mxu1 %v1452_v17 }
 0x2c4   :  { %1020 = vst [vmem:[#allocation4 + $0x3] sm:$0x20] %v1017_v4 }
 0x2c5   :  { %1021 = vst [vmem:[#allocation4 + $0x4] sm:$0x40] %v1017_v4  ;;  %1466 = vmatpush.msra.mxu0 %v1451_v18  ;;  %1487 = vmatpush.msra.mxu1 %v1451_v18 }
 0x2c7   :  { %1467 = vmatpush.msra.mxu0 %v1450_v19  ;;  %1488 = vmatpush.msra.mxu1 %v1450_v19 }
 0x2c9   :  { %1468 = vmatpush.msra.mxu0 %v1449_v20  ;;  %1489 = vmatpush.msra.mxu1 %v1449_v20 }
 0x2ca   :  { %v1042_v6 = vld [vmem:[#allocation4] sm:$0xff] }
 0x2cb   :  { %v1022_v8 = vld [vmem:[#allocation4 + $0x1] sm:$0xff]  ;;  %1469 = vmatpush.msra.mxu0 %v1448_v21  ;;  %1490 = vmatpush.msra.mxu1 %v1448_v21 }
 0x2cc   :  { %v1043_v9 = vld [vmem:[#allocation4 + $0x8] sm:$0xf] }
 0x2cd   :  { %v1023_v10 = vld [vmem:[#allocation4 + $0x9] sm:$0xf]  ;;  %v1044_v5 = vpack.c.bf16 %v1043_v9, %v1042_v6  ;;  %1470 = vmatpush.msra.mxu0 %v1447_v22  ;;  %1491 = vmatpush.msra.mxu1 %v1447_v22 }
 0x2ce   :  { %v1024_v11 = vpack.c.bf16 %v1023_v10, %v1022_v8 }
 0x2cf   :  { %1118 = vmatmul.bf16.vlgmr.msrb.gmra.mxu0 %v1044_v5  ;;  %1276 = vmatmul.bf16.vlgmr.msrb.gmra.mxu2 %v1044_v5 }
 0x2d0   :  { %1180 = vmatmul.bf16.vlgmr.msrb.gmra.mxu1 %v1024_v11  ;;  %1338 = vmatmul.bf16.vlgmr.msrb.gmra.mxu3 %v1024_v11 }
 0x2d1   :  { %1471 = vmatpush.msra.mxu0 %v1446_v23  ;;  %1492 = vmatpush.msra.mxu1 %v1446_v23 }
 0x2d3   :  { %1472 = vmatpush.msra.mxu0 %v1445_v24  ;;  %1493 = vmatpush.msra.mxu1 %v1445_v24 }
 0x2d5   :  { %1473 = vmatpush.msra.mxu0 %v1444_v25  ;;  %1494 = vmatpush.msra.mxu1 %v1444_v25 }
 0x2d7   :  { %1474 = vmatpush.msra.mxu0 %v1443_v29  ;;  %1495 = vmatpush.msra.mxu1 %v1443_v29 }
 0x34c   :  { %v1119_v26 = vpop.f32.mrf.mxu0 }
 0x34d   :  { %v1181_v27 = vpop.f32.mrf.mxu1 }
 0x34e   :  { %v3482_v28 = vadd.f32 %v1181_v27, %v1119_v26 }
 0x350   :  { %v1345_v30 = vsel %vm1344_vm7, %v3482_v28, 0.0  ;;  %v1353_v31 = vmul.f32 %v3482_v28, %v3482_v28  ;;  %v1364_v44 = vrot.slane %v3482_v28, 6 }
 0x351   :  { %v1346_v32 = vrot.slane %v1345_v30, 4 }
 0x352   :  { %v1354_v33 = vsel %vm1344_vm7, %v1353_v31, 0.0  ;;  %v1277_v35 = vpop.f32.mrf.mxu2  ;;  %v1379_v47 = vrot.slane %v1353_v31, 6 }
 0x353   :  { %v1355_v34 = vrot.slane %v1354_v33, 4  ;;  %v1339_v36 = vpop.f32.mrf.mxu3  ;;  %v1347_v40 = vadd.f32 %v1346_v32, %v1345_v30 }
 0x354   :  { %v3489_v37 = vadd.f32 %v1339_v36, %v1277_v35  ;;  %v1121_v38 = vpop.f32.mrf.mxu0 }
 0x355   :  { %v1183_v39 = vpop.f32.mrf.mxu1  ;;  %v1356_v42 = vadd.f32 %v1355_v34, %v1354_v33  ;;  %v1348_v50 = vrot.slane %v1347_v40, 2 }
 0x356   :  { %v3491_v41 = vadd.f32 %v1183_v39, %v1121_v38  ;;  %v1392_v7 = vrot.slane %v3489_v37, 1  ;;  %v1402_v43 = vmul.f32 %v3489_v37, %v3489_v37  ;;  %v1416_v9 = vrot.slane %v3489_v37, 7 }
 0x357   :  { %v1357_v54 = vrot.slane %v1356_v42, 2  ;;  %v1349_v2 = vadd.f32 %v1348_v50, %v1347_v40 }
 0x358   :  { %v1365_v45 = vrot.slane %v3491_v41, 6  ;;  %v1376_v46 = vmul.f32 %v3491_v41, %v3491_v41  ;;  %v1394_v48 = vsel %vm1344_vm7, %v1392_v7, 0.0  ;;  %v1404_v49 = vrot.slane %v1402_v43, 1 }
 0x359   :  { %v1395_v51 = vrot.slane %v1394_v48, 4  ;;  %v1358_v11 = vadd.f32 %v1357_v54, %v1356_v42  ;;  %v1430_v13 = vrot.slane %v1402_v43, 7  ;;  %v1350_v20 = vrot.slane %v1349_v2, 1 }
 0x35a   :  { %v1366_v52 = vsel %vm408_vm0, %v1364_v44, %v1365_v45  ;;  %v1380_v53 = vrot.slane %v1376_v46, 6  ;;  %v1406_v55 = vsel %vm1344_vm7, %v1404_v49, 0.0  ;;  %v1279_v62 = vpop.f32.mrf.mxu2 }
 0x35b   :  { %v1368_v56 = vsel %vm1344_vm7, %v1366_v52, 0.0  ;;  %v1396_v58 = vadd.f32 %v1395_v51, %v1394_v48  ;;  %v1407_v59 = vrot.slane %v1406_v55, 4  ;;  %v1341_v63 = vpop.f32.mrf.mxu3  ;;  %v1359_v27 = vrot.slane %v1358_v11, 1 }
 0x35c   :  { %v1369_v60 = vrot.slane %v1368_v56, 4  ;;  %v1381_v61 = vsel %vm408_vm0, %v1379_v47, %v1380_v53  ;;  %v3506_v1 = vadd.f32 %v1341_v63, %v1279_v62  ;;  %v1351_v35 = vadd.f32 %v1350_v20, %v1349_v2  ;;  %v3227_v63 = vld [vmem:[#allocation7 + $0x370] sm:$0xff]  ;;  %v3240_v20 = vld [vmem:[#allocation7 + $0x3d8] sm:$0xff] }
 0x35d   :  { %v1383_v0 = vsel %vm1344_vm7, %v1381_v61, 0.0  ;;  %v1408_v3 = vadd.f32 %v1407_v59, %v1406_v55  ;;  %v1397_v8 = vrot.slane %v1396_v58, 2  ;;  %v1360_v39 = vadd.f32 %v1359_v27, %v1358_v11  ;;  %v3220_v59 = vld [vmem:[#allocation7 + $0x338] sm:$0xff]  ;;  %v3243_v2 = vld [vmem:[#allocation7 + $0x3f0] sm:$0xff]  ;;  %v3242_v11 = vld [vmem:[#allocation7 + $0x3e8] sm:$0xff] }
 0x35e   :  { %v1370_v4 = vadd.f32 %v1369_v60, %v1368_v56  ;;  %v1384_v6 = vrot.slane %v1383_v0, 4  ;;  %v1417_v10 = vrot.slane %v3506_v1, 7  ;;  %v1428_v5 = vmul.f32 %v3506_v1, %v3506_v1  ;;  %v3244_v60 = vld [vmem:[#allocation7 + $0x3f8] sm:$0xff]  ;;  %1699 = vmatpush.bf16.msra.mxu3 %v3220_v59  ;;  %v3231_v27 = vld [vmem:[#allocation7 + $0x390] sm:$0xff] }
 0x35f   :  { %v1409_v16 = vrot.slane %v1408_v3, 2  ;;  %v1398_v23 = vadd.f32 %v1397_v8, %v1396_v58  ;;  %v3228_v58 = vld [vmem:[#allocation7 + $0x378] sm:$0xff]  ;;  %1795 = vmatpush.bf16.msrb.mxu0 %v3244_v60 }
 0x360   :  { %v1371_v57 = vrot.slane %v1370_v4, 2  ;;  %v1385_v12 = vadd.f32 %v1384_v6, %v1383_v0  ;;  %v1418_v14 = vsel %vm1415_vm8, %v1416_v9, %v1417_v10  ;;  %v1431_v15 = vrot.slane %v1428_v5, 7  ;;  %v3236_v61 = vld [vmem:[#allocation7 + $0x3b8] sm:$0xff]  ;;  %1637 = vmatpush.bf16.msra.mxu2 %v3228_v58  ;;  %v3219_v0 = vld [vmem:[#allocation7 + $0x330] sm:$0xff]  ;;  %v3226_v10 = vld [vmem:[#allocation7 + $0x368] sm:$0xff] }
 0x361   :  { %v1420_v19 = vsel %vm1344_vm7, %v1418_v14, 0.0  ;;  %v1410_v31 = vadd.f32 %v1409_v16, %v1408_v3  ;;  %v1399_v36 = vrot.slane %v1398_v23, 1  ;;  %1857 = vmatpush.bf16.msrb.mxu1 %v3236_v61  ;;  %v3218_v5 = vld [vmem:[#allocation7 + $0x328] sm:$0xff]  ;;  %v3225_v14 = vld [vmem:[#allocation7 + $0x360] sm:$0xff] }
 0x362   :  { %v1372_v17 = vadd.f32 %v1371_v57, %v1370_v4  ;;  %v1386_v18 = vrot.slane %v1385_v12, 2  ;;  %v1421_v21 = vrot.slane %v1420_v19, 4  ;;  %v1432_v22 = vsel %vm1415_vm8, %v1430_v13, %v1431_v15  ;;  %v3235_v4 = vld [vmem:[#allocation7 + $0x3b0] sm:$0xff]  ;;  %1700 = vmatpush.bf16.msra.mxu3 %v3219_v0  ;;  %v3217_v15 = vld [vmem:[#allocation7 + $0x320] sm:$0xff] }
 0x363   :  { %v1434_v25 = vsel %vm1344_vm7, %v1432_v22, 0.0  ;;  %v1411_v43 = vrot.slane %v1410_v31, 1  ;;  %v1400_v45 = vadd.f32 %v1399_v36, %v1398_v23  ;;  %1796 = vmatpush.bf16.msrb.mxu0 %v3243_v2  ;;  %v3241_v16 = vld [vmem:[#allocation7 + $0x3e0] sm:$0xff]  ;;  %v1956_v2 = vld [vmem:[#allocation9 + $0x1f8] sm:$0xff] }
 0x364   :  { %v1387_v24 = vadd.f32 %v1386_v18, %v1385_v12  ;;  %v1373_v26 = vrot.slane %v1372_v17, 1  ;;  %v1422_v29 = vadd.f32 %v1421_v21, %v1420_v19  ;;  %v1435_v30 = vrot.slane %v1434_v25, 4  ;;  %1638 = vmatpush.bf16.msra.mxu2 %v3227_v63  ;;  %v3234_v12 = vld [vmem:[#allocation7 + $0x3a8] sm:$0xff]  ;;  %v3224_v18 = vld [vmem:[#allocation7 + $0x358] sm:$0xff]  ;;  %v3221_v36 = vld [vmem:[#allocation7 + $0x340] sm:$0xff] }
 0x365   :  { %v1412_v51 = vadd.f32 %v1411_v43, %v1410_v31  ;;  %1858 = vmatpush.bf16.msrb.mxu1 %v3235_v4  ;;  %v3216_v19 = vld [vmem:[#allocation7 + $0x318] sm:$0xff]  ;;  %v3214_v31 = vld [vmem:[#allocation7 + $0x308] sm:$0xff] }
 0x366   :  { %v1374_v32 = vadd.f32 %v1373_v26, %v1372_v17  ;;  %v1388_v33 = vrot.slane %v1387_v24, 1  ;;  %v1436_v34 = vadd.f32 %v1435_v30, %v1434_v25  ;;  %v1423_v38 = vrot.slane %v1422_v29, 2  ;;  %1701 = vmatpush.bf16.msra.mxu3 %v3218_v5  ;;  %v3233_v17 = vld [vmem:[#allocation7 + $0x3a0] sm:$0xff]  ;;  %v3232_v21 = vld [vmem:[#allocation7 + $0x398] sm:$0xff]  ;;  %v3215_v25 = vld [vmem:[#allocation7 + $0x310] sm:$0xff] }
 0x367   :  { %1797 = vmatpush.bf16.msrb.mxu0 %v3242_v11  ;;  %v3239_v26 = vld [vmem:[#allocation7 + $0x3d0] sm:$0xff]  ;;  %v3222_v30 = vld [vmem:[#allocation7 + $0x348] sm:$0xff]  ;;  %v1949_v5 = vld [vmem:[#allocation9 + $0x1c0] sm:$0xff] }
 0x368   :  { %v1389_v40 = vadd.f32 %v1388_v33, %v1387_v24  ;;  %v1375_v42 = vadd.f32 %v1374_v32, %v1351_v35  ;;  %v1424_v7 = vadd.f32 %v1423_v38, %v1422_v29  ;;  %v1437_v44 = vrot.slane %v1436_v34, 2  ;;  %1639 = vmatpush.bf16.msra.mxu2 %v3226_v10  ;;  %v3223_v24 = vld [vmem:[#allocation7 + $0x350] sm:$0xff]  ;;  %v3238_v32 = vld [vmem:[#allocation7 + $0x3c8] sm:$0xff]  ;;  %v3213_v38 = vld [vmem:[#allocation7 + $0x300] sm:$0xff] }
 0x369   :  { %1859 = vmatpush.bf16.msrb.mxu1 %v3234_v12  ;;  %v1954_v4 = vld [vmem:[#allocation9 + $0x1e8] sm:$0xff]  ;;  %v1948_v11 = vld [vmem:[#allocation9 + $0x1b8] sm:$0xff] }
 0x36a   :  { %v1425_v46 = vrot.slane %v1424_v7, 1  ;;  %v1390_v47 = vadd.f32 %v1389_v40, %v1360_v39  ;;  %v1438_v48 = vadd.f32 %v1437_v44, %v1436_v34  ;;  %v1401_v49 = vadd.f32 %v1400_v45, %v1375_v42  ;;  %1702 = vmatpush.bf16.msra.mxu3 %v3217_v15  ;;  %v3230_v34 = vld [vmem:[#allocation7 + $0x388] sm:$0xff]  ;;  %v3237_v39 = vld [vmem:[#allocation7 + $0x3c0] sm:$0xff]  ;;  %v1503_v42 = vld [vmem:[%s3734_s3 + $0x2] sm:$0x1] }
 0x36b   :  { %1798 = vmatpush.bf16.msrb.mxu0 %v3241_v16  ;;  %v3229_v40 = vld [vmem:[#allocation7 + $0x380] sm:$0xff]  ;;  %v1950_v10 = vld [vmem:[#allocation9 + $0x1c8] sm:$0xff]  ;;  %v1943_v15 = vld [vmem:[#allocation9 + $0x190] sm:$0xff] }
 0x36c   :  { %v1426_v50 = vadd.f32 %v1425_v46, %v1424_v7  ;;  %v1439_v52 = vrot.slane %v1438_v48, 1  ;;  %v1413_v54 = vadd.f32 %v1412_v51, %v1390_v47  ;;  %1640 = vmatpush.bf16.msra.mxu2 %v3225_v14  ;;  %v1516_v45 = vld [vmem:[#allocation11 + $0x2] sm:$0x1]  ;;  %v1946_v12 = vld [vmem:[#allocation9 + $0x1a8] sm:$0xff]  ;;  %v1944_v14 = vld [vmem:[#allocation9 + $0x198] sm:$0xff] }
 0x36d   :  { %1860 = vmatpush.bf16.msrb.mxu1 %v3233_v17  ;;  %v1942_v17 = vld [vmem:[#allocation9 + $0x188] sm:$0xff] }
 0x36e   :  { %v1427_v53 = vadd.f32 %v1426_v50, %v1401_v49  ;;  %v1440_v55 = vadd.f32 %v1439_v52, %v1438_v48  ;;  %1703 = vmatpush.bf16.msra.mxu3 %v3216_v19 }
 0x36f   :  { %1799 = vmatpush.bf16.msrb.mxu0 %v3240_v20  ;;  %v1941_v20 = vld [vmem:[#allocation9 + $0x180] sm:$0xff] }
 0x370   :  { %1475 = vmatmul.f32.vlgmr.msra.gmra.mxu0 %v1427_v53  ;;  %v1441_v56 = vadd.f32 %v1440_v55, %v1413_v54  ;;  %1641 = vmatpush.bf16.msra.mxu2 %v3224_v18 }
 0x371   :  { %1861 = vmatpush.bf16.msrb.mxu1 %v3232_v21 }
 0x372   :  { %1496 = vmatmul.f32.vlgmr.msra.gmra.mxu1 %v1441_v56  ;;  %1704 = vmatpush.bf16.msra.mxu3 %v3215_v25 }
 0x373   :  { %1800 = vmatpush.bf16.msrb.mxu0 %v3239_v26 }
 0x374   :  { %1642 = vmatpush.bf16.msra.mxu2 %v3223_v24 }
 0x375   :  { %1862 = vmatpush.bf16.msrb.mxu1 %v3231_v27 }
 0x376   :  { %1705 = vmatpush.bf16.msra.mxu3 %v3214_v31 }
 0x377   :  { %1801 = vmatpush.bf16.msrb.mxu0 %v3238_v32 }
 0x378   :  { %1643 = vmatpush.bf16.msra.mxu2 %v3222_v30 }
 0x379   :  { %1863 = vmatpush.bf16.msrb.mxu1 %v3230_v34 }
 0x37a   :  { %1706 = vmatpush.bf16.msra.mxu3 %v3213_v38 }
 0x37b   :  { %1802 = vmatpush.bf16.msrb.mxu0 %v3237_v39 }
 0x37c   :  { %1644 = vmatpush.bf16.msra.mxu2 %v3221_v36 }
 0x37d   :  { %1864 = vmatpush.bf16.msrb.mxu1 %v3229_v40 }
 0x37e   :  { %1978 = vmatpush.msrb.mxu3 %v1956_v2 }
 0x380   :  { %1957 = vmatpush.msrb.mxu2 %v1956_v2 }
 0x3ed   :  { %v1476_v62 = vpop.f32.mrf.mxu0 }
 0x3ee   :  { %v3516_v3 = vmul.f32 0.0078125, %v1476_v62 }
 0x3ef   :  { %v1497_v6 = vpop.f32.mrf.mxu1 }
 0x3f0   :  { %v1501_v8 = vmul.f32 %v3516_v3, %v3516_v3  ;;  %v1500_v9 = vmul.f32 0.0078125, %v1497_v6  ;;  %v1953_v6 = vld [vmem:[#allocation9 + $0x1e0] sm:$0xff] }
 0x3f2   :  { %v1502_v57 = vsub.f32 %v1500_v9, %v1501_v8  ;;  %v1952_v8 = vld [vmem:[#allocation9 + $0x1d8] sm:$0xff]  ;;  %v1951_v9 = vld [vmem:[#allocation9 + $0x1d0] sm:$0xff] }
 0x3f4   :  { %v1504_v13 = vadd.f32 1e-05, %v1502_v57  ;;  %v1947_v57 = vld [vmem:[#allocation9 + $0x1b0] sm:$0xff] }
 0x3f6   :  { %3289 = vrsqrt.f32 %v1504_v13  ;;  %vm1511_vm10 = vweird.f32 %v1504_v13 }
 0x3fc   :  { %v3290_v22 = vpop.eup %3289 }
 0x3fd   :  { %v1506_v23 = vmul.f32 %v3290_v22, %v1504_v13  ;;  %vm1512_vm9 = vweird.f32 %v3290_v22  ;;  %v1945_v13 = vld [vmem:[#allocation9 + $0x1a0] sm:$0xff] }
 0x3fe   :  { %vm1513_vm11 = vmor %vm1511_vm10, %vm1512_vm9 }
 0x3ff   :  { %v1507_v29 = vmul.f32 %v3290_v22, %v1506_v23 }
 0x401   :  { %v1508_v33 = vmul.f32 0.5, %v1507_v29 }
 0x403   :  { %v1509_v35 = vsub.f32 1.5, %v1508_v33 }
 0x405   :  { %v1510_v7 = vmul.f32 %v3290_v22, %v1509_v35 }
 0x407   :  { %v1514_v43 = vsel %vm1513_vm11, %v3290_v22, %v1510_v7 }
 0x408   :  { %v1515_v44 = vmul.f32 %v1514_v43, %v1503_v42 }
 0x40a   :  { %v1517_v46 = vmul.f32 %v1515_v44, %v3516_v3  ;;  %v1519_v47 = vperm.slane %v1515_v44, 0  ;;  %v1955_v3 = vld [vmem:[#allocation9 + $0x1f0] sm:$0xff] }
 0x40b   :  { %1958 = vmatpush.msrb.mxu2 %v1955_v3  ;;  %1979 = vmatpush.msrb.mxu3 %v1955_v3 }
 0x40c   :  { %v1518_v48 = vsub.f32 %v1516_v45, %v1517_v46  ;;  %v1528_v50 = vmul.f32 %v1519_v47, %v3491_v41  ;;  %v1535_v51 = vmul.f32 %v1519_v47, %v3489_v37  ;;  %v1542_v54 = vmul.f32 %v1519_v47, %v3506_v1 }
 0x40d   :  { %v1520_v59 = vmul.f32 %v1519_v47, %v3482_v28  ;;  %1959 = vmatpush.msrb.mxu2 %v1954_v4  ;;  %1980 = vmatpush.msrb.mxu3 %v1954_v4 }
 0x40e   :  { %v1521_v49 = vperm.slane %v1518_v48, 0 }
 0x40f   :  { %1960 = vmatpush.msrb.mxu2 %v1953_v6  ;;  %1981 = vmatpush.msrb.mxu3 %v1953_v6 }
 0x410   :  { %v1529_v52 = vadd.f32 %v1528_v50, %v1521_v49  ;;  %v1536_v53 = vadd.f32 %v1535_v51, %v1521_v49  ;;  %v1543_v58 = vadd.f32 %v1542_v54, %v1521_v49  ;;  %v1522_v60 = vadd.f32 %v1521_v49, %v1520_v59 }
 0x411   :  { %1961 = vmatpush.msrb.mxu2 %v1952_v8  ;;  %1982 = vmatpush.msrb.mxu3 %v1952_v8 }
 0x412   :  { %v1530_v55 = vmax.f32 %v1529_v52, 0.0  ;;  %v1537_v56 = vmax.f32 %v1536_v53, 0.0  ;;  %v1544_v61 = vmax.f32 %v1543_v58, 0.0  ;;  %v1523_v62 = vmax.f32 %v1522_v60, 0.0 }
 0x413   :  { %1962 = vmatpush.msrb.mxu2 %v1951_v9  ;;  %1983 = vmatpush.msrb.mxu3 %v1951_v9 }
 0x414   :  { %1533 = vst [vmem:[#allocation5 + $0xc] sm:$0x1] %v1530_v55 }
 0x415   :  { %1534 = vst [vmem:[#allocation5 + $0xd] sm:$0x2] %v1530_v55  ;;  %1963 = vmatpush.msrb.mxu2 %v1950_v10  ;;  %1984 = vmatpush.msrb.mxu3 %v1950_v10 }
 0x416   :  { %1538 = vst [vmem:[#allocation5] sm:$0x2] %v1537_v56 }
 0x417   :  { %1539 = vst [vmem:[#allocation5 + $0x1] sm:$0x4] %v1537_v56  ;;  %1964 = vmatpush.msrb.mxu2 %v1949_v5  ;;  %1985 = vmatpush.msrb.mxu3 %v1949_v5 }
 0x418   :  { %1540 = vst [vmem:[#allocation5 + $0x2] sm:$0x88] %v1537_v56  }
 0x419   :  { %1541 = vst [vmem:[#allocation5 + $0x3] sm:$0x10] %v1537_v56  ;;  %1965 = vmatpush.msrb.mxu2 %v1948_v11  ;;  %1986 = vmatpush.msrb.mxu3 %v1948_v11 }
 0x41a   :  { %1546 = vst [vmem:[#allocation5 + $0xb] sm:$0x1] %v1544_v61 }
 0x41b   :  { %1547 = vst [vmem:[#allocation5 + $0xc] sm:$0x2] %v1544_v61  ;;  %1966 = vmatpush.msrb.mxu2 %v1947_v57  ;;  %1987 = vmatpush.msrb.mxu3 %v1947_v57 }
 0x41c   :  { %1548 = vst [vmem:[#allocation5 + $0xd] sm:$0x4] %v1544_v61 }
 0x41d   :  { %1524 = vst [vmem:[#allocation5] sm:$0x1] %v1523_v62  ;;  %1967 = vmatpush.msrb.mxu2 %v1946_v12  ;;  %1988 = vmatpush.msrb.mxu3 %v1946_v12 }
 0x41e   :  { %1525 = vst [vmem:[#allocation5 + $0x1] sm:$0x2] %v1523_v62 }
 0x41f   :  { %1526 = vst [vmem:[#allocation5 + $0x2] sm:$0x44] %v1523_v62   ;;  %1968 = vmatpush.msrb.mxu2 %v1945_v13  ;;  %1989 = vmatpush.msrb.mxu3 %v1945_v13 }
 0x420   :  { %1527 = vst [vmem:[#allocation5 + $0x3] sm:$0x88] %v1523_v62  }
 0x421   :  { %1969 = vmatpush.msrb.mxu2 %v1944_v14  ;;  %1990 = vmatpush.msrb.mxu3 %v1944_v14 }
 0x423   :  { %1970 = vmatpush.msrb.mxu2 %v1943_v15  ;;  %1991 = vmatpush.msrb.mxu3 %v1943_v15 }
 0x425   :  { %1971 = vmatpush.msrb.mxu2 %v1942_v17  ;;  %1992 = vmatpush.msrb.mxu3 %v1942_v17 }
 0x427   :  { %v1569_v37 = vld [vmem:[#allocation5] sm:$0xff]  ;;  %v1570_v41 = vld [vmem:[#allocation5 + $0x8] sm:$0xff]  ;;  %1972 = vmatpush.msrb.mxu2 %v1941_v20  ;;  %1993 = vmatpush.msrb.mxu3 %v1941_v20 }
 0x428   :  { %v1549_v1 = vld [vmem:[#allocation5 + $0x1] sm:$0xff]  ;;  %v1571_v28 = vpack.c.bf16 %v1570_v41, %v1569_v37  ;;  %v1550_v63 = vld [vmem:[#allocation5 + $0x9] sm:$0xff] }
 0x429   :  { %v1551_v0 = vpack.c.bf16 %v1550_v63, %v1549_v1 }
 0x42a   :  { %1645 = vmatmul.bf16.vlgmr.msra.gmra.mxu2 %v1571_v28  ;;  %1803 = vmatmul.bf16.vlgmr.msrb.gmra.mxu0 %v1571_v28 }
 0x42b   :  { %1707 = vmatmul.bf16.vlgmr.msra.gmra.mxu3 %v1551_v0  ;;  %1865 = vmatmul.bf16.vlgmr.msrb.gmra.mxu1 %v1551_v0 }
 0x4a7   :  { %v1804_v16 = vpop.f32.mrf.mxu0 }
 0x4a8   :  { %v1866_v18 = vpop.f32.mrf.mxu1 }
 0x4a9   :  { %v3528_v19 = vadd.f32 %v1866_v18, %v1804_v16 }
 0x4ab   :  { %v1914_v21 = vmul.f32 %v3528_v19, %v3528_v19  ;;  %v1906_v23 = vsel %vm1871_vm12, %v3528_v19, 0.0 }
 0x4ac   :  { %v1907_v30 = vrot.slane %v1906_v23, 4 }
 0x4ad   :  { %v1646_v22 = vpop.f32.mrf.mxu2  ;;  %v1915_v27 = vsel %vm1871_vm12, %v1914_v21, 0.0 }
 0x4ae   :  { %v1708_v24 = vpop.f32.mrf.mxu3  ;;  %v1916_v35 = vrot.slane %v1915_v27, 4  ;;  %v1908_v7 = vadd.f32 %v1907_v30, %v1906_v23 }
 0x4af   :  { %v3534_v25 = vadd.f32 %v1708_v24, %v1646_v22  ;;  %v1806_v26 = vpop.f32.mrf.mxu0 }
 0x4b0   :  { %v1868_v29 = vpop.f32.mrf.mxu1  ;;  %v1917_v48 = vadd.f32 %v1916_v35, %v1915_v27  ;;  %v1909_v53 = vrot.slane %v1908_v7, 2 }
 0x4b1   :  { %v1872_v31 = vsel %vm1871_vm12, %v3534_v25, 0.0  ;;  %v1880_v32 = vmul.f32 %v3534_v25, %v3534_v25  ;;  %v3541_v33 = vadd.f32 %v1868_v29, %v1806_v26 }
 0x4b2   :  { %v1873_v34 = vrot.slane %v1872_v31, 4  ;;  %v1918_v60 = vrot.slane %v1917_v48, 2  ;;  %v1910_v28 = vadd.f32 %v1909_v53, %v1908_v7 }
 0x4b3   :  { %v1881_v36 = vsel %vm1871_vm12, %v1880_v32, 0.0  ;;  %v1923_v38 = vsel %vm1871_vm12, %v3541_v33, 0.0  ;;  %v1931_v39 = vmul.f32 %v3541_v33, %v3541_v33 }
 0x4b4   :  { %v1874_v40 = vadd.f32 %v1873_v34, %v1872_v31  ;;  %v1882_v42 = vrot.slane %v1881_v36, 4  ;;  %v1924_v43 = vrot.slane %v1923_v38, 4  ;;  %v1919_v4 = vadd.f32 %v1918_v60, %v1917_v48 }
 0x4b5   :  { %v1932_v44 = vsel %vm1871_vm12, %v1931_v39, 0.0  ;;  %v1648_v45 = vpop.f32.mrf.mxu2  ;;  %v1911_v5 = vrot.slane %v1910_v28, 1 }
 0x4b6   :  { %v1883_v46 = vadd.f32 %v1882_v42, %v1881_v36  ;;  %v1710_v47 = vpop.f32.mrf.mxu3  ;;  %v1933_v49 = vrot.slane %v1932_v44, 4  ;;  %v1875_v51 = vrot.slane %v1874_v40, 2  ;;  %v1925_v52 = vadd.f32 %v1924_v43, %v1923_v38 }
 0x4b7   :  { %v3549_v50 = vadd.f32 %v1710_v47, %v1648_v45  ;;  %v1920_v14 = vrot.slane %v1919_v4, 1  ;;  %v1912_v20 = vadd.f32 %v1911_v5, %v1910_v28  ;;  %v3252_v45 = vld [vmem:[#allocation7 + $0x438] sm:$0xff]  ;;  %v2001_v28 = vld [vmem:[%s3734_s3 + $0x3] sm:$0x1] }
 0x4b8   :  { %v1884_v56 = vrot.slane %v1883_v46, 2  ;;  %v1934_v58 = vadd.f32 %v1933_v49, %v1932_v44  ;;  %v1876_v62 = vadd.f32 %v1875_v51, %v1874_v40  ;;  %v1926_v37 = vrot.slane %v1925_v52, 2  ;;  %v3260_v44 = vld [vmem:[#allocation7 + $0x478] sm:$0xff]  ;;  %2220 = vmatpush.bf16.msra.mxu1 %v3252_v45  ;;  %v3259_v49 = vld [vmem:[#allocation7 + $0x470] sm:$0xff] }
 0x4b9   :  { %v1889_v54 = vsel %vm1871_vm12, %v3549_v50, 0.0  ;;  %v1897_v55 = vmul.f32 %v3549_v50, %v3549_v50  ;;  %v1921_v30 = vadd.f32 %v1920_v14, %v1919_v4  ;;  %v3268_v47 = vld [vmem:[#allocation7 + $0x4b8] sm:$0xff]  ;;  %2153 = vmatpush.bf16.msra.mxu0 %v3260_v44  ;;  %v3251_v51 = vld [vmem:[#allocation7 + $0x430] sm:$0xff] }
 0x4ba   :  { %v1890_v59 = vrot.slane %v1889_v54, 4  ;;  %v1885_v63 = vadd.f32 %v1884_v56, %v1883_v46  ;;  %v1935_v0 = vrot.slane %v1934_v58, 2  ;;  %v1877_v6 = vrot.slane %v1876_v62, 1  ;;  %v3276_v46 = vld [vmem:[#allocation7 + $0x4f8] sm:$0xff]  ;;  %2388 = vmatpush.bf16.msra.mxu3 %v3268_v47  ;;  %v3258_v56 = vld [vmem:[#allocation7 + $0x468] sm:$0xff]  ;;  %v3271_v14 = vld [vmem:[#allocation7 + $0x4d0] sm:$0xff] }
 0x4bb   :  { %v1898_v61 = vsel %vm1871_vm12, %v1897_v55, 0.0  ;;  %v1927_v8 = vadd.f32 %v1926_v37, %v1925_v52  ;;  %2321 = vmatpush.bf16.msra.mxu2 %v3276_v46  ;;  %v3275_v52 = vld [vmem:[#allocation7 + $0x4f0] sm:$0xff]  ;;  %v3257_v37 = vld [vmem:[#allocation7 + $0x460] sm:$0xff]  ;;  %v3256_v4 = vld [vmem:[#allocation7 + $0x458] sm:$0xff] }
 0x4bc   :  { %v1891_v41 = vadd.f32 %v1890_v59, %v1889_v54  ;;  %v1899_v1 = vrot.slane %v1898_v61, 4  ;;  %v1886_v11 = vrot.slane %v1885_v63, 1  ;;  %v1936_v57 = vadd.f32 %v1935_v0, %v1934_v58  ;;  %v3267_v54 = vld [vmem:[#allocation7 + $0x4b0] sm:$0xff]  ;;  %2221 = vmatpush.bf16.msra.mxu1 %v3251_v51  ;;  %v3250_v58 = vld [vmem:[#allocation7 + $0x428] sm:$0xff]  ;;  %v3265_v0 = vld [vmem:[#allocation7 + $0x4a0] sm:$0xff] }
 0x4bd   :  { %v1878_v15 = vadd.f32 %v1877_v6, %v1876_v62  ;;  %v1928_v16 = vrot.slane %v1927_v8, 1  ;;  %2154 = vmatpush.bf16.msra.mxu0 %v3259_v49  ;;  %v3274_v59 = vld [vmem:[#allocation7 + $0x4e8] sm:$0xff]  ;;  %v3248_v6 = vld [vmem:[#allocation7 + $0x418] sm:$0xff] }
 0x4be   :  { %v1892_v2 = vrot.slane %v1891_v41, 2  ;;  %v1900_v3 = vadd.f32 %v1899_v1, %v1898_v61  ;;  %v1887_v21 = vadd.f32 %v1886_v11, %v1885_v63  ;;  %v1937_v24 = vrot.slane %v1936_v57, 1  ;;  %2389 = vmatpush.bf16.msra.mxu3 %v3267_v54  ;;  %v3266_v61 = vld [vmem:[#allocation7 + $0x4a8] sm:$0xff]  ;;  %v3273_v1 = vld [vmem:[#allocation7 + $0x4e0] sm:$0xff] }
 0x4bf   :  { %v1929_v27 = vadd.f32 %v1928_v16, %v1927_v8  ;;  %2322 = vmatpush.bf16.msra.mxu2 %v3275_v52  ;;  %v3272_v8 = vld [vmem:[#allocation7 + $0x4d8] sm:$0xff] }
 0x4c0   :  { %v1893_v9 = vadd.f32 %v1892_v2, %v1891_v41  ;;  %v1901_v10 = vrot.slane %v1900_v3, 2  ;;  %v1938_v34 = vadd.f32 %v1937_v24, %v1936_v57  ;;  %2222 = vmatpush.bf16.msra.mxu1 %v3250_v58  ;;  %v3249_v41 = vld [vmem:[#allocation7 + $0x420] sm:$0xff] }
 0x4c1   :  { %2155 = vmatpush.bf16.msra.mxu0 %v3258_v56 }
 0x4c2   :  { %v1894_v12 = vrot.slane %v1893_v9, 1  ;;  %v1902_v13 = vadd.f32 %v1901_v10, %v1900_v3  ;;  %2390 = vmatpush.bf16.msra.mxu3 %v3266_v61  ;;  %v3264_v10 = vld [vmem:[#allocation7 + $0x498] sm:$0xff] }
 0x4c3   :  { %2323 = vmatpush.bf16.msra.mxu2 %v3274_v59 }
 0x4c4   :  { %v1895_v17 = vadd.f32 %v1894_v12, %v1893_v9  ;;  %v1903_v18 = vrot.slane %v1902_v13, 1  ;;  %2223 = vmatpush.bf16.msra.mxu1 %v3249_v41  ;;  %v2014_v9 = vld [vmem:[#allocation11 + $0x3] sm:$0x1]  ;;  %v3255_v12 = vld [vmem:[#allocation7 + $0x450] sm:$0xff] }
 0x4c5   :  { %2156 = vmatpush.bf16.msra.mxu0 %v3257_v37 }
 0x4c6   :  { %v1904_v22 = vadd.f32 %v1903_v18, %v1902_v13  ;;  %v1896_v23 = vadd.f32 %v1895_v17, %v1878_v15  ;;  %2391 = vmatpush.bf16.msra.mxu3 %v3265_v0  ;;  %v3247_v13 = vld [vmem:[#allocation7 + $0x410] sm:$0xff]  ;;  %v3254_v18 = vld [vmem:[#allocation7 + $0x448] sm:$0xff] }
 0x4c7   :  { %2324 = vmatpush.bf16.msra.mxu2 %v3273_v1  ;;  %v3263_v15 = vld [vmem:[#allocation7 + $0x490] sm:$0xff] }
 0x4c8   :  { %v1913_v26 = vadd.f32 %v1912_v20, %v1896_v23  ;;  %v1905_v29 = vadd.f32 %v1904_v22, %v1887_v21  ;;  %2224 = vmatpush.bf16.msra.mxu1 %v3248_v6  ;;  %v3246_v20 = vld [vmem:[#allocation7 + $0x408] sm:$0xff] }
 0x4c9   :  { %2157 = vmatpush.bf16.msra.mxu0 %v3256_v4  ;;  %v3270_v21 = vld [vmem:[#allocation7 + $0x4c8] sm:$0xff] }
 0x4ca   :  { %v1930_v31 = vadd.f32 %v1929_v27, %v1913_v26  ;;  %v1922_v32 = vadd.f32 %v1921_v30, %v1905_v29  ;;  %2392 = vmatpush.bf16.msra.mxu3 %v3264_v10  ;;  %v3262_v23 = vld [vmem:[#allocation7 + $0x488] sm:$0xff]  ;;  %v3253_v27 = vld [vmem:[#allocation7 + $0x440] sm:$0xff] }
 0x4cb   :  { %2325 = vmatpush.bf16.msra.mxu2 %v3272_v8  ;;  %v3245_v29 = vld [vmem:[#allocation7 + $0x400] sm:$0xff] }
 0x4cc   :  { %1973 = vmatmul.f32.vlgmr.msrb.gmra.mxu2 %v1930_v31  ;;  %v1939_v35 = vadd.f32 %v1938_v34, %v1922_v32  ;;  %2225 = vmatpush.bf16.msra.mxu1 %v3247_v13  ;;  %v3261_v31 = vld [vmem:[#allocation7 + $0x480] sm:$0xff] }
 0x4cd   :  { %2158 = vmatpush.bf16.msra.mxu0 %v3255_v12 }
 0x4ce   :  { %1994 = vmatmul.f32.vlgmr.msrb.gmra.mxu3 %v1939_v35 }
 0x4cf   :  { %2326 = vmatpush.bf16.msra.mxu2 %v3271_v14  ;;  %2393 = vmatpush.bf16.msra.mxu3 %v3263_v15 }
 0x4d0   :  { %2226 = vmatpush.bf16.msra.mxu1 %v3246_v20 }
 0x4d1   :  { %2159 = vmatpush.bf16.msra.mxu0 %v3254_v18 }
 0x4d3   :  { %2327 = vmatpush.bf16.msra.mxu2 %v3270_v21  ;;  %2394 = vmatpush.bf16.msra.mxu3 %v3262_v23 }
 0x4d4   :  { %2227 = vmatpush.bf16.msra.mxu1 %v3245_v29 }
 0x4d5   :  { %2160 = vmatpush.bf16.msra.mxu0 %v3253_v27 }
 0x4d7   :  { %2395 = vmatpush.bf16.msra.mxu3 %v3261_v31 }
 0x54f   :  { %v1974_v36 = vpop.f32.mrf.mxu2 }
 0x550   :  { %v1977_v38 = vmul.f32 0.0025510204, %v1974_v36 }
 0x551   :  { %v1995_v39 = vpop.f32.mrf.mxu3 }
 0x552   :  { %v1999_v40 = vmul.f32 %v1977_v38, %v1977_v38  ;;  %v1998_v42 = vmul.f32 0.0025510204, %v1995_v39 }
 0x554   :  { %v2000_v7 = vsub.f32 %v1998_v42, %v1999_v40 }
 0x556   :  { %v2002_v43 = vadd.f32 1e-05, %v2000_v7 }
 0x558   :  { %3291 = vrsqrt.f32 %v2002_v43  ;;  %vm2009_vm14 = vweird.f32 %v2002_v43 }
 0x55e   :  { %v3292_v48 = vpop.eup %3291 }
 0x55f   :  { %v2004_v53 = vmul.f32 %v3292_v48, %v2002_v43  ;;  %vm2010_vm13 = vweird.f32 %v3292_v48 }
 0x560   :  { %vm2011_vm15 = vmor %vm2009_vm14, %vm2010_vm13 }
 0x561   :  { %v2005_v55 = vmul.f32 %v3292_v48, %v2004_v53 }
 0x563   :  { %v2006_v60 = vmul.f32 0.5, %v2005_v55 }
 0x565   :  { %v2007_v62 = vsub.f32 1.5, %v2006_v60 }
 0x567   :  { %v2008_v63 = vmul.f32 %v3292_v48, %v2007_v62 }
 0x569   :  { %v2012_v2 = vsel %vm2011_vm15, %v3292_v48, %v2008_v63 }
 0x56a   :  { %v2013_v3 = vmul.f32 %v2012_v2, %v2001_v28 }
 0x56c   :  { %v2015_v5 = vmul.f32 %v2013_v3, %v1977_v38  ;;  %v2017_v11 = vperm.slane %v2013_v3, 0 }
 0x56e   :  { %v2016_v57 = vsub.f32 %v2014_v9, %v2015_v5  ;;  %v2018_v16 = vmul.f32 %v2017_v11, %v3534_v25  ;;  %v2029_v24 = vmul.f32 %v2017_v11, %v3549_v50  ;;  %v3269_v25 = vld [vmem:[#allocation7 + $0x4c0] sm:$0xff]  ;;  %v2039_v50 = vmul.f32 %v2017_v11, %v3528_v19 }
 0x56f   :  { %2328 = vmatpush.bf16.msra.mxu2 %v3269_v25  ;;  %v2049_v36 = vmul.f32 %v2017_v11, %v3541_v33 }
 0x570   :  { %v2019_v17 = vperm.slane %v2016_v57, 0 }
 0x572   :  { %v2020_v22 = vadd.f32 %v2019_v17, %v2018_v16  ;;  %v2030_v30 = vadd.f32 %v2029_v24, %v2019_v17  ;;  %v2040_v34 = vadd.f32 %v2039_v50, %v2019_v17  ;;  %v2050_v38 = vadd.f32 %v2049_v36, %v2019_v17 }
 0x574   :  { %v2021_v26 = vmax.f32 %v2020_v22, 0.0  ;;  %v2031_v32 = vmax.f32 %v2030_v30, 0.0  ;;  %v2041_v35 = vmax.f32 %v2040_v34, 0.0  ;;  %v2051_v39 = vmax.f32 %v2050_v38, 0.0 }
 0x576   :  { %2022 = vst [vmem:[#allocation6 + $0x1] sm:$0x1] %v2021_v26 }
 0x577   :  { %2023 = vst [vmem:[#allocation6 + $0x2] sm:$0x2] %v2021_v26 }
 0x578   :  { %2024 = vst [vmem:[#allocation6 + $0x3] sm:$0x4] %v2021_v26 }
 0x579   :  { %2025 = vst [vmem:[#allocation6 + $0x4] sm:$0x8] %v2021_v26 }
 0x57a   :  { %2026 = vst [vmem:[#allocation6 + $0x5] sm:$0x10] %v2021_v26 }
 0x57b   :  { %2027 = vst [vmem:[#allocation6 + $0x6] sm:$0x20] %v2021_v26 }
 0x57c   :  { %2028 = vst [vmem:[#allocation6 + $0x7] sm:$0x40] %v2021_v26 }
 0x57d   :  { %2032 = vst [vmem:[#allocation6 + $0x11] sm:$0x1] %v2031_v32 }
 0x57e   :  { %2033 = vst [vmem:[#allocation6 + $0x12] sm:$0x2] %v2031_v32 }
 0x57f   :  { %2034 = vst [vmem:[#allocation6 + $0x13] sm:$0x4] %v2031_v32 }
 0x580   :  { %2035 = vst [vmem:[#allocation6 + $0x14] sm:$0x8] %v2031_v32 }
 0x581   :  { %2036 = vst [vmem:[#allocation6 + $0x15] sm:$0x10] %v2031_v32 }
 0x582   :  { %2037 = vst [vmem:[#allocation6 + $0x16] sm:$0x20] %v2031_v32 }
 0x583   :  { %2038 = vst [vmem:[#allocation6 + $0x17] sm:$0x40] %v2031_v32 }
 0x584   :  { %2042 = vst [vmem:[#allocation6 + $0x2] sm:$0x1] %v2041_v35 }
 0x585   :  { %2043 = vst [vmem:[#allocation6 + $0x3] sm:$0x2] %v2041_v35 }
 0x586   :  { %2044 = vst [vmem:[#allocation6 + $0x4] sm:$0x4] %v2041_v35 }
 0x587   :  { %2045 = vst [vmem:[#allocation6 + $0x5] sm:$0x8] %v2041_v35 }
 0x588   :  { %2046 = vst [vmem:[#allocation6 + $0x6] sm:$0x10] %v2041_v35 }
 0x589   :  { %2047 = vst [vmem:[#allocation6 + $0x7] sm:$0x20] %v2041_v35 }
 0x58a   :  { %2048 = vst [vmem:[#allocation6 + $0x8] sm:$0x40] %v2041_v35 }
 0x58b   :  { %2052 = vst [vmem:[#allocation6 + $0x12] sm:$0x1] %v2051_v39 }
 0x58c   :  { %2053 = vst [vmem:[#allocation6 + $0x13] sm:$0x2] %v2051_v39 }
 0x58d   :  { %2054 = vst [vmem:[#allocation6 + $0x14] sm:$0x4] %v2051_v39  ;;  %v2082_v19 = vld [vmem:[#allocation6] sm:$0xff] }
 0x58e   :  { %2055 = vst [vmem:[#allocation6 + $0x15] sm:$0x8] %v2051_v39  ;;  %v2059_v40 = vld [vmem:[#allocation6 + $0x1] sm:$0xff] }
 0x58f   :  { %2056 = vst [vmem:[#allocation6 + $0x16] sm:$0x10] %v2051_v39 }
 0x590   :  { %2057 = vst [vmem:[#allocation6 + $0x17] sm:$0x20] %v2051_v39 }
 0x591   :  { %2058 = vst [vmem:[#allocation6 + $0x18] sm:$0x40] %v2051_v39  ;;  %v2083_v33 = vld [vmem:[#allocation6 + $0x8] sm:$0xff] }
 0x592   :  { %v2060_v42 = vld [vmem:[#allocation6 + $0x9] sm:$0xff]  ;;  %v2086_v7 = vpack.c.bf16 %v2083_v33, %v2082_v19 }
 0x593   :  { %v2063_v43 = vpack.c.bf16 %v2060_v42, %v2059_v40 }
 0x594   :  { %2161 = vmatmul.bf16.vlgmr.msra.gmra.mxu0 %v2086_v7  ;;  %2329 = vmatmul.bf16.vlgmr.msra.gmra.mxu2 %v2086_v7  ;;  %v2084_v44 = vld [vmem:[#allocation6 + $0x10] sm:$0xff] }
 0x595   :  { %2228 = vmatmul.bf16.vlgmr.msra.gmra.mxu1 %v2063_v43  ;;  %2396 = vmatmul.bf16.vlgmr.msra.gmra.mxu3 %v2063_v43  ;;  %v2061_v46 = vld [vmem:[#allocation6 + $0x11] sm:$0xff] }
 0x598   :  { %v2085_v45 = vld [vmem:[#allocation6 + $0x18] sm:$0xff] }
 0x599   :  { %v2062_v47 = vld [vmem:[#allocation6 + $0x19] sm:$0xff]  ;;  %v2087_v48 = vpack.c.bf16 %v2085_v45, %v2084_v44 }
 0x59a   :  { %v2064_v49 = vpack.c.bf16 %v2062_v47, %v2061_v46 }
 0x5a4   :  { %2166 = vmatmul.bf16.gmra.mxu0 %v2087_v48  ;;  %2334 = vmatmul.bf16.gmra.mxu2 %v2087_v48 }
 0x5a5   :  { %2233 = vmatmul.bf16.gmra.mxu1 %v2064_v49  ;;  %2401 = vmatmul.bf16.gmra.mxu3 %v2064_v49 }
 0x611   :  { %v2162_v51 = vpop.f32.mrf.mxu0 }
 0x612   :  { %v2229_v52 = vpop.f32.mrf.mxu1 }
 0x613   :  { %v2230_v53 = vadd.f32 %v2229_v52, %v2162_v51 }
 0x615   :  { %3293 = vtanh.f32 %v2230_v53 }
 0x617   :  { %v2330_v54 = vpop.f32.mrf.mxu2 }
 0x618   :  { %v2397_v55 = vpop.f32.mrf.mxu3 }
 0x619   :  { %v2398_v56 = vadd.f32 %v2397_v55, %v2330_v54  ;;  %v2164_v59 = vpop.f32.mrf.mxu0 }
 0x61a   :  { %v2231_v60 = vpop.f32.mrf.mxu1 }
 0x61b   :  { %v3294_v58 = vpop.eup %3293  ;;  %3295 = vtanh.f32 %v2398_v56  ;;  %v2232_v61 = vadd.f32 %v2231_v60, %v2164_v59 }
 0x61c   :  { %2409 = vst [vmem:[%s3736_s5] sm:$0x1] %v3294_v58 }
 0x61d   :  { %2410 = vst [vmem:[%s3736_s5 + $0x1] sm:$0x2] %v3294_v58  ;;  %3297 = vtanh.f32 %v2232_v61 }
 0x61e   :  { %2411 = vst [vmem:[%s3736_s5 + $0x2] sm:$0x4] %v3294_v58 }
 0x61f   :  { %2412 = vst [vmem:[%s3736_s5 + $0x3] sm:$0x8] %v3294_v58  ;;  %v2332_v62 = vpop.f32.mrf.mxu2 }
 0x620   :  { %2413 = vst [vmem:[%s3736_s5 + $0x4] sm:$0x10] %v3294_v58  ;;  %v2399_v37 = vpop.f32.mrf.mxu3 }
 0x621   :  { %2414 = vst [vmem:[%s3736_s5 + $0x5] sm:$0x20] %v3294_v58  ;;  %v3296_v41 = vpop.eup %3295  ;;  %v2400_v1 = vadd.f32 %v2399_v37, %v2332_v62  ;;  %v2167_v63 = vpop.f32.mrf.mxu0 }
 0x622   :  { %2415 = vst [vmem:[%s3736_s5 + $0x6] sm:$0x40] %v3294_v58  ;;  %v2234_v0 = vpop.f32.mrf.mxu1 }
 0x623   :  { %2416 = vst [vmem:[%s3736_s5 + $0x7] sm:$0x80] %v3294_v58  ;;  %v3298_v28 = vpop.eup %3297  ;;  %3299 = vtanh.f32 %v2400_v1  ;;  %v2235_v2 = vadd.f32 %v2234_v0, %v2167_v63 }
 0x624   :  { %2441 = vst [vmem:[%s3736_s5] sm:$0x2] %v3296_v41 }
 0x625   :  { %2442 = vst [vmem:[%s3736_s5 + $0x1] sm:$0x4] %v3296_v41  ;;  %3301 = vtanh.f32 %v2235_v2 }
 0x626   :  { %2443 = vst [vmem:[%s3736_s5 + $0x2] sm:$0x8] %v3296_v41 }
 0x627   :  { %2444 = vst [vmem:[%s3736_s5 + $0x3] sm:$0x10] %v3296_v41  ;;  %v2335_v4 = vpop.f32.mrf.mxu2 }
 0x628   :  { %2445 = vst [vmem:[%s3736_s5 + $0x4] sm:$0x20] %v3296_v41  ;;  %v2402_v6 = vpop.f32.mrf.mxu3 }
 0x629   :  { %2446 = vst [vmem:[%s3736_s5 + $0x5] sm:$0x40] %v3296_v41  ;;  %v3300_v3 = vpop.eup %3299  ;;  %v2403_v8 = vadd.f32 %v2402_v6, %v2335_v4  ;;  %v2169_v10 = vpop.f32.mrf.mxu0 }
 0x62a   :  { %2447 = vst [vmem:[%s3736_s5 + $0x6] sm:$0x80] %v3296_v41  ;;  %v2236_v5 = vpop.f32.mrf.mxu1 }
 0x62b   :  { %2417 = vst [vmem:[%s3736_s5 + $0x10] sm:$0x1] %v3298_v28  ;;  %v3302_v9 = vpop.eup %3301  ;;  %3303 = vtanh.f32 %v2403_v8  ;;  %v2237_v11 = vadd.f32 %v2236_v5, %v2169_v10 }
 0x62c   :  { %2418 = vst [vmem:[%s3736_s5 + $0x11] sm:$0x2] %v3298_v28 }
 0x62d   :  { %2419 = vst [vmem:[%s3736_s5 + $0x12] sm:$0x4] %v3298_v28  ;;  %3305 = vtanh.f32 %v2237_v11 }
 0x62e   :  { %2420 = vst [vmem:[%s3736_s5 + $0x13] sm:$0x8] %v3298_v28 }
 0x62f   :  { %2421 = vst [vmem:[%s3736_s5 + $0x14] sm:$0x10] %v3298_v28  ;;  %v2337_v12 = vpop.f32.mrf.mxu2 }
 0x630   :  { %2422 = vst [vmem:[%s3736_s5 + $0x15] sm:$0x20] %v3298_v28  ;;  %v2404_v13 = vpop.f32.mrf.mxu3 }
 0x631   :  { %2448 = vst [vmem:[%s3736_s5 + $0xf] sm:$0x1] %v3300_v3  ;;  %v3304_v57 = vpop.eup %3303  ;;  %v2405_v14 = vadd.f32 %v2404_v13, %v2337_v12 }
 0x632   :  { %2449 = vst [vmem:[%s3736_s5 + $0x10] sm:$0x2] %v3300_v3 }
 0x633   :  { %2450 = vst [vmem:[%s3736_s5 + $0x11] sm:$0x4] %v3300_v3  ;;  %v3306_v15 = vpop.eup %3305  ;;  %3307 = vtanh.f32 %v2405_v14 }
 0x634   :  { %2451 = vst [vmem:[%s3736_s5 + $0x12] sm:$0x8] %v3300_v3 }
 0x635   :  { %2452 = vst [vmem:[%s3736_s5 + $0x13] sm:$0x10] %v3300_v3 }
 0x636   :  { %2453 = vst [vmem:[%s3736_s5 + $0x14] sm:$0x20] %v3300_v3 }
 0x637   :  { %2454 = vst [vmem:[%s3736_s5 + $0x15] sm:$0x40] %v3300_v3 }
 0x638   :  { %2425 = vst [vmem:[%s3736_s5 + $0x1c] sm:$0x1] %v3302_v9 }
 0x639   :  { %2426 = vst [vmem:[%s3736_s5 + $0x1d] sm:$0x2] %v3302_v9  ;;  %v3308_v16 = vpop.eup %3307 }
 0x63a   :  { %2427 = vst [vmem:[%s3736_s5 + $0x1e] sm:$0x4] %v3302_v9 }
 0x63b   :  { %2428 = vst [vmem:[%s3736_s5 + $0x1f] sm:$0x8] %v3302_v9 }
 0x63c   :  { %2429 = vst [vmem:[%s3736_s5 + $0x20] sm:$0x10] %v3302_v9 }
 0x63d   :  { %2430 = vst [vmem:[%s3736_s5 + $0x21] sm:$0x20] %v3302_v9 }
 0x63e   :  { %2431 = vst [vmem:[%s3736_s5 + $0x22] sm:$0x40] %v3302_v9 }
 0x63f   :  { %2432 = vst [vmem:[%s3736_s5 + $0x23] sm:$0x80] %v3302_v9 }
 0x640   :  { %2457 = vst [vmem:[%s3736_s5 + $0x1c] sm:$0x2] %v3304_v57 }
 0x641   :  { %2458 = vst [vmem:[%s3736_s5 + $0x1d] sm:$0x4] %v3304_v57 }
 0x642   :  { %2459 = vst [vmem:[%s3736_s5 + $0x1e] sm:$0x8] %v3304_v57 }
 0x643   :  { %2460 = vst [vmem:[%s3736_s5 + $0x1f] sm:$0x10] %v3304_v57 }
 0x644   :  { %2461 = vst [vmem:[%s3736_s5 + $0x20] sm:$0x20] %v3304_v57 }
 0x645   :  { %2462 = vst [vmem:[%s3736_s5 + $0x21] sm:$0x40] %v3304_v57 }
 0x646   :  { %2463 = vst [vmem:[%s3736_s5 + $0x22] sm:$0x80] %v3304_v57 }
 0x647   :  { %2433 = vst [vmem:[%s3736_s5 + $0x2c] sm:$0x1] %v3306_v15 }
 0x648   :  { %2434 = vst [vmem:[%s3736_s5 + $0x2d] sm:$0x2] %v3306_v15 }
 0x649   :  { %2435 = vst [vmem:[%s3736_s5 + $0x2e] sm:$0x4] %v3306_v15 }
 0x64a   :  { %2436 = vst [vmem:[%s3736_s5 + $0x2f] sm:$0x8] %v3306_v15 }
 0x64b   :  { %2437 = vst [vmem:[%s3736_s5 + $0x30] sm:$0x10] %v3306_v15 }
 0x64c   :  { %2438 = vst [vmem:[%s3736_s5 + $0x31] sm:$0x20] %v3306_v15 }
 0x64d   :  { %2464 = vst [vmem:[%s3736_s5 + $0x2b] sm:$0x1] %v3308_v16 }
 0x64e   :  { %2465 = vst [vmem:[%s3736_s5 + $0x2c] sm:$0x2] %v3308_v16 }
 0x64f   :  { %2466 = vst [vmem:[%s3736_s5 + $0x2d] sm:$0x4] %v3308_v16 }
 0x650   :  { %2467 = vst [vmem:[%s3736_s5 + $0x2e] sm:$0x8] %v3308_v16 }
 0x651   :  { %2468 = vst [vmem:[%s3736_s5 + $0x2f] sm:$0x10] %v3308_v16 }
 0x652   :  { %2469 = vst [vmem:[%s3736_s5 + $0x30] sm:$0x20] %v3308_v16 }
 0x653   :  { %2470 = vst [vmem:[%s3736_s5 + $0x31] sm:$0x40] %v3308_v16 }
 0x654   :  { %2475 = vsyncpa [#allocation8], 1 }
 0x655   :  { %2476 = vsyncpa [#allocation10], 1 }

</bundles_post_ra>
